<compile_context>
chip_gen: v6e
topology: v6e:2x2x1
jax: 0.10.0
libtpu: 0.0.40
codegen_flags: <defaults>
</compile_context>

<pallas_src>
import jax
import jax.numpy as jnp
from jax.experimental import pallas as pl


def _round_up(x, m):
    return (x + m - 1) // m * m


def _make_fused_kernel(*, N, H, W, eps):
    """Build the fused ResBlock kernel over a (Cp, LF) slab.

    Slab layout: channels on sublanes (padded to Cp rows), pixels on lanes: the
    zero-ring-padded pixels of all N images are concatenated at lanes [G, G + N*Hp*Wp)
    inside an LF-lane frame (LF a multiple of 128, >= G zero margin lanes each side).
    """
    Hp, Wp = H + 2, W + 2
    P = Hp * Wp                        # padded pixels per image
    L = N * P                          # all images, concatenated on lanes
    G = Wp + 1                         # max |tap offset| in flattened padded coords
    LF = _round_up(L + 2 * G, 128)     # lane-dense frame width
    assert LF - G - L >= G             # right margin large enough for the +G tap
    inv_count = 1.0 / float(N * H * W)
    # flattened lane offset of tap (ky, kx), t = ky*3 + kx
    taps = [(ky - 1) * Wp + (kx - 1) for ky in range(3) for kx in range(3)]

    def lane_shift(slab, dt):
        # v[:, j] = slab[:, (j + dt) % LF]; the wrap only pollutes margin lanes,
        # which are never used (masked from stats, re-zeroed, discarded).
        if dt == 0:
            return slab
        s = dt % LF
        return jnp.concatenate([slab[:, s:], slab[:, :s]], axis=1)

    def conv3x3(slab, wf, bias):
        # One K = 9*Cp MXU matmul: stack the 9 lane-shifted views on sublanes
        # (each view is a full 8-sublane tile -> aligned concatenation).
        views = [lane_shift(slab, dt) for dt in taps]
        stacked = jnp.concatenate(views, axis=0)               # (9*Cp, LF)
        y = jnp.dot(wf, stacked,
                    precision=jax.lax.Precision.HIGHEST,
                    preferred_element_type=jnp.float32)        # (Cp, LF)
        return y + bias

    def batchnorm(y, mask, gamma, beta):
        # Training-mode BatchNorm2d: per-channel batch mean / biased variance over
        # the real (masked) pixels; centered variance for numerical robustness.
        mean = jnp.sum(y * mask, axis=1, keepdims=True) * inv_count       # (Cp, 1)
        d = (y - mean) * mask
        var = jnp.sum(d * d, axis=1, keepdims=True) * inv_count           # (Cp, 1)
        scale = gamma * jax.lax.rsqrt(var + eps)
        shift = beta - mean * scale
        return y * scale + shift

    def kernel(x_ref, m_ref, w_ref, cb_ref, g_ref, b_ref, o_ref):
        x = x_ref[...]                 # (Cp, LF) padded input slab (residual source)
        m = m_ref[...]                 # (1, LF)  1.0 at real pixels, 0 elsewhere
        wf = w_ref[...]                # (Cp, 9*Cp) folded conv weight
        cb = cb_ref[...]               # (Cp, 1)  conv bias
        gamma = g_ref[...]             # (Cp, 1)  BN weight
        beta = b_ref[...]              # (Cp, 1)  BN bias

        y1 = conv3x3(x, wf, cb)
        # mask re-zeroes the pad ring and the frame margins before the second conv
        z = jnp.maximum(batchnorm(y1, m, gamma, beta), 0.0) * m
        y2 = conv3x3(z, wf, cb)
        o_ref[...] = batchnorm(y2, m, gamma, beta) + x

    return kernel, P, L, G, LF


def resblock_forward(x_nchw, w_oihw, conv_b, bn_gamma, bn_beta, *, eps=1e-5):
    """Forward of ResBlock(in_c, out_c, padding=1); conv/bn shared across both uses."""
    N, C, H, W = x_nchw.shape
    assert w_oihw.shape == (C, C, 3, 3), "ResBlock requires in_channels == out_channels"
    Hp, Wp = H + 2, W + 2
    Cp = _round_up(C, 8)               # full sublane tile => aligned concats / stores
    f32 = jnp.float32

    kernel, P, L, G, LF = _make_fused_kernel(N=N, H=H, W=W, eps=eps)

    # Fully fused single-invocation kernel: the whole problem lives in VMEM.
    # (stacked operand + a handful of slabs; comfortably under the default scoped limit)
    assert 18 * Cp * LF * 4 < 12 * 1024 * 1024, "batch too large for the fused kernel"

    # Channels on sublanes (padded to Cp), all images' zero-ring-padded pixels
    # concatenated on lanes inside a 128-multiple frame with >= G zero margins.
    xpad = jnp.pad(x_nchw.astype(f32), ((0, 0), (0, 0), (1, 1), (1, 1)))   # (N,C,Hp,Wp)
    slab = xpad.transpose(1, 0, 2, 3).reshape(C, L)                        # (C, L)
    x_ext = jnp.pad(slab, ((0, Cp - C), (G, LF - L - G)))                  # (Cp, LF)

    mask1 = jnp.zeros((Hp, Wp), f32).at[1:1 + H, 1:1 + W].set(1.0).reshape(P)
    mask = jnp.pad(jnp.tile(mask1, N), (G, LF - L - G)).reshape(1, LF)     # (1, LF)

    # Folded weight: wf[c_out, (ky*3+kx)*Cp + c_in] = w[c_out, c_in, ky, kx]
    w_pad = jnp.zeros((Cp, Cp, 3, 3), f32).at[:C, :C].set(w_oihw.astype(f32))
    wf = w_pad.transpose(0, 2, 3, 1).reshape(Cp, 9 * Cp)                   # (Cp, 9*Cp)
    cb = jnp.pad(conv_b.astype(f32), (0, Cp - C)).reshape(Cp, 1)
    gamma = jnp.pad(bn_gamma.astype(f32), (0, Cp - C)).reshape(Cp, 1)
    beta = jnp.pad(bn_beta.astype(f32), (0, Cp - C)).reshape(Cp, 1)

    # No grid / no BlockSpec tiling: every (tiny) operand is a whole-array VMEM block.
    out_ext = pl.pallas_call(
        kernel,
        out_shape=jax.ShapeDtypeStruct((Cp, LF), f32),
    )(x_ext, mask, wf, cb, gamma, beta)

    out = out_ext[:C, G:G + L].reshape(C, N, Hp, Wp).transpose(1, 0, 2, 3)
    return out[:, :, 1:1 + H, 1:1 + W]


def ref_resblock(x, w, b, gamma, beta, eps=1e-5):
    """Pure-JAX reference of the PyTorch forward (NCHW), training-mode BatchNorm."""
    def conv(z):
        y = jax.lax.conv_general_dilated(
            z, w, window_strides=(1, 1), padding=((1, 1), (1, 1)),
            dimension_numbers=("NCHW", "OIHW", "NCHW"),
            precision=jax.lax.Precision.HIGHEST)
        return y + b[None, :, None, None]

    def bn(z):
        mean = jnp.mean(z, axis=(0, 2, 3), keepdims=True)
        var = jnp.mean((z - mean) ** 2, axis=(0, 2, 3), keepdims=True)
        return ((z - mean) * jax.lax.rsqrt(var + eps)
                * gamma[None, :, None, None] + beta[None, :, None, None])

    y = jax.nn.relu(bn(conv(x)))
    y = bn(conv(y))
    return y + x


if __name__ == "__main__":
    N, C, H, W = 2, 4, 16, 16

    key = jax.random.PRNGKey(0)
    k_w, k_b, k_g, k_be, k_x = jax.random.split(key, 5)
    # Shapes from ResBlock.__init__: conv3x3.weight (C,C,3,3), conv3x3.bias (C,),
    # batchnorm.weight (gamma) (C,), batchnorm.bias (beta) (C,).
    w = jax.random.normal(k_w, (C, C, 3, 3), jnp.float32) / jnp.sqrt(9.0 * C)
    b = 0.1 * jax.random.normal(k_b, (C,), jnp.float32)
    gamma = 1.0 + 0.1 * jax.random.normal(k_g, (C,), jnp.float32)
    beta = 0.1 * jax.random.normal(k_be, (C,), jnp.float32)
    x = jax.random.normal(k_x, (N, C, H, W), jnp.float32)

    fwd = jax.jit(resblock_forward)
    out = jax.block_until_ready(fwd(x, w, b, gamma, beta))
    ref = jax.block_until_ready(ref_resblock(x, w, b, gamma, beta))

    assert out.shape == x.shape and out.dtype == jnp.float32
    # In-kernel convs run at Precision.HIGHEST, so the expected max abs error vs the
    # f32 reference is ~1e-6; the loose bound below is only a guard against backends
    # that downgrade in-kernel matmul precision.
    if not bool(jnp.allclose(out, ref, atol=3e-2, rtol=3e-2)):
        max_err = float(jnp.max(jnp.abs(out - ref)))
        raise SystemExit(f"Pallas kernel mismatch vs reference, max abs err = {max_err}")

    print("KERNEL_OK")
</pallas_src>

<mosaic_0001>
module attributes {stable_mosaic.version = 11 : i64} {
  func.func @kernel(%arg0: memref<8x768xf32, #tpu.memory_space<vmem>>, %arg1: memref<1x768xf32, #tpu.memory_space<vmem>>, %arg2: memref<8x72xf32, #tpu.memory_space<vmem>>, %arg3: memref<8x1xf32, #tpu.memory_space<vmem>>, %arg4: memref<8x1xf32, #tpu.memory_space<vmem>>, %arg5: memref<8x1xf32, #tpu.memory_space<vmem>>, %arg6: memref<8x768xf32, #tpu.memory_space<vmem>>) attributes {dimension_semantics = [], scalar_prefetch = 0 : i64, scratch_operands = 0 : i64, tpu.core_type = #tpu.core_type<tc>} {
    %c0 = arith.constant 0 : index
    %c0_0 = arith.constant 0 : index
    %0 = vector.load %arg0[%c0, %c0_0] : memref<8x768xf32, #tpu.memory_space<vmem>>, vector<8x768xf32>
    %c0_1 = arith.constant 0 : index
    %c0_2 = arith.constant 0 : index
    %1 = vector.load %arg1[%c0_1, %c0_2] : memref<1x768xf32, #tpu.memory_space<vmem>>, vector<1x768xf32>
    %c0_3 = arith.constant 0 : index
    %c0_4 = arith.constant 0 : index
    %2 = vector.load %arg2[%c0_3, %c0_4] : memref<8x72xf32, #tpu.memory_space<vmem>>, vector<8x72xf32>
    %c0_5 = arith.constant 0 : index
    %c0_6 = arith.constant 0 : index
    %3 = vector.load %arg3[%c0_5, %c0_6] : memref<8x1xf32, #tpu.memory_space<vmem>>, vector<8x1xf32>
    %c0_7 = arith.constant 0 : index
    %c0_8 = arith.constant 0 : index
    %4 = vector.load %arg4[%c0_7, %c0_8] : memref<8x1xf32, #tpu.memory_space<vmem>>, vector<8x1xf32>
    %c0_9 = arith.constant 0 : index
    %c0_10 = arith.constant 0 : index
    %5 = vector.load %arg5[%c0_9, %c0_10] : memref<8x1xf32, #tpu.memory_space<vmem>>, vector<8x1xf32>
    %6 = vector.extract_strided_slice %0 {offsets = [0, 749], sizes = [8, 19], strides = [1, 1]} : vector<8x768xf32> to vector<8x19xf32>
    %7 = vector.extract_strided_slice %0 {offsets = [0, 0], sizes = [8, 749], strides = [1, 1]} : vector<8x768xf32> to vector<8x749xf32>
    %8 = tpu.concatenate %6, %7 in 1 : vector<8x19xf32>, vector<8x749xf32> -> vector<8x768xf32>
    %9 = vector.extract_strided_slice %0 {offsets = [0, 750], sizes = [8, 18], strides = [1, 1]} : vector<8x768xf32> to vector<8x18xf32>
    %10 = vector.extract_strided_slice %0 {offsets = [0, 0], sizes = [8, 750], strides = [1, 1]} : vector<8x768xf32> to vector<8x750xf32>
    %11 = tpu.concatenate %9, %10 in 1 : vector<8x18xf32>, vector<8x750xf32> -> vector<8x768xf32>
    %12 = vector.extract_strided_slice %0 {offsets = [0, 751], sizes = [8, 17], strides = [1, 1]} : vector<8x768xf32> to vector<8x17xf32>
    %13 = vector.extract_strided_slice %0 {offsets = [0, 0], sizes = [8, 751], strides = [1, 1]} : vector<8x768xf32> to vector<8x751xf32>
    %14 = tpu.concatenate %12, %13 in 1 : vector<8x17xf32>, vector<8x751xf32> -> vector<8x768xf32>
    %15 = vector.extract_strided_slice %0 {offsets = [0, 767], sizes = [8, 1], strides = [1, 1]} : vector<8x768xf32> to vector<8x1xf32>
    %16 = vector.extract_strided_slice %0 {offsets = [0, 0], sizes = [8, 767], strides = [1, 1]} : vector<8x768xf32> to vector<8x767xf32>
    %17 = tpu.concatenate %15, %16 in 1 : vector<8x1xf32>, vector<8x767xf32> -> vector<8x768xf32>
    %18 = vector.extract_strided_slice %0 {offsets = [0, 1], sizes = [8, 767], strides = [1, 1]} : vector<8x768xf32> to vector<8x767xf32>
    %19 = vector.extract_strided_slice %0 {offsets = [0, 0], sizes = [8, 1], strides = [1, 1]} : vector<8x768xf32> to vector<8x1xf32>
    %20 = tpu.concatenate %18, %19 in 1 : vector<8x767xf32>, vector<8x1xf32> -> vector<8x768xf32>
    %21 = vector.extract_strided_slice %0 {offsets = [0, 17], sizes = [8, 751], strides = [1, 1]} : vector<8x768xf32> to vector<8x751xf32>
    %22 = vector.extract_strided_slice %0 {offsets = [0, 0], sizes = [8, 17], strides = [1, 1]} : vector<8x768xf32> to vector<8x17xf32>
    %23 = tpu.concatenate %21, %22 in 1 : vector<8x751xf32>, vector<8x17xf32> -> vector<8x768xf32>
    %24 = vector.extract_strided_slice %0 {offsets = [0, 18], sizes = [8, 750], strides = [1, 1]} : vector<8x768xf32> to vector<8x750xf32>
    %25 = vector.extract_strided_slice %0 {offsets = [0, 0], sizes = [8, 18], strides = [1, 1]} : vector<8x768xf32> to vector<8x18xf32>
    %26 = tpu.concatenate %24, %25 in 1 : vector<8x750xf32>, vector<8x18xf32> -> vector<8x768xf32>
    %27 = vector.extract_strided_slice %0 {offsets = [0, 19], sizes = [8, 749], strides = [1, 1]} : vector<8x768xf32> to vector<8x749xf32>
    %28 = vector.extract_strided_slice %0 {offsets = [0, 0], sizes = [8, 19], strides = [1, 1]} : vector<8x768xf32> to vector<8x19xf32>
    %29 = tpu.concatenate %27, %28 in 1 : vector<8x749xf32>, vector<8x19xf32> -> vector<8x768xf32>
    %30 = tpu.concatenate %8, %11, %14, %17, %0, %20, %23, %26, %29 in 0 : vector<8x768xf32>, vector<8x768xf32>, vector<8x768xf32>, vector<8x768xf32>, vector<8x768xf32>, vector<8x768xf32>, vector<8x768xf32>, vector<8x768xf32>, vector<8x768xf32> -> vector<72x768xf32>
    %cst = arith.constant dense<0.000000e+00> : vector<8x768xf32>
    %31 = tpu.matmul %2, %30, %cst {dimension_numbers = #tpu.dot_dimension_numbers<[1], [0], [0], [1], [0, 0, 1, 1], [], []>, precision = #tpu.contract_precision<fp32>} : vector<8x72xf32>, vector<72x768xf32>, vector<8x768xf32> -> vector<8x768xf32>
    %32 = vector.broadcast %3 : vector<8x1xf32> to vector<8x768xf32>
    %33 = arith.addf %31, %32 : vector<8x768xf32>
    %34 = vector.broadcast %1 : vector<1x768xf32> to vector<8x768xf32>
    %35 = arith.mulf %33, %34 : vector<8x768xf32>
    %cst_11 = arith.constant dense<0.000000e+00> : vector<8xf32>
    %36 = vector.multi_reduction <add>, %35, %cst_11 [1] : vector<8x768xf32> to vector<8xf32>
    %37 = vector.shape_cast %36 : vector<8xf32> to vector<8x1xf32>
    %cst_12 = arith.constant 0.001953125 : f32
    %38 = vector.broadcast %cst_12 : f32 to vector<8x1xf32>
    %39 = arith.mulf %37, %38 : vector<8x1xf32>
    %40 = vector.broadcast %39 : vector<8x1xf32> to vector<8x768xf32>
    %41 = arith.subf %33, %40 : vector<8x768xf32>
    %42 = vector.broadcast %1 : vector<1x768xf32> to vector<8x768xf32>
    %43 = arith.mulf %41, %42 : vector<8x768xf32>
    %44 = arith.mulf %43, %43 : vector<8x768xf32>
    %cst_13 = arith.constant dense<0.000000e+00> : vector<8xf32>
    %45 = vector.multi_reduction <add>, %44, %cst_13 [1] : vector<8x768xf32> to vector<8xf32>
    %46 = vector.shape_cast %45 : vector<8xf32> to vector<8x1xf32>
    %cst_14 = arith.constant 0.001953125 : f32
    %47 = vector.broadcast %cst_14 : f32 to vector<8x1xf32>
    %48 = arith.mulf %46, %47 : vector<8x1xf32>
    %cst_15 = arith.constant 9.99999974E-6 : f32
    %49 = vector.broadcast %cst_15 : f32 to vector<8x1xf32>
    %50 = arith.addf %48, %49 : vector<8x1xf32>
    %51 = math.rsqrt %50 : vector<8x1xf32>
    %52 = arith.mulf %4, %51 : vector<8x1xf32>
    %53 = arith.mulf %39, %52 : vector<8x1xf32>
    %54 = arith.subf %5, %53 : vector<8x1xf32>
    %55 = vector.broadcast %52 : vector<8x1xf32> to vector<8x768xf32>
    %56 = arith.mulf %33, %55 : vector<8x768xf32>
    %57 = vector.broadcast %54 : vector<8x1xf32> to vector<8x768xf32>
    %58 = arith.addf %56, %57 : vector<8x768xf32>
    %cst_16 = arith.constant 0.000000e+00 : f32
    %59 = vector.broadcast %cst_16 : f32 to vector<8x768xf32>
    %60 = arith.maximumf %58, %59 : vector<8x768xf32>
    %61 = vector.broadcast %1 : vector<1x768xf32> to vector<8x768xf32>
    %62 = arith.mulf %60, %61 : vector<8x768xf32>
    %63 = vector.extract_strided_slice %62 {offsets = [0, 749], sizes = [8, 19], strides = [1, 1]} : vector<8x768xf32> to vector<8x19xf32>
    %64 = vector.extract_strided_slice %62 {offsets = [0, 0], sizes = [8, 749], strides = [1, 1]} : vector<8x768xf32> to vector<8x749xf32>
    %65 = tpu.concatenate %63, %64 in 1 : vector<8x19xf32>, vector<8x749xf32> -> vector<8x768xf32>
    %66 = vector.extract_strided_slice %62 {offsets = [0, 750], sizes = [8, 18], strides = [1, 1]} : vector<8x768xf32> to vector<8x18xf32>
    %67 = vector.extract_strided_slice %62 {offsets = [0, 0], sizes = [8, 750], strides = [1, 1]} : vector<8x768xf32> to vector<8x750xf32>
    %68 = tpu.concatenate %66, %67 in 1 : vector<8x18xf32>, vector<8x750xf32> -> vector<8x768xf32>
    %69 = vector.extract_strided_slice %62 {offsets = [0, 751], sizes = [8, 17], strides = [1, 1]} : vector<8x768xf32> to vector<8x17xf32>
    %70 = vector.extract_strided_slice %62 {offsets = [0, 0], sizes = [8, 751], strides = [1, 1]} : vector<8x768xf32> to vector<8x751xf32>
    %71 = tpu.concatenate %69, %70 in 1 : vector<8x17xf32>, vector<8x751xf32> -> vector<8x768xf32>
    %72 = vector.extract_strided_slice %62 {offsets = [0, 767], sizes = [8, 1], strides = [1, 1]} : vector<8x768xf32> to vector<8x1xf32>
    %73 = vector.extract_strided_slice %62 {offsets = [0, 0], sizes = [8, 767], strides = [1, 1]} : vector<8x768xf32> to vector<8x767xf32>
    %74 = tpu.concatenate %72, %73 in 1 : vector<8x1xf32>, vector<8x767xf32> -> vector<8x768xf32>
    %75 = vector.extract_strided_slice %62 {offsets = [0, 1], sizes = [8, 767], strides = [1, 1]} : vector<8x768xf32> to vector<8x767xf32>
    %76 = vector.extract_strided_slice %62 {offsets = [0, 0], sizes = [8, 1], strides = [1, 1]} : vector<8x768xf32> to vector<8x1xf32>
    %77 = tpu.concatenate %75, %76 in 1 : vector<8x767xf32>, vector<8x1xf32> -> vector<8x768xf32>
    %78 = vector.extract_strided_slice %62 {offsets = [0, 17], sizes = [8, 751], strides = [1, 1]} : vector<8x768xf32> to vector<8x751xf32>
    %79 = vector.extract_strided_slice %62 {offsets = [0, 0], sizes = [8, 17], strides = [1, 1]} : vector<8x768xf32> to vector<8x17xf32>
    %80 = tpu.concatenate %78, %79 in 1 : vector<8x751xf32>, vector<8x17xf32> -> vector<8x768xf32>
    %81 = vector.extract_strided_slice %62 {offsets = [0, 18], sizes = [8, 750], strides = [1, 1]} : vector<8x768xf32> to vector<8x750xf32>
    %82 = vector.extract_strided_slice %62 {offsets = [0, 0], sizes = [8, 18], strides = [1, 1]} : vector<8x768xf32> to vector<8x18xf32>
    %83 = tpu.concatenate %81, %82 in 1 : vector<8x750xf32>, vector<8x18xf32> -> vector<8x768xf32>
    %84 = vector.extract_strided_slice %62 {offsets = [0, 19], sizes = [8, 749], strides = [1, 1]} : vector<8x768xf32> to vector<8x749xf32>
    %85 = vector.extract_strided_slice %62 {offsets = [0, 0], sizes = [8, 19], strides = [1, 1]} : vector<8x768xf32> to vector<8x19xf32>
    %86 = tpu.concatenate %84, %85 in 1 : vector<8x749xf32>, vector<8x19xf32> -> vector<8x768xf32>
    %87 = tpu.concatenate %65, %68, %71, %74, %62, %77, %80, %83, %86 in 0 : vector<8x768xf32>, vector<8x768xf32>, vector<8x768xf32>, vector<8x768xf32>, vector<8x768xf32>, vector<8x768xf32>, vector<8x768xf32>, vector<8x768xf32>, vector<8x768xf32> -> vector<72x768xf32>
    %cst_17 = arith.constant dense<0.000000e+00> : vector<8x768xf32>
    %88 = tpu.matmul %2, %87, %cst_17 {dimension_numbers = #tpu.dot_dimension_numbers<[1], [0], [0], [1], [0, 0, 1, 1], [], []>, precision = #tpu.contract_precision<fp32>} : vector<8x72xf32>, vector<72x768xf32>, vector<8x768xf32> -> vector<8x768xf32>
    %89 = vector.broadcast %3 : vector<8x1xf32> to vector<8x768xf32>
    %90 = arith.addf %88, %89 : vector<8x768xf32>
    %91 = vector.broadcast %1 : vector<1x768xf32> to vector<8x768xf32>
    %92 = arith.mulf %90, %91 : vector<8x768xf32>
    %cst_18 = arith.constant dense<0.000000e+00> : vector<8xf32>
    %93 = vector.multi_reduction <add>, %92, %cst_18 [1] : vector<8x768xf32> to vector<8xf32>
    %94 = vector.shape_cast %93 : vector<8xf32> to vector<8x1xf32>
    %cst_19 = arith.constant 0.001953125 : f32
    %95 = vector.broadcast %cst_19 : f32 to vector<8x1xf32>
    %96 = arith.mulf %94, %95 : vector<8x1xf32>
    %97 = vector.broadcast %96 : vector<8x1xf32> to vector<8x768xf32>
    %98 = arith.subf %90, %97 : vector<8x768xf32>
    %99 = vector.broadcast %1 : vector<1x768xf32> to vector<8x768xf32>
    %100 = arith.mulf %98, %99 : vector<8x768xf32>
    %101 = arith.mulf %100, %100 : vector<8x768xf32>
    %cst_20 = arith.constant dense<0.000000e+00> : vector<8xf32>
    %102 = vector.multi_reduction <add>, %101, %cst_20 [1] : vector<8x768xf32> to vector<8xf32>
    %103 = vector.shape_cast %102 : vector<8xf32> to vector<8x1xf32>
    %cst_21 = arith.constant 0.001953125 : f32
    %104 = vector.broadcast %cst_21 : f32 to vector<8x1xf32>
    %105 = arith.mulf %103, %104 : vector<8x1xf32>
    %cst_22 = arith.constant 9.99999974E-6 : f32
    %106 = vector.broadcast %cst_22 : f32 to vector<8x1xf32>
    %107 = arith.addf %105, %106 : vector<8x1xf32>
    %108 = math.rsqrt %107 : vector<8x1xf32>
    %109 = arith.mulf %4, %108 : vector<8x1xf32>
    %110 = arith.mulf %96, %109 : vector<8x1xf32>
    %111 = arith.subf %5, %110 : vector<8x1xf32>
    %112 = vector.broadcast %109 : vector<8x1xf32> to vector<8x768xf32>
    %113 = arith.mulf %90, %112 : vector<8x768xf32>
    %114 = vector.broadcast %111 : vector<8x1xf32> to vector<8x768xf32>
    %115 = arith.addf %113, %114 : vector<8x768xf32>
    %116 = arith.addf %115, %0 : vector<8x768xf32>
    %c0_23 = arith.constant 0 : index
    %c0_24 = arith.constant 0 : index
    %117 = vector.load %arg6[%c0_23, %c0_24] : memref<8x768xf32, #tpu.memory_space<vmem>>, vector<8x768xf32>
    tpu.vector_store %arg6[%c0_23, %c0_24], %116 {strides = array<i32>} : memref<8x768xf32, #tpu.memory_space<vmem>>, vector<8x768xf32>,
    return
  }
}

</mosaic_0001>

<bundles_post_ra>
// kernel: tile.5
= control target key start
LH: loop header
LB: loop body
LE: loop exit
PB: predicated region body
PF: predicated region fallthrough
CT: control target
= control target key end

     0   :  { %vm9_vm0 = vcmask 15360   ;;  %vm22_vm1 = vcmask 31744   ;;  %s175_s14 = smov 126   ;;  %s176_s15 = smov 108   ;;  %vm3_vm2 = vcmask 146432   ;;  %vm13_vm3 = vcmask 130048   ;;  %s265_s0 = inlined_call_operand.vmem [shape: f32[18,18], index: 0, kind: input, shape index: {}]   ;;  %s266_s1 = inlined_call_operand.vmem [shape: f32[324], index: 1, kind: output, shape index: {}]  }
   0x1   :  { %v139_v0 = vld [vmem:[%s265_s0 + $0x7] sm:$0x1]   ;;  %v143_v3 = vld [vmem:[%s265_s0 + $0x6] sm:$0x1]   ;;  %v141_v4 = vld [vmem:[%s265_s0 + $0xe] sm:$0x1]  }
   0x2   :  { %v140_v1 = vld [vmem:[%s265_s0 + $0x7] sm:$0x1]   ;;  %34 = vrot.lane.b32.xlu1 %v143_v3, %s176_s15  ;;  %v142_v5 = vld [vmem:[%s265_s0 + $0xe] sm:$0x1]   ;;  %v144_v7 = vld [vmem:[%s265_s0 + $0xd] sm:$0x1]  }
   0x3   :  { %v10_v2 = vsel %vm9_vm0, %v140_v1, %v139_v0  ;;  %v23_v6 = vsel %vm22_vm1, %v142_v5, %v141_v4  ;;  %s177_s20 = smov 124   ;;  %s178_s21 = smov 106   ;;  %v145_v8 = vld [vmem:[%s265_s0 + $0x5] sm:$0x1]   ;;  %v146_v9 = vld [vmem:[%s265_s0 + $0xc] sm:$0x1]  }
   0x4   :  { %11 = vrot.lane.b32.xlu0 %v10_v2, %s175_s14  ;;  %s179_s26 = smov 90   ;;  %s180_s27 = smov 88   ;;  %v2_v10 = vld [vmem:[%s265_s0] sm:$0x1]   ;;  %v147_v11 = vld [vmem:[%s265_s0 + $0x4] sm:$0x1]  }
   0x5   :  { %v148_v12 = vld [vmem:[%s265_s0 + $0xb] sm:$0x1]   ;;  %4 = vst.msk [vmem:[#allocation0] sm:$0x1] %vm3_vm2, %v2_v10   ;;  %s181_s5 = smov 72   ;;  %s182_s6 = smov 70  }
   0x6   :  { %40 = vrot.lane.b32.xlu1 %v144_v7, %s178_s21  ;;  %v149_v13 = vld [vmem:[%s265_s0 + $0x3] sm:$0x1]   ;;  %v150_v14 = vld [vmem:[%s265_s0 + $0xa] sm:$0x1]   ;;  %s183_s11 = smov 54   ;;  %s184_s12 = smov 52  }
   0x7   :  { %v151_v15 = vld [vmem:[%s265_s0 + $0x11] sm:$0x1]   ;;  %v152_v16 = vld [vmem:[%s265_s0 + $0x2] sm:$0x1]   ;;  %s185_s17 = smov 50   ;;  %s186_s18 = smov 36  }
   0x8   :  { %24 = vrot.lane.b32.xlu0 %v23_v6, %s177_s20  ;;  %v153_v17 = vld [vmem:[%s265_s0 + $0x9] sm:$0x1]   ;;  %v154_v18 = vld [vmem:[%s265_s0 + $0x10] sm:$0x1]   ;;  %s187_s23 = smov 34   ;;  %s188_s24 = smov 32  }
   0x9   :  { %v155_v19 = vld [vmem:[%s265_s0 + $0x1] sm:$0x1]   ;;  %v156_v20 = vld [vmem:[%s265_s0 + $0x8] sm:$0x1]   ;;  %s189_s29 = smov 18   ;;  %s190_s30 = smov 16  }
   0xa   :  { %53 = vrot.lane.b32.xlu1 %v146_v9, %s180_s27  ;;  %v157_v21 = vld [vmem:[%s265_s0 + $0xf] sm:$0x1]   ;;  %s191_s0 = smov 14   ;;  %vm16_vm4 = vcmask 1048560   ;;  %vm36_vm5 = vcmask 1032032   ;;  %vm26_vm6 = vcmask 113664  }
   0xb   :  { %vm29_vm7 = vcmask 1048544   ;;  %vm42_vm8 = vcmask 1015632   ;;  %vm49_vm9 = vcmask 884432   ;;  %vm55_vm10 = vcmask 868032  }
   0xc   :  { %47 = vrot.lane.b32.xlu0 %v145_v8, %s179_s26  ;;  %vm62_vm11 = vcmask 736832   ;;  %vm68_vm12 = vcmask 720432   ;;  %vm75_vm13 = vcmask 589232   ;;  %vm81_vm14 = vcmask 572832  }
   0xd   :  { %vm88_vm15 = vcmask 556432   ;;  %vm95_vm0 = vcmask 441632   ;;  %vm101_vm1 = vcmask 425232   ;;  %vm108_vm2 = vcmask 408832  }
   0xe   :  { %66 = vrot.lane.b32.xlu1 %v148_v12, %s182_s6 }
  0x10   :  { %60 = vrot.lane.b32.xlu0 %v147_v11, %s181_s5 }
  0x12   :  { %79 = vrot.lane.b32.xlu1 %v150_v14, %s184_s12 }
  0x14   :  { %73 = vrot.lane.b32.xlu0 %v149_v13, %s183_s11 }
  0x16   :  { %93 = vrot.lane.b32.xlu1 %v152_v16, %s186_s18 }
  0x18   :  { %86 = vrot.lane.b32.xlu0 %v151_v15, %s185_s17 }
  0x1a   :  { %106 = vrot.lane.b32.xlu1 %v154_v18, %s188_s24 }
  0x1c   :  { %99 = vrot.lane.b32.xlu0 %v153_v17, %s187_s23 }
  0x1e   :  { %119 = vrot.lane.b32.xlu1 %v156_v20, %s190_s30 }
  0x20   :  { %113 = vrot.lane.b32.xlu0 %v155_v19, %s189_s29 }
  0x24   :  { %126 = vrot.lane.b32.xlu0 %v157_v21, %s191_s0 }
  0x74   :  { %v35_v23 = vpop.permute.xlu1 %34  }
  0x76   :  { %v12_v22 = vpop.permute.xlu0 %11  }
  0x77   :  { %15 = vst.msk [vmem:[#allocation0 + $0x1] sm:$0x1] %vm13_vm3, %v12_v22   ;;  %vm115_vm3 = vcmask 294032  }
  0x78   :  { %17 = vst.msk [vmem:[#allocation0] sm:$0x1] %vm16_vm4, %v12_v22   ;;  %v41_v25 = vpop.permute.xlu1 %40   ;;  %vm121_vm4 = vcmask 277632  }
  0x79   :  { %37 = vst.msk [vmem:[#allocation0] sm:$0x1] %vm36_vm5, %v35_v23   ;;  %vm128_vm5 = vcmask 261232  }
  0x7a   :  { %v25_v24 = vpop.permute.xlu0 %24  }
  0x7b   :  { %28 = vst.msk [vmem:[#allocation0 + $0x2] sm:$0x1] %vm26_vm6, %v25_v24  }
  0x7c   :  { %31 = vst.msk [vmem:[#allocation0 + $0x1] sm:$0x1] %vm29_vm7, %v25_v24   ;;  %v54_v27 = vpop.permute.xlu1 %53  }
  0x7d   :  { %44 = vst.msk [vmem:[#allocation0 + $0x1] sm:$0x1] %vm42_vm8, %v41_v25  }
  0x7e   :  { %v48_v26 = vpop.permute.xlu0 %47   ;;  %57 = vst.msk [vmem:[#allocation0 + $0x1] sm:$0x1] %vm55_vm10, %v54_v27  }
  0x7f   :  { %50 = vst.msk [vmem:[#allocation0] sm:$0x1] %vm49_vm9, %v48_v26  }
  0x80   :  { %v67_v29 = vpop.permute.xlu1 %66  }
  0x81   :  { %70 = vst.msk [vmem:[#allocation0 + $0x1] sm:$0x1] %vm68_vm12, %v67_v29  }
  0x82   :  { %v61_v28 = vpop.permute.xlu0 %60  }
  0x83   :  { %63 = vst.msk [vmem:[#allocation0] sm:$0x1] %vm62_vm11, %v61_v28  }
  0x84   :  { %v80_v31 = vpop.permute.xlu1 %79  }
  0x85   :  { %83 = vst.msk [vmem:[#allocation0 + $0x1] sm:$0x1] %vm81_vm14, %v80_v31  }
  0x86   :  { %v74_v30 = vpop.permute.xlu0 %73  }
  0x87   :  { %76 = vst.msk [vmem:[#allocation0] sm:$0x1] %vm75_vm13, %v74_v30  }
  0x88   :  { %v94_v33 = vpop.permute.xlu1 %93  }
  0x89   :  { %96 = vst.msk [vmem:[#allocation0] sm:$0x1] %vm95_vm0, %v94_v33  }
  0x8a   :  { %v87_v32 = vpop.permute.xlu0 %86  }
  0x8b   :  { %90 = vst.msk [vmem:[#allocation0 + $0x2] sm:$0x1] %vm88_vm15, %v87_v32  }
  0x8c   :  { %v107_v35 = vpop.permute.xlu1 %106  }
  0x8d   :  { %110 = vst.msk [vmem:[#allocation0 + $0x2] sm:$0x1] %vm108_vm2, %v107_v35  }
  0x8e   :  { %v100_v34 = vpop.permute.xlu0 %99  }
  0x8f   :  { %103 = vst.msk [vmem:[#allocation0 + $0x1] sm:$0x1] %vm101_vm1, %v100_v34  }
  0x90   :  { %v120_v37 = vpop.permute.xlu1 %119  }
  0x91   :  { %123 = vst.msk [vmem:[#allocation0 + $0x1] sm:$0x1] %vm121_vm4, %v120_v37  }
  0x92   :  { %v114_v36 = vpop.permute.xlu0 %113  }
  0x93   :  { %116 = vst.msk [vmem:[#allocation0] sm:$0x1] %vm115_vm3, %v114_v36  }
  0x96   :  { %v127_v38 = vpop.permute.xlu0 %126  }
  0x97   :  { %130 = vst.msk [vmem:[#allocation0 + $0x2] sm:$0x1] %vm128_vm5, %v127_v38  }
  0x9e   :  { %v135_v39 = vld [vmem:[#allocation0] sm:$0xf] }
  0x9f   :  { %138 = vst [vmem:[%s266_s1] sm:$0xf] %v135_v39 }

// kernel: tile.6
= control target key start
LH: loop header
LB: loop body
LE: loop exit
PB: predicated region body
PF: predicated region fallthrough
CT: control target
= control target key end

     0   :  { %s46_s0 = inlined_call_operand.vmem [shape: f32[324], index: 0, kind: input, shape index: {}]   ;;  %s47_s1 = inlined_call_operand.vmem [shape: f32[2,324], index: 1, kind: output, shape index: {}]  }
   0x1   :  { %v4_v0 = vld [vmem:[%s46_s0] ss:$0 sm:$0xff]  ;;  %v14_v1 = vld [vmem:[%s46_s0 + $0x1] ss:$0 sm:$0xff]  ;;  %v16_v2 = vld [vmem:[%s46_s0 + $0x2] ss:$0 sm:$0xff] }
   0x2   :  { %5 = vst [vmem:[%s47_s1] sm:$0x3] %v4_v0  ;;  %15 = vst [vmem:[%s47_s1 + $0x2] sm:$0x3] %v14_v1 }
   0x3   :  { %17 = vst [vmem:[%s47_s1 + $0x4] sm:$0x3] %v16_v2 }

// kernel: tile.7
= control target key start
LH: loop header
LB: loop body
LE: loop exit
PB: predicated region body
PF: predicated region fallthrough
CT: control target
= control target key end

     0   :  { %vm28_vm0 = vcmask 490496   ;;  %vm18_vm1 = vcmask 556032   ;;  %s39_s12 = smov 3  ;;  %s54_s13 = smov 68   ;;  %vm32_vm2 = vcmask 64512   ;;  %vm35_vm3 = vcmask 1048096   ;;  %s91_s0 = inlined_call_operand.vmem [shape: f32[2,324], index: 0, kind: input, shape index: {}]   ;;  %s92_s1 = inlined_call_operand.vmem [shape: f32[648], index: 1, kind: output, shape index: {}]  }
   0x1   :  { %v47_v0 = vld [vmem:[%s91_s0 + $0x4] sm:$0x3]  ;;  %v48_v1 = vld [vmem:[%s91_s0 + $0x2] sm:$0x3]  ;;  %v14_v2 = vld [vmem:[%s91_s0] sm:$0x3] }
   0x2   :  { %9 = vst [vmem:[#allocation0 + $0x10] sm:$0x3] %v47_v0  ;;  %13 = vst [vmem:[#allocation0 + $0x8] sm:$0x3] %v48_v1  ;;  %s21_s0 = smov 3 }
   0x3   :  { %15 = vst [vmem:[#allocation0] sm:$0x3] %v14_v2 }
   0x9   :  { %v25_v3 = vld [vmem:[#allocation0 + $0x11] sm:$0x1]   ;;  %v17_v7 = vld [vmem:[#allocation0 + $0x10] sm:$0x1]  }
   0xa   :  { %v27_v4 = vld [vmem:[#allocation0 + $0x1] ss:$8 sm:$0x7]   ;;  %v22_v6 = vld [vmem:[#allocation0] ss:$8 sm:%s21_s0]  }
   0xb   :  { %v29_v5 = vsel %vm28_vm0, %v27_v4, %v25_v3  ;;  %23 = vst [vmem:[%s92_s1] sm:$0x3] %v22_v6   ;;  %49 = vst.msk [vmem:[%s92_s1 + $0x2] sm:$0x1] %vm18_vm1, %v17_v7   ;;  %v40_v8 = vld [vmem:[#allocation0 + $0x1] ss:$8 sm:%s39_s12]  }
   0xc   :  { %30 = vrot.lane.b32.xlu0 %v29_v5, %s54_s13 }
  0x10   :  { %41 = vrot.lane.b32.xlu0 %v40_v8, %s54_s13 }
  0x7e   :  { %v31_v9 = vpop.permute.xlu0 %30  }
  0x7f   :  { %50 = vst.msk [vmem:[%s92_s1 + $0x5] sm:$0x1] %vm32_vm2, %v31_v9  }
  0x80   :  { %51 = vst.msk [vmem:[%s92_s1 + $0x2] sm:$0x7] %vm35_vm3, %v31_v9  }
  0x82   :  { %v42_v10 = vpop.permute.xlu0 %41  }
  0x83   :  { %52 = vst.msk [vmem:[%s92_s1 + $0x3] sm:$0x3] %vm18_vm1, %v42_v10  }

// kernel: resblock_forward.1
= control target key start
LH: loop header
LB: loop body
LE: loop exit
PB: predicated region body
PF: predicated region fallthrough
CT: control target
= control target key end

     0   :  { %s4720_s25 = smov 109   ;;  %s4721_s28 = smov 110   ;;  %v7215_v4 = vmov 0.0   ;;  %vm234_vm0 = vcmask 891904   ;;  %v4729_v14 = vmov 0   ;;  %vm208_vm1 = vcmask 900096   ;;  %s7194_s0 = inlined_call_operand.vmem [shape: f32[8,768], index: 0, kind: input, shape index: {}]   ;;  %s7195_s3 = inlined_call_operand.vmem [shape: f32[8,1], index: 3, kind: input, shape index: {}]   ;;  %s7196_s2 = inlined_call_operand.vmem [shape: f32[8,72], index: 2, kind: input, shape index: {}]   ;;  %s7197_s1 = inlined_call_operand.vmem [shape: f32[1,768], index: 1, kind: input, shape index: {}]   ;;  %s7198_s4 = inlined_call_operand.vmem [shape: f32[8,1], index: 4, kind: input, shape index: {}]   ;;  %s7199_s5 = inlined_call_operand.vmem [shape: f32[8,1], index: 5, kind: input, shape index: {}]   ;;  %s7200_s6 = inlined_call_operand.vmem [shape: f32[8,768], index: 6, kind: output, shape index: {}]  }
   0x1   :  { %v4768_v0 = vld [vmem:[%s7194_s0 + $0x8] sm:$0xff]  ;;  %v4773_v1 = vld [vmem:[%s7194_s0] sm:$0xff]  ;;  %v4782_v2 = vld [vmem:[%s7194_s0 + $0x10] sm:$0xff]  ;;  %s4722_s29 = smov 111   ;;  %s4723_s30 = smov 127   ;;  %339 = vmatprep.mubr.f32.mxu0 %v7215_v4  ;;  %505 = vmatprep.mubr.f32.mxu1 %v7215_v4  ;;  %vm182_vm2 = vcmask 908288  }
   0x2   :  { %224 = vrot.lane.b32.xlu0 %v4768_v0, %s4720_s25  ;;  %222 = vrot.lane.b32.xlu1 %v4773_v1, %s4720_s25  ;;  %s4724_s7 = smov 1   ;;  %v28_v3 = vld [vmem:[%s7194_s0 + $0x28] sm:$0xff]  ;;  %s4725_s10 = smov 17   ;;  %v4832_v5 = vld [vmem:[%s7194_s0 + $0x18] sm:$0xff]  ;;  %v4929_v34 = vand.u32 4294901760, %v4768_v0  ;;  %v4936_v40 = vand.u32 4294901760, %v4773_v1 }
   0x3   :  { %s4726_s11 = smov 18   ;;  %s4728_s12 = smov 19   ;;  %v27_v6 = vld [vmem:[%s7194_s0 + $0x20] sm:$0xff]  ;;  %4704 = vset.pattern.permute.xlu0 %v4729_v14  ;;  %4705 = vset.pattern.permute.xlu1 %v4729_v14  ;;  %vm156_vm3 = vcmask 1039360   ;;  %vm131_vm4 = vcmask 7168   ;;  %vm253_vm5 = vcmask 588800  }
   0x4   :  { %v31_v15 = vld [vmem:[%s7195_s3] sm:$0xff]  ;;  %v4954_v47 = vsub.f32 %v4768_v0, %v4929_v34  ;;  %v4961_v52 = vsub.f32 %v4773_v1, %v4936_v40  ;;  %vm105_vm6 = vcmask 138240   ;;  %vm79_vm7 = vcmask 146432  }
   0x5   :  { %vm53_vm8 = vcmask 154624  }
   0x6   :  { %226 = vrot.lane.b32.xlu0 %v4782_v2, %s4720_s25  ;;  %198 = vrot.lane.b32.xlu1 %v4768_v0, %s4721_s28  ;;  %v7203_v59 = vand.u32 4294901760, %v4954_v47 }
   0xa   :  { %200 = vrot.lane.b32.xlu0 %v4782_v2, %s4721_s28  ;;  %196 = vrot.lane.b32.xlu1 %v4773_v1, %s4721_s28 }
   0xe   :  { %172 = vrot.lane.b32.xlu0 %v4768_v0, %s4722_s29  ;;  %174 = vrot.lane.b32.xlu1 %v4782_v2, %s4722_s29 }
  0x12   :  { %170 = vrot.lane.b32.xlu0 %v4773_v1, %s4722_s29  ;;  %146 = vrot.lane.b32.xlu1 %v4768_v0, %s4723_s30 }
  0x16   :  { %148 = vrot.lane.b32.xlu0 %v4782_v2, %s4723_s30  ;;  %144 = vrot.lane.b32.xlu1 %v4773_v1, %s4723_s30 }
  0x1a   :  { %121 = vrot.lane.b32.xlu0 %v4773_v1, %s4724_s7  ;;  %123 = vrot.lane.b32.xlu1 %v4768_v0, %s4724_s7 }
  0x1e   :  { %118 = vrot.lane.b32.xlu0 %v28_v3, %s4724_s7  ;;  %95 = vrot.lane.b32.xlu1 %v4773_v1, %s4725_s10 }
  0x22   :  { %97 = vrot.lane.b32.xlu0 %v4768_v0, %s4725_s10  ;;  %92 = vrot.lane.b32.xlu1 %v28_v3, %s4725_s10 }
  0x26   :  { %69 = vrot.lane.b32.xlu0 %v4773_v1, %s4726_s11  ;;  %71 = vrot.lane.b32.xlu1 %v4768_v0, %s4726_s11 }
  0x2a   :  { %66 = vrot.lane.b32.xlu0 %v28_v3, %s4726_s11  ;;  %43 = vrot.lane.b32.xlu1 %v4773_v1, %s4728_s12  ;;  %v7202_v1 = vand.u32 4294901760, %v4961_v52 }
  0x2e   :  { %45 = vrot.lane.b32.xlu0 %v4768_v0, %s4728_s12  ;;  %35 = vrot.lane.b32.xlu1 %v28_v3, %s4728_s12  ;;  %v30_v0 = vld [vmem:[%s7196_s2] sm:$0xff] }
  0x32   :  { %228 = vrot.lane.b32.xlu0 %v4832_v5, %s4720_s25  ;;  %230 = vrot.lane.b32.xlu1 %v27_v6, %s4720_s25 }
  0x36   :  { %202 = vrot.lane.b32.xlu0 %v4832_v5, %s4721_s28  ;;  %204 = vrot.lane.b32.xlu1 %v27_v6, %s4721_s28 }
  0x3a   :  { %176 = vrot.lane.b32.xlu0 %v4832_v5, %s4722_s29  ;;  %178 = vrot.lane.b32.xlu1 %v27_v6, %s4722_s29 }
  0x3e   :  { %150 = vrot.lane.b32.xlu0 %v4832_v5, %s4723_s30  ;;  %152 = vrot.lane.b32.xlu1 %v27_v6, %s4723_s30 }
  0x42   :  { %125 = vrot.lane.b32.xlu0 %v4782_v2, %s4724_s7  ;;  %127 = vrot.lane.b32.xlu1 %v4832_v5, %s4724_s7 }
  0x46   :  { %99 = vrot.lane.b32.xlu0 %v4782_v2, %s4725_s10  ;;  %101 = vrot.lane.b32.xlu1 %v4832_v5, %s4725_s10 }
  0x4a   :  { %73 = vrot.lane.b32.xlu0 %v4782_v2, %s4726_s11  ;;  %75 = vrot.lane.b32.xlu1 %v4832_v5, %s4726_s11 }
  0x4e   :  { %47 = vrot.lane.b32.xlu0 %v4782_v2, %s4728_s12  ;;  %49 = vrot.lane.b32.xlu1 %v4832_v5, %s4728_s12 }
  0x52   :  { %232 = vrot.lane.b32.xlu0 %v28_v3, %s4720_s25  ;;  %206 = vrot.lane.b32.xlu1 %v28_v3, %s4721_s28 }
  0x56   :  { %180 = vrot.lane.b32.xlu0 %v28_v3, %s4722_s29  ;;  %154 = vrot.lane.b32.xlu1 %v28_v3, %s4723_s30 }
  0x5a   :  { %129 = vrot.lane.b32.xlu0 %v27_v6, %s4724_s7  ;;  %103 = vrot.lane.b32.xlu1 %v27_v6, %s4725_s10 }
  0x5e   :  { %77 = vrot.lane.b32.xlu0 %v27_v6, %s4726_s11  ;;  %51 = vrot.lane.b32.xlu1 %v27_v6, %s4728_s12 }
  0x62   :  { %250 = vperm.xlu0 %4704, %v31_v15   ;;  %v416_v15 = vsub.f32 %v4954_v47, %v7203_v59 }
  0x74   :  { %v225_v7 = vpop.permute.xlu0 %224  ;;  %v4873_v8 = vpop.permute.xlu1 %222 }
  0x75   :  { %v235_v9 = vsel %vm234_vm0, %v4873_v8, %v225_v7 }
  0x76   :  { %v4877_v10 = vand.u32 4294901760, %v235_v9 }
  0x78   :  { %v4880_v11 = vsub.f32 %v235_v9, %v4877_v10  ;;  %v4882_v12 = vpop.permute.xlu0 %226  ;;  %v199_v13 = vpop.permute.xlu1 %198 }
  0x79   :  { %v236_v16 = vsel %vm234_vm0, %v225_v7, %v4882_v12 }
  0x7a   :  { %v4889_v17 = vand.u32 4294901760, %v236_v16  ;;  %v7211_v18 = vand.u32 4294901760, %v4880_v11 }
  0x7c   :  { %v4893_v19 = vsub.f32 %v236_v16, %v4889_v17  ;;  %272 = vmatprep.subr.mxu0 %v4889_v17  ;;  %v4896_v20 = vpop.permute.xlu0 %200  ;;  %v4898_v21 = vpop.permute.xlu1 %196  ;;  %v374_v27 = vsub.f32 %v4880_v11, %v7211_v18  ;;  %v255_v16 = vsel %vm253_vm5, %v30_v0, 0 }
  0x7d   :  { %7308 = vst [vmem:[#allocation2_spill] sm:$0xff] %v4898_v21  ;;  %v210_v22 = vsel %vm208_vm1, %v199_v13, %v4896_v20  ;;  %v209_v23 = vsel %vm208_vm1, %v4898_v21, %v199_v13  ;;  %274 = vmatpush1.msra.mxu0 %v4877_v10 }
  0x7e   :  { %v4905_v24 = vand.u32 4294901760, %v210_v22  ;;  %v4907_v25 = vand.u32 4294901760, %v209_v23  ;;  %v7213_v26 = vand.u32 4294901760, %v4893_v19  ;;  %v375_v39 = vand.u32 4294901760, %v374_v27 }
  0x80   :  { %v4914_v28 = vsub.f32 %v210_v22, %v4905_v24  ;;  %v4917_v29 = vsub.f32 %v209_v23, %v4907_v25  ;;  %v173_v30 = vpop.permute.xlu0 %172  ;;  %276 = vmatprep.subr.mxu0 %v4905_v24  ;;  %v4920_v31 = vpop.permute.xlu1 %174  ;;  %v368_v32 = vsub.f32 %v4893_v19, %v7213_v26 }
  0x81   :  { %v184_v33 = vsel %vm182_vm2, %v173_v30, %v4920_v31  ;;  %278 = vmatpush1.msra.mxu0 %v4907_v25 }
  0x82   :  { %v4931_v35 = vand.u32 4294901760, %v184_v33  ;;  %v369_v36 = vand.u32 4294901760, %v368_v32  ;;  %v7210_v37 = vand.u32 4294901760, %v4914_v28  ;;  %v7209_v38 = vand.u32 4294901760, %v4917_v29 }
  0x83   :  { %v422_v32 = vsub.f32 %v4961_v52, %v7202_v1  ;;  %v7319_v21 = vand.u32 4294901760, %v4917_v29 }
  0x84   :  { %v4939_v41 = vsub.f32 %v184_v33, %v4931_v35  ;;  %370 = vmatprep.subr.mxu1 %v369_v36  ;;  %v4941_v42 = vpop.permute.xlu0 %170  ;;  %280 = vmatprep.subr.mxu0 %v4931_v35  ;;  %v147_v43 = vpop.permute.xlu1 %146  ;;  %v380_v44 = vsub.f32 %v4914_v28, %v7210_v37  ;;  %v386_v45 = vsub.f32 %v4917_v29, %v7209_v38 }
  0x85   :  { %7309 = vst [vmem:[#allocation3_spill] sm:$0xff] %v4941_v42  ;;  %v183_v46 = vsel %vm182_vm2, %v4941_v42, %v173_v30  ;;  %376 = vmatpush1.msra.mxu1 %v375_v39  ;;  %v7318_v42 = vand.u32 4294901760, %v4914_v28 }
  0x86   :  { %v4956_v48 = vand.u32 4294901760, %v183_v46  ;;  %v381_v49 = vand.u32 4294901760, %v380_v44  ;;  %v387_v50 = vand.u32 4294901760, %v386_v45  ;;  %v7208_v51 = vand.u32 4294901760, %v4939_v41 }
  0x88   :  { %v4964_v53 = vsub.f32 %v183_v46, %v4956_v48  ;;  %v4966_v54 = vpop.permute.xlu0 %148  ;;  %282 = vmatpush1.msra.mxu0 %v4956_v48  ;;  %382 = vmatprep.subr.mxu1 %v381_v49  ;;  %v4969_v55 = vpop.permute.xlu1 %144  ;;  %v392_v56 = vsub.f32 %v4939_v41, %v7208_v51  ;;  %v417_v46 = vand.u32 4294901760, %v416_v15  ;;  %v5030_v49 = vand.u32 4294901760, %v255_v16 }
  0x89   :  { %7310 = vst [vmem:[#allocation4_spill] sm:$0xff] %v4969_v55  ;;  %v158_v57 = vsel %vm156_vm3, %v147_v43, %v4966_v54  ;;  %v157_v58 = vsel %vm156_vm3, %v4969_v55, %v147_v43  ;;  %388 = vmatpush1.msra.mxu1 %v387_v50 }
  0x8a   :  { %v4979_v60 = vand.u32 4294901760, %v158_v57  ;;  %v4981_v61 = vand.u32 4294901760, %v157_v58  ;;  %v393_v62 = vand.u32 4294901760, %v392_v56  ;;  %v7207_v63 = vand.u32 4294901760, %v4964_v53 }
  0x8c   :  { %v4989_v3 = vsub.f32 %v158_v57, %v4979_v60  ;;  %v4992_v6 = vsub.f32 %v157_v58, %v4981_v61  ;;  %v122_v7 = vpop.permute.xlu0 %121  ;;  %284 = vmatprep.subr.mxu0 %v4979_v60  ;;  %394 = vmatprep.subr.mxu1 %v393_v62  ;;  %v4995_v9 = vpop.permute.xlu1 %123  ;;  %v398_v13 = vsub.f32 %v4964_v53, %v7207_v63  ;;  %v423_v62 = vand.u32 4294901760, %v422_v32 }
  0x8d   :  { %v132_v14 = vsel %vm131_vm4, %v122_v7, %v4995_v9  ;;  %286 = vmatpush1.msra.mxu0 %v4981_v61  ;;  %v5051_v32 = vsub.f32 %v255_v16, %v5030_v49 }
  0x8e   :  { %v5007_v22 = vand.u32 4294901760, %v132_v14  ;;  %288 = vmatprep.subr.mxu0 %v4929_v34  ;;  %v399_v23 = vand.u32 4294901760, %v398_v13  ;;  %v7206_v27 = vand.u32 4294901760, %v4989_v3  ;;  %v7204_v30 = vand.u32 4294901760, %v4992_v6 }
  0x8f   :  { %290 = vmatpush1.msra.mxu0 %v4936_v40 }
  0x90   :  { %v5017_v33 = vsub.f32 %v132_v14, %v5007_v22  ;;  %v5019_v36 = vpop.permute.xlu0 %118  ;;  %400 = vmatpush1.msra.mxu1 %v399_v23  ;;  %v96_v39 = vpop.permute.xlu1 %95  ;;  %292 = vmatprep.subr.mxu0 %v5007_v22  ;;  %v404_v43 = vsub.f32 %v4989_v3, %v7206_v27  ;;  %v410_v44 = vsub.f32 %v4992_v6, %v7204_v30 }
  0x91   :  { %7311 = vst [vmem:[#allocation5_spill] sm:$0xff] %v5019_v36  ;;  %v143_v45 = vsel %vm131_vm4, %v5019_v36, %v122_v7 }
  0x92   :  { %v5032_v50 = vand.u32 4294901760, %v143_v45  ;;  %v405_v56 = vand.u32 4294901760, %v404_v43  ;;  %v411_v57 = vand.u32 4294901760, %v410_v44  ;;  %v7201_v58 = vand.u32 4294901760, %v5017_v33 }
  0x94   :  { %v5036_v0 = vsub.f32 %v143_v45, %v5032_v50  ;;  %v5038_v13 = vpop.permute.xlu0 %97  ;;  %406 = vmatprep.subr.mxu1 %v405_v56  ;;  %v5040_v14 = vpop.permute.xlu1 %92  ;;  %294 = vmatpush1.msra.mxu0 %v5032_v50  ;;  %v428_v7 = vsub.f32 %v5017_v33, %v7201_v58 }
  0x95   :  { %7312 = vst [vmem:[#allocation6_spill] sm:$0xff] %v5040_v14  ;;  %v106_v15 = vsel %vm105_vm6, %v96_v39, %v5038_v13  ;;  %v117_v23 = vsel %vm105_vm6, %v5040_v14, %v96_v39  ;;  %412 = vmatpush1.msra.mxu1 %v411_v57 }
  0x96   :  { %v5053_v43 = vand.u32 4294901760, %v106_v15  ;;  %v5055_v44 = vand.u32 4294901760, %v117_v23  ;;  %418 = vmatprep.subr.mxu1 %v417_v46  ;;  %v429_v45 = vand.u32 4294901760, %v428_v7  ;;  %v7205_v56 = vand.u32 4294901760, %v5036_v0 }
  0x97   :  { %424 = vmatpush1.msra.mxu1 %v423_v62  ;;  %v5074_v62 = vand.u32 4294901760, %v5051_v32 }
  0x98   :  { %v5059_v58 = vsub.f32 %v106_v15, %v5053_v43  ;;  %v5062_v1 = vsub.f32 %v117_v23, %v5055_v44  ;;  %v70_v39 = vpop.permute.xlu0 %69  ;;  %v5064_v57 = vpop.permute.xlu1 %71  ;;  %296 = vmatprep.subr.mxu0 %v5053_v43  ;;  %430 = vmatprep.subr.mxu1 %v429_v45  ;;  %v434_v16 = vsub.f32 %v5036_v0, %v7205_v56 }
  0x99   :  { %v80_v46 = vsel %vm79_vm7, %v70_v39, %v5064_v57  ;;  %298 = vmatpush1.msra.mxu0 %v5055_v44 }
  0x9a   :  { %v5076_v7 = vand.u32 4294901760, %v80_v46  ;;  %v435_v15 = vand.u32 4294901760, %v434_v16  ;;  %v7212_v23 = vand.u32 4294901760, %v5059_v58  ;;  %v7214_v59 = vand.u32 4294901760, %v5062_v1 }
  0x9c   :  { %v5081_v45 = vsub.f32 %v80_v46, %v5076_v7  ;;  %v5083_v30 = vpop.permute.xlu0 %66  ;;  %v44_v56 = vpop.permute.xlu1 %43  ;;  %300 = vmatprep.subr.mxu0 %v5076_v7  ;;  %436 = vmatpush1.msra.mxu1 %v435_v15  ;;  %v440_v27 = vsub.f32 %v5059_v58, %v7212_v23  ;;  %v446_v16 = vsub.f32 %v5062_v1, %v7214_v59 }
  0x9d   :  { %7313 = vst [vmem:[#allocation7_spill] sm:$0xff] %v5083_v30  ;;  %v91_v63 = vsel %vm79_vm7, %v5083_v30, %v70_v39  ;;  %v343_v46 = vsub.f32 %v5051_v32, %v5074_v62 }
  0x9e   :  { %v5096_v51 = vand.u32 4294901760, %v91_v63  ;;  %v441_v38 = vand.u32 4294901760, %v440_v27  ;;  %v447_v37 = vand.u32 4294901760, %v446_v16  ;;  %v7219_v15 = vand.u32 4294901760, %v5081_v45 }
  0xa0   :  { %v5100_v18 = vsub.f32 %v91_v63, %v5096_v51  ;;  %v5102_v23 = vpop.permute.xlu0 %45  ;;  %v5104_v26 = vpop.permute.xlu1 %35  ;;  %302 = vmatpush1.msra.mxu0 %v5096_v51  ;;  %442 = vmatprep.subr.mxu1 %v441_v38  ;;  %v452_v39 = vsub.f32 %v5081_v45, %v7219_v15  ;;  %v5114_v63 = vand.u32 4294901760, %v343_v46 }
  0xa1   :  { %7314 = vst [vmem:[#allocation8_spill] sm:$0xff] %v5104_v26  ;;  %v54_v27 = vsel %vm53_vm8, %v44_v56, %v5102_v23  ;;  %v65_v16 = vsel %vm53_vm8, %v5104_v26, %v44_v56  ;;  %448 = vmatpush1.msra.mxu1 %v447_v37 }
  0xa2   :  { %v5116_v59 = vand.u32 4294901760, %v54_v27  ;;  %v5118_v4 = vand.u32 4294901760, %v65_v16  ;;  %v453_v30 = vand.u32 4294901760, %v452_v39  ;;  %v7220_v38 = vand.u32 4294901760, %v5100_v18 }
  0xa4   :  { %v5122_v14 = vsub.f32 %v54_v27, %v5116_v59  ;;  %v5125_v15 = vsub.f32 %v65_v16, %v5118_v4  ;;  %304 = vmatprep.subr.mxu0 %v5116_v59  ;;  %454 = vmatprep.subr.mxu1 %v453_v30  ;;  %v458_v37 = vsub.f32 %v5100_v18, %v7220_v38  ;;  %v5132_v56 = vpop.permute.xlu0 %228  ;;  %v5137_v27 = vpop.permute.xlu1 %230  ;;  %v7315_v16 = vmov 0.0  }
  0xa5   :  { %306 = vmatpush1.msra.mxu0 %v5118_v4 }
  0xa6   :  { %529 = vmatprep.subr.mxu0 %v4893_v19  ;;  %345 = vmatmul.mubr.f32.vlgmr.msra.gmra.mxu0 %v5114_v63  ;;  %v459_v46 = vand.u32 4294901760, %v458_v37  ;;  %v7225_v39 = vand.u32 4294901760, %v5122_v14  ;;  %v7224_v30 = vand.u32 4294901760, %v5125_v15 }
  0xa7   :  { %532 = vmatpush1.msra.mxu0 %v4880_v11  ;;  %613 = vmatprep.mubr.f32.mxu0 %v7315_v16 }
  0xa8   :  { %460 = vmatpush1.msra.mxu1 %v459_v46  ;;  %535 = vmatprep.subr.mxu0 %v4914_v28  ;;  %v464_v38 = vsub.f32 %v5122_v14, %v7225_v39  ;;  %v470_v37 = vsub.f32 %v5125_v15, %v7224_v30  ;;  %v5152_v55 = vpop.permute.xlu0 %202  ;;  %v5155_v46 = vpop.permute.xlu1 %204  ;;  %v7316_v30 = vand.u32 4294901760, %v4893_v19  ;;  %v7317_v39 = vand.u32 4294901760, %v4880_v11 }
  0xa9   :  { %538 = vmatpush1.msra.mxu0 %v4917_v29  ;;  %v237_v19 = vsel %vm234_vm0, %v4882_v12, %v5132_v56  ;;  %v7321_v28 = vand.u32 4294901760, %v4964_v53  ;;  %v238_v29 = vsel %vm234_vm0, %v5132_v56, %v5137_v27  ;;  %v5229_v56 = vand.u32 4294901760, %v4832_v5 }
  0xaa   :  { %541 = vmatprep.subr.mxu0 %v4939_v41  ;;  %v465_v26 = vand.u32 4294901760, %v464_v38  ;;  %v471_v36 = vand.u32 4294901760, %v470_v37  ;;  %v5212_v12 = vand.u32 4294901760, %v237_v19 }
  0xab   :  { %544 = vmatpush1.msra.mxu0 %v4964_v53  ;;  %v212_v53 = vsel %vm208_vm1, %v5152_v55, %v5155_v46 }
  0xac   :  { %466 = vmatprep.subr.mxu1 %v465_v26  ;;  %547 = vmatprep.subr.mxu0 %v4989_v3  ;;  %v177_v26 = vpop.permute.xlu0 %176 }
  0xad   :  { %472 = vmatpush1.msra.mxu1 %v471_v36  ;;  %550 = vmatpush1.msra.mxu0 %v4992_v6  ;;  %v5168_v36 = vpop.permute.xlu1 %178 }
  0xae   :  { %507 = vmatmul.mubr.f32.vlgmr.msra.gmra.mxu1 %v5030_v49  ;;  %553 = vmatprep.subr.mxu0 %v4954_v47 }
  0xaf   :  { %637 = vmatprep.subr.mxu1 %v4889_v17  ;;  %556 = vmatpush1.msra.mxu0 %v4961_v52 }
  0xb0   :  { %639 = vmatpush1.msra.mxu1 %v4877_v10  ;;  %559 = vmatprep.subr.mxu0 %v5017_v33  ;;  %v151_v38 = vpop.permute.xlu0 %150 }
  0xb1   :  { %641 = vmatprep.subr.mxu1 %v4905_v24  ;;  %562 = vmatpush1.msra.mxu0 %v5036_v0  ;;  %v5182_v37 = vpop.permute.xlu1 %152 }
  0xb2   :  { %643 = vmatpush1.msra.mxu1 %v4907_v25  ;;  %565 = vmatprep.subr.mxu0 %v5059_v58 }
  0xb3   :  { %645 = vmatprep.subr.mxu1 %v4931_v35  ;;  %568 = vmatpush1.msra.mxu0 %v5062_v1 }
  0xb4   :  { %647 = vmatpush1.msra.mxu1 %v4956_v48  ;;  %571 = vmatprep.subr.mxu0 %v5081_v45  ;;  %v5202_v11 = vpop.permute.xlu0 %125 }
  0xb5   :  { %649 = vmatprep.subr.mxu1 %v4979_v60  ;;  %574 = vmatpush1.msra.mxu0 %v5100_v18 }
  0xb6   :  { %651 = vmatpush1.msra.mxu1 %v4981_v61  ;;  %577 = vmatprep.subr.mxu0 %v5122_v14 }
  0xb7   :  { %653 = vmatprep.subr.mxu1 %v4929_v34  ;;  %580 = vmatpush1.msra.mxu0 %v5125_v15 }
  0xb8   :  { %655 = vmatpush1.msra.mxu1 %v4936_v40  ;;  %616 = vmatmul.mubr.f32.vlgmr.msra.gmra.mxu0 %v5051_v32 }
  0xb9   :  { %657 = vmatprep.subr.mxu1 %v5007_v22  ;;  %731 = vmatprep.subr.mxu0 %v7316_v30  ;;  %v7320_v30 = vand.u32 4294901760, %v4939_v41  ;;  %v7323_v41 = vand.u32 4294901760, %v4992_v6  ;;  %v5237_v6 = vsub.f32 %v237_v19, %v5212_v12 }
  0xba   :  { %659 = vmatpush1.msra.mxu1 %v5032_v50  ;;  %735 = vmatpush1.msra.mxu0 %v7317_v39  ;;  %v5231_v39 = vand.u32 4294901760, %v238_v29 }
  0xbb   :  { %661 = vmatprep.subr.mxu1 %v5053_v43  ;;  %739 = vmatprep.subr.mxu0 %v7318_v42  ;;  %v5207_v42 = vpop.permute.xlu1 %127 }
  0xbc   :  { %663 = vmatpush1.msra.mxu1 %v5055_v44  ;;  %743 = vmatpush1.msra.mxu0 %v7319_v21  ;;  %v7322_v21 = vand.u32 4294901760, %v4989_v3  ;;  %v7324_v3 = vand.u32 4294901760, %v4954_v47  ;;  %v211_v47 = vsel %vm208_vm1, %v4896_v20, %v5152_v55  ;;  %v5255_v20 = vand.u32 4294901760, %v4782_v2 }
  0xbd   :  { %665 = vmatprep.subr.mxu1 %v5076_v7  ;;  %747 = vmatprep.subr.mxu0 %v7320_v30  ;;  %v7325_v30 = vand.u32 4294901760, %v4961_v52  ;;  %v186_v52 = vsel %vm182_vm2, %v177_v26, %v5168_v36  ;;  %v185_v55 = vsel %vm182_vm2, %v4920_v31, %v177_v26  ;;  %v5269_v19 = vand.u32 4294901760, %v211_v47 }
  0xbe   :  { %667 = vmatpush1.msra.mxu1 %v5096_v51  ;;  %751 = vmatpush1.msra.mxu0 %v7321_v28  ;;  %v100_v28 = vpop.permute.xlu0 %99  ;;  %v7229_v31 = vand.u32 4294901760, %v5237_v6 }
  0xbf   :  { %669 = vmatprep.subr.mxu1 %v5116_v59  ;;  %755 = vmatprep.subr.mxu0 %v7322_v21  ;;  %v5245_v21 = vand.u32 4294901760, %v212_v53 }
  0xc0   :  { %671 = vmatpush1.msra.mxu1 %v5118_v4  ;;  %704 = vmatprep.mubr.f32.mxu1 %v7315_v16 }
  0xc1   :  { %759 = vmatpush1.msra.mxu0 %v7323_v41  ;;  %708 = vmatmul.mubr.f32.vlgmr.msra.gmra.mxu1 %v5074_v62  ;;  %v5249_v41 = vpop.permute.xlu1 %101  ;;  %v5285_v26 = vsub.f32 %v212_v53, %v5245_v21  ;;  %v5303_v53 = vsub.f32 %v211_v47, %v5269_v19 }
  0xc2   :  { %763 = vmatprep.subr.mxu0 %v7324_v3  ;;  %855 = vmatprep.subr.mxu1 %v4889_v17  ;;  %v7326_v17 = vand.u32 4294901760, %v5017_v33  ;;  %v5264_v33 = vsub.f32 %v4832_v5, %v5229_v56  ;;  %v7329_v3 = vand.u32 4294901760, %v5062_v1  ;;  %v159_v5 = vsel %vm156_vm3, %v4966_v54, %v151_v38 }
  0xc3   :  { %767 = vmatpush1.msra.mxu0 %v7325_v30  ;;  %857 = vmatpush1.msra.mxu1 %v4877_v10  ;;  %v7327_v10 = vand.u32 4294901760, %v5036_v0  ;;  %v5267_v0 = vsub.f32 %v238_v29, %v5231_v39  ;;  %v5287_v29 = vand.u32 4294901760, %v185_v55  ;;  %v7331_v1 = vand.u32 4294901760, %v5100_v18 }
  0xc4   :  { %771 = vmatprep.subr.mxu0 %v7326_v17  ;;  %859 = vmatprep.subr.mxu1 %v4905_v24  ;;  %v7328_v24 = vand.u32 4294901760, %v5059_v58  ;;  %v7330_v58 = vand.u32 4294901760, %v5081_v45  ;;  %v74_v45 = vpop.permute.xlu0 %73  ;;  %v5305_v18 = vand.u32 4294901760, %v159_v5  ;;  %v7334_v30 = vand.u32 4294901760, %v5125_v15 }
  0xc5   :  { %775 = vmatpush1.msra.mxu0 %v7327_v10  ;;  %861 = vmatpush1.msra.mxu1 %v4907_v25  ;;  %v160_v25 = vsel %vm156_vm3, %v151_v38, %v5182_v37  ;;  %v7332_v38 = vand.u32 4294901760, %v5122_v14  ;;  %v5319_v14 = vsub.f32 %v5237_v6, %v7229_v31  ;;  %v5327_v17 = vsub.f32 %v185_v55, %v5287_v29 }
  0xc6   :  { %779 = vmatprep.subr.mxu0 %v7328_v24  ;;  %863 = vmatprep.subr.mxu1 %v4931_v35  ;;  %v5277_v35 = vand.u32 4294901760, %v186_v52  ;;  %v5296_v54 = vand.u32 4294901760, %v160_v25  ;;  %v133_v15 = vsel %vm131_vm4, %v4995_v9, %v5202_v11  ;;  %v7230_v10 = vand.u32 4294901760, %v5285_v26 }
  0xc7   :  { %783 = vmatpush1.msra.mxu0 %v7329_v3  ;;  %865 = vmatpush1.msra.mxu1 %v4956_v48  ;;  %v5294_v48 = vsub.f32 %v4782_v2, %v5255_v20  ;;  %v134_v2 = vsel %vm131_vm4, %v5202_v11, %v5207_v42  ;;  %v108_v55 = vsel %vm105_vm6, %v100_v28, %v5249_v41  ;;  %v5361_v3 = vand.u32 4294901760, %v133_v15 }
  0xc8   :  { %787 = vmatprep.subr.mxu0 %v7330_v58  ;;  %867 = vmatprep.subr.mxu1 %v4979_v60  ;;  %v7228_v60 = vand.u32 4294901760, %v5264_v33  ;;  %v5322_v47 = vsub.f32 %v186_v52, %v5277_v35  ;;  %v5337_v24 = vsub.f32 %v160_v25, %v5296_v54  ;;  %v5352_v11 = vsub.f32 %v159_v5, %v5305_v18 }
  0xc9   :  { %791 = vmatpush1.msra.mxu0 %v7331_v1  ;;  %869 = vmatpush1.msra.mxu1 %v4981_v61  ;;  %v5310_v61 = vpop.permute.xlu1 %75  ;;  %v107_v25 = vsel %vm105_vm6, %v5038_v13, %v100_v28  ;;  %v48_v1 = vpop.permute.xlu0 %47  ;;  %v1048_v13 = vand.u32 4294901760, %v5319_v14  ;;  %v7233_v28 = vand.u32 4294901760, %v5327_v17  ;;  %v5370_v5 = vand.u32 4294901760, %v108_v55 }
  0xca   :  { %795 = vmatprep.subr.mxu0 %v7332_v38  ;;  %871 = vmatprep.subr.mxu1 %v4929_v34  ;;  %7333 = vst [vmem:[#allocation9_spill] sm:$0xff] %v5310_v61  ;;  %v7231_v34 = vand.u32 4294901760, %v5267_v0  ;;  %v5348_v9 = vsub.f32 %v5264_v33, %v7228_v60  ;;  %v82_v58 = vsel %vm79_vm7, %v74_v45, %v5310_v61  ;;  %v5384_v60 = vand.u32 4294901760, %v107_v25 }
  0xcb   :  { %799 = vmatpush1.msra.mxu0 %v7334_v30  ;;  %832 = vmatprep.mubr.f32.mxu0 %v7315_v16  ;;  %v81_v38 = vsel %vm79_vm7, %v5064_v57, %v74_v45  ;;  %v7237_v57 = vand.u32 4294901760, %v5337_v24  ;;  %v7238_v45 = vand.u32 4294901760, %v5352_v11 }
  0xcc   :  { %873 = vmatpush1.msra.mxu1 %v4936_v40  ;;  %834 = vmatmul.mubr.f32.vlgmr.msra.gmra.mxu0 %v5030_v49  ;;  %v5339_v40 = vand.u32 4294901760, %v134_v2 }
  0xcd   :  { %875 = vmatprep.subr.mxu1 %v5007_v22  ;;  %945 = vmatprep.subr.mxu0 %v5231_v39  ;;  %v7232_v22 = vand.u32 4294901760, %v5303_v53  ;;  %v5374_v30 = vpop.permute.xlu1 %49 }
  0xce   :  { %877 = vmatpush1.msra.mxu1 %v5032_v50  ;;  %947 = vmatpush1.msra.mxu0 %v5212_v12  ;;  %v1041_v50 = vsub.f32 %v5267_v0, %v7231_v34  ;;  %7335 = vst [vmem:[#allocation10_spill] sm:$0xff] %v5374_v30  ;;  %v5382_v14 = vsub.f32 %v134_v2, %v5339_v40  ;;  %v5404_v34 = vand.u32 4294901760, %v81_v38 }
  0xcf   :  { %879 = vmatprep.subr.mxu1 %v5053_v43  ;;  %949 = vmatprep.subr.mxu0 %v5245_v21  ;;  %v7234_v43 = vand.u32 4294901760, %v5322_v47  ;;  %v56_v31 = vsel %vm53_vm8, %v48_v1, %v5374_v30  ;;  %v55_v2 = vsel %vm53_vm8, %v5102_v23, %v48_v1  ;;  %v5415_v23 = vsub.f32 %v108_v55, %v5370_v5 }
  0xd0   :  { %881 = vmatpush1.msra.mxu1 %v5055_v44  ;;  %951 = vmatpush1.msra.mxu0 %v5269_v19  ;;  %v1053_v44 = vsub.f32 %v5285_v26, %v7230_v10  ;;  %v5395_v10 = vand.u32 4294901760, %v82_v58  ;;  %v5424_v1 = vand.u32 4294901760, %v55_v2  ;;  %v1077_v55 = vsub.f32 %v5337_v24, %v7237_v57 }
  0xd1   :  { %883 = vmatprep.subr.mxu1 %v5076_v7  ;;  %953 = vmatprep.subr.mxu0 %v5277_v35  ;;  %v1059_v7 = vsub.f32 %v5303_v53, %v7232_v22  ;;  %v1042_v22 = vand.u32 4294901760, %v1041_v50  ;;  %v1065_v52 = vsub.f32 %v5322_v47, %v7234_v43  ;;  %v5422_v50 = vsub.f32 %v107_v25, %v5384_v60 }
  0xd2   :  { %885 = vmatpush1.msra.mxu1 %v5096_v51  ;;  %955 = vmatpush1.msra.mxu0 %v5287_v29  ;;  %v5402_v51 = vsub.f32 %v133_v15, %v5361_v3  ;;  %v5417_v15 = vand.u32 4294901760, %v56_v31  ;;  %v1083_v43 = vsub.f32 %v5352_v11, %v7238_v45  ;;  %v7336_v30 = vand.u32 4294901760, %v5294_v48 }
  0xd3   :  { %887 = vmatprep.subr.mxu1 %v5116_v59  ;;  %957 = vmatprep.subr.mxu0 %v5296_v54  ;;  %v1071_v59 = vsub.f32 %v5327_v17, %v7233_v28  ;;  %v1100_v28 = vand.u32 4294901760, %v5382_v14  ;;  %v1060_v25 = vand.u32 4294901760, %v1059_v7  ;;  %v5443_v57 = vsub.f32 %v81_v38, %v5404_v34 }
  0xd4   :  { %889 = vmatpush1.msra.mxu1 %v5118_v4  ;;  %922 = vmatprep.mubr.f32.mxu1 %v7315_v16  ;;  %v1054_v4 = vand.u32 4294901760, %v1053_v44  ;;  %v5435_v44 = vsub.f32 %v82_v58, %v5395_v10  ;;  %v1066_v45 = vand.u32 4294901760, %v1065_v52  ;;  %v5447_v58 = vsub.f32 %v56_v31, %v5417_v15 }
  0xd5   :  { %959 = vmatpush1.msra.mxu0 %v5305_v18  ;;  %924 = vmatmul.mubr.f32.vlgmr.msra.gmra.mxu1 %v5030_v49  ;;  %v1090_v7 = vand.u32 4294901760, %v5348_v9  ;;  %v5454_v38 = vsub.f32 %v55_v2, %v5424_v1  ;;  %v1078_v52 = vand.u32 4294901760, %v1077_v55  ;;  %v1101_v31 = vsub.f32 %v5382_v14, %v1100_v28 }
  0xd6   :  { %961 = vmatprep.subr.mxu0 %v5229_v56  ;;  %1043 = vmatprep.subr.mxu1 %v1042_v22  ;;  %v1095_v22 = vsub.f32 %v5294_v48, %v7336_v30  ;;  %v1112_v30 = vand.u32 4294901760, %v5415_v23  ;;  %v7239_v61 = vand.u32 4294901760, %v5443_v57  ;;  %v7338_v55 = vand.u32 4294901760, %v5422_v50 }
  0xd7   :  { %963 = vmatpush1.msra.mxu0 %v5255_v20  ;;  %1049 = vmatpush1.msra.mxu1 %v1048_v13  ;;  %v1072_v13 = vand.u32 4294901760, %v1071_v59  ;;  %v1084_v59 = vand.u32 4294901760, %v1083_v43  ;;  %v1136_v43 = vand.u32 4294901760, %v5447_v58 }
  0xd8   :  { %965 = vmatprep.subr.mxu0 %v5339_v40  ;;  %1055 = vmatprep.subr.mxu1 %v1054_v4  ;;  %v1096_v9 = vand.u32 4294901760, %v1095_v22  ;;  %v1124_v4 = vand.u32 4294901760, %v5435_v44  ;;  %v1119_v22 = vsub.f32 %v5422_v50, %v7338_v55 }
  0xd9   :  { %967 = vmatpush1.msra.mxu0 %v5361_v3  ;;  %1061 = vmatpush1.msra.mxu1 %v1060_v25  ;;  %v7337_v25 = vand.u32 4294901760, %v5402_v51 }
  0xda   :  { %969 = vmatprep.subr.mxu0 %v5370_v5  ;;  %1067 = vmatprep.subr.mxu1 %v1066_v45  ;;  %v1113_v45 = vsub.f32 %v5415_v23, %v1112_v30 }
  0xdb   :  { %971 = vmatpush1.msra.mxu0 %v5384_v60  ;;  %1073 = vmatpush1.msra.mxu1 %v1072_v13  ;;  %v1107_v2 = vsub.f32 %v5402_v51, %v7337_v25  ;;  %v7240_v13 = vand.u32 4294901760, %v5454_v38  ;;  %v1102_v25 = vand.u32 4294901760, %v1101_v31  ;;  %v1137_v31 = vsub.f32 %v5447_v58, %v1136_v43 }
  0xdc   :  { %973 = vmatprep.subr.mxu0 %v5395_v10  ;;  %1079 = vmatprep.subr.mxu1 %v1078_v52  ;;  %v1125_v52 = vsub.f32 %v5435_v44, %v1124_v4 }
  0xdd   :  { %975 = vmatpush1.msra.mxu0 %v5404_v34  ;;  %1085 = vmatpush1.msra.mxu1 %v1084_v59  ;;  %v1131_v59 = vsub.f32 %v5443_v57, %v7239_v61  ;;  %v1108_v55 = vand.u32 4294901760, %v1107_v2  ;;  %v1120_v61 = vand.u32 4294901760, %v1119_v22  ;;  %v7340_v22 = vand.u32 4294901760, %v5237_v6 }
  0xde   :  { %977 = vmatprep.subr.mxu0 %v5417_v15  ;;  %1091 = vmatprep.subr.mxu1 %v1090_v7  ;;  %v1114_v7 = vand.u32 4294901760, %v1113_v45  ;;  %v1126_v2 = vand.u32 4294901760, %v1125_v52  ;;  %v7341_v52 = vand.u32 4294901760, %v5285_v26 }
  0xdf   :  { %979 = vmatpush1.msra.mxu0 %v5424_v1  ;;  %1097 = vmatpush1.msra.mxu1 %v1096_v9  ;;  %v1143_v9 = vsub.f32 %v5454_v38, %v7240_v13  ;;  %v1132_v45 = vand.u32 4294901760, %v1131_v59  ;;  %v7342_v59 = vand.u32 4294901760, %v5303_v53 }
  0xe0   :  { %1012 = vmatprep.mubr.f32.mxu0 %v7315_v16  ;;  %1103 = vmatprep.subr.mxu1 %v1102_v25  ;;  %v1138_v25 = vand.u32 4294901760, %v1137_v31  ;;  %v7346_v31 = vand.u32 4294901760, %v5352_v11 }
  0xe1   :  { %1202 = vmatprep.subr.mxu0 %v5267_v0  ;;  %1018 = vmatmul.mubr.f32.vlgmr.msra.gmra.mxu0 %v5114_v63  ;;  %v1144_v13 = vand.u32 4294901760, %v1143_v9  ;;  %v7347_v9 = vand.u32 4294901760, %v5264_v33 }
  0xe2   :  { %1109 = vmatpush1.msra.mxu1 %v1108_v55  ;;  %1205 = vmatpush1.msra.mxu0 %v5237_v6  ;;  %v207_v55 = vpop.permute.xlu1 %206  ;;  %v7344_v6 = vand.u32 4294901760, %v5327_v17 }
  0xe3   :  { %1115 = vmatprep.subr.mxu1 %v1114_v7  ;;  %1208 = vmatprep.subr.mxu0 %v5285_v26  ;;  %v7345_v26 = vand.u32 4294901760, %v5337_v24 }
  0xe4   :  { %1121 = vmatpush1.msra.mxu1 %v1120_v61  ;;  %1211 = vmatpush1.msra.mxu0 %v5303_v53  ;;  %v7339_v61 = vand.u32 4294901760, %v5267_v0  ;;  %v7343_v0 = vand.u32 4294901760, %v5322_v47 }
  0xe5   :  { %1127 = vmatprep.subr.mxu1 %v1126_v2  ;;  %1214 = vmatprep.subr.mxu0 %v5322_v47 }
  0xe6   :  { %1133 = vmatpush1.msra.mxu1 %v1132_v45  ;;  %1217 = vmatpush1.msra.mxu0 %v5327_v17  ;;  %v4710_v17 = vld [vmem:[%s7194_s0 + $0x28] sm:$0xff]  ;;  %v155_v45 = vpop.permute.xlu1 %154 }
  0xe7   :  { %1139 = vmatprep.subr.mxu1 %v1138_v25  ;;  %1220 = vmatprep.subr.mxu0 %v5337_v24  ;;  %v5557_v24 = vand.u32 4294901760, %v4710_v17  ;;  %v7349_v25 = vand.u32 4294901760, %v5294_v48 }
  0xe8   :  { %1145 = vmatpush1.msra.mxu1 %v1144_v13  ;;  %1178 = vmatprep.mubr.f32.mxu1 %v7315_v16  ;;  %v233_v13 = vpop.permute.xlu0 %232 }
  0xe9   :  { %1223 = vmatpush1.msra.mxu0 %v5352_v11  ;;  %1180 = vmatmul.mubr.f32.vlgmr.msra.gmra.mxu1 %v5030_v49  ;;  %v239_v53 = vsel %vm234_vm0, %v5137_v27, %v233_v13  ;;  %v247_v47 = vsel %vm234_vm0, %v233_v13, %v4873_v8  ;;  %v213_v27 = vsel %vm208_vm1, %v5155_v46, %v207_v55  ;;  %v7348_v11 = vld [vmem:[#allocation2_spill] sm:$0xff] }
  0xea   :  { %1226 = vmatprep.subr.mxu0 %v5264_v33  ;;  %1310 = vmatprep.subr.mxu1 %v5231_v39  ;;  %v5564_v8 = vand.u32 4294901760, %v239_v53  ;;  %v221_v2 = vsel %vm208_vm1, %v207_v55, %v7348_v11  ;;  %v7350_v33 = vld [vmem:[#allocation3_spill] sm:$0xff] }
  0xeb   :  { %1229 = vmatpush1.msra.mxu0 %v5294_v48  ;;  %1312 = vmatpush1.msra.mxu1 %v5212_v12  ;;  %v7351_v48 = vand.u32 4294901760, %v5402_v51  ;;  %v5588_v13 = vand.u32 4294901760, %v221_v2 }
  0xec   :  { %1232 = vmatprep.subr.mxu0 %v5382_v14  ;;  %1314 = vmatprep.subr.mxu1 %v5245_v21  ;;  %v181_v7 = vpop.permute.xlu0 %180 }
  0xed   :  { %1235 = vmatpush1.msra.mxu0 %v5402_v51  ;;  %1316 = vmatpush1.msra.mxu1 %v5269_v19  ;;  %v187_v46 = vsel %vm182_vm2, %v5168_v36, %v181_v7  ;;  %v7352_v36 = vld [vmem:[#allocation4_spill] sm:$0xff] }
  0xee   :  { %1238 = vmatprep.subr.mxu0 %v5415_v23  ;;  %1318 = vmatprep.subr.mxu1 %v5277_v35  ;;  %v5603_v51 = vand.u32 4294901760, %v187_v46 }
  0xef   :  { %1241 = vmatpush1.msra.mxu0 %v5422_v50  ;;  %1320 = vmatpush1.msra.mxu1 %v5287_v29 }
  0xf0   :  { %1244 = vmatprep.subr.mxu0 %v5435_v44  ;;  %1322 = vmatprep.subr.mxu1 %v5296_v54 }
  0xf1   :  { %1247 = vmatpush1.msra.mxu0 %v5443_v57  ;;  %1324 = vmatpush1.msra.mxu1 %v5305_v18 }
  0xf2   :  { %1250 = vmatprep.subr.mxu0 %v5447_v58  ;;  %1326 = vmatprep.subr.mxu1 %v5229_v56 }
  0xf3   :  { %1253 = vmatpush1.msra.mxu0 %v5454_v38  ;;  %1286 = vmatprep.mubr.f32.mxu0 %v7315_v16 }
  0xf4   :  { %1328 = vmatpush1.msra.mxu1 %v5255_v20  ;;  %1289 = vmatmul.mubr.f32.vlgmr.msra.gmra.mxu0 %v5051_v32 }
  0xf5   :  { %1330 = vmatprep.subr.mxu1 %v5339_v40  ;;  %1404 = vmatprep.subr.mxu0 %v7339_v61  ;;  %v5571_v61 = vand.u32 4294901760, %v247_v47 }
  0xf6   :  { %1332 = vmatpush1.msra.mxu1 %v5361_v3  ;;  %1408 = vmatpush1.msra.mxu0 %v7340_v22  ;;  %v195_v22 = vsel %vm182_vm2, %v181_v7, %v7350_v33 }
  0xf7   :  { %1334 = vmatprep.subr.mxu1 %v5370_v5  ;;  %1412 = vmatprep.subr.mxu0 %v7341_v52  ;;  %v130_v52 = vpop.permute.xlu0 %129  ;;  %v5609_v23 = vsub.f32 %v247_v47, %v5571_v61 }
  0xf8   :  { %1336 = vmatpush1.msra.mxu1 %v5384_v60  ;;  %1416 = vmatpush1.msra.mxu0 %v7342_v59  ;;  %v7353_v59 = vand.u32 4294901760, %v5422_v50 }
  0xf9   :  { %1338 = vmatprep.subr.mxu1 %v5395_v10  ;;  %1420 = vmatprep.subr.mxu0 %v7343_v0  ;;  %v104_v0 = vpop.permute.xlu1 %103  ;;  %v1713_v58 = vand.u32 4294901760, %v5609_v23 }
  0xfa   :  { %1340 = vmatpush1.msra.mxu1 %v5404_v34  ;;  %1424 = vmatpush1.msra.mxu0 %v7344_v6 }
  0xfb   :  { %1342 = vmatprep.subr.mxu1 %v5417_v15  ;;  %1428 = vmatprep.subr.mxu0 %v7345_v26  ;;  %v78_v7 = vpop.permute.xlu0 %77  ;;  %v1714_v33 = vsub.f32 %v5609_v23, %v1713_v58 }
  0xfc   :  { %1344 = vmatpush1.msra.mxu1 %v5424_v1  ;;  %1377 = vmatprep.mubr.f32.mxu1 %v7315_v16 }
  0xfd   :  { %1432 = vmatpush1.msra.mxu0 %v7346_v31  ;;  %1381 = vmatmul.mubr.f32.vlgmr.msra.gmra.mxu1 %v5074_v62 }
  0xfe   :  { %1436 = vmatprep.subr.mxu0 %v7347_v9  ;;  %1528 = vmatprep.subr.mxu1 %v5231_v39  ;;  %v5578_v39 = vand.u32 4294901760, %v213_v27 }
  0xff   :  { %1440 = vmatpush1.msra.mxu0 %v7349_v25  ;;  %1530 = vmatpush1.msra.mxu1 %v5212_v12  ;;  %v5586_v12 = vsub.f32 %v4710_v17, %v5557_v24  ;;  %v109_v17 = vsel %vm105_vm6, %v5249_v41, %v104_v0  ;;  %v7358_v25 = vld [vmem:[#allocation7_spill] sm:$0xff] }
 0x100   :  { %1444 = vmatprep.subr.mxu0 %v1100_v28  ;;  %1532 = vmatprep.subr.mxu1 %v5245_v21  ;;  %v169_v28 = vsel %vm156_vm3, %v155_v45, %v7352_v36  ;;  %v4711_v21 = vld [vmem:[%s7194_s0 + $0x20] sm:$0xff]  ;;  %v5619_v55 = vsub.f32 %v213_v27, %v5578_v39  ;;  %v5700_v36 = vand.u32 4294901760, %v109_v17 }
 0x101   :  { %1448 = vmatpush1.msra.mxu0 %v7351_v48  ;;  %1534 = vmatpush1.msra.mxu1 %v5269_v19  ;;  %v5598_v14 = vand.u32 4294901760, %v4711_v21  ;;  %v5601_v19 = vsub.f32 %v239_v53, %v5564_v8  ;;  %v5621_v50 = vand.u32 4294901760, %v169_v28  ;;  %v7241_v6 = vand.u32 4294901760, %v5586_v12  ;;  %v7357_v27 = vld [vmem:[#allocation6_spill] sm:$0xff] }
 0x102   :  { %1452 = vmatprep.subr.mxu0 %v1112_v30  ;;  %1536 = vmatprep.subr.mxu1 %v5277_v35  ;;  %v5611_v35 = vand.u32 4294901760, %v195_v22  ;;  %v161_v30 = vsel %vm156_vm3, %v5182_v37, %v155_v45  ;;  %v5628_v37 = vsub.f32 %v221_v2, %v5588_v13  ;;  %v7356_v53 = vand.u32 4294901760, %v5454_v38  ;;  %v52_v45 = vpop.permute.xlu1 %51 }
 0x103   :  { %1456 = vmatpush1.msra.mxu0 %v7353_v59  ;;  %1538 = vmatpush1.msra.mxu1 %v5287_v29  ;;  %v7354_v29 = vand.u32 4294901760, %v5443_v57  ;;  %v1719_v44 = vand.u32 4294901760, %v5601_v19  ;;  %v5638_v57 = vsub.f32 %v187_v46, %v5603_v51  ;;  %v5655_v47 = vsub.f32 %v169_v28, %v5621_v50  ;;  %v7359_v28 = vld [vmem:[#allocation9_spill] sm:$0xff] }
 0x104   :  { %1460 = vmatprep.subr.mxu0 %v1124_v4  ;;  %1540 = vmatprep.subr.mxu1 %v5296_v54  ;;  %v5634_v54 = vsub.f32 %v4711_v21, %v5598_v14  ;;  %v5640_v4 = vand.u32 4294901760, %v161_v30  ;;  %v135_v38 = vsel %vm131_vm4, %v5207_v42, %v130_v52  ;;  %v110_v9 = vsel %vm105_vm6, %v104_v0, %v7357_v27 }
 0x105   :  { %1464 = vmatpush1.msra.mxu0 %v7354_v29  ;;  %1542 = vmatpush1.msra.mxu1 %v5305_v18  ;;  %v7355_v18 = vld [vmem:[#allocation5_spill] sm:$0xff]  ;;  %v1725_v42 = vand.u32 4294901760, %v5628_v37  ;;  %v1743_v11 = vand.u32 4294901760, %v5638_v57  ;;  %v84_v46 = vsel %vm79_vm7, %v78_v7, %v7358_v25  ;;  %v5698_v48 = vand.u32 4294901760, %v110_v9 }
 0x106   :  { %1468 = vmatprep.subr.mxu0 %v1136_v43  ;;  %1544 = vmatprep.subr.mxu1 %v5229_v56  ;;  %v136_v26 = vsel %vm131_vm4, %v130_v52, %v7355_v18  ;;  %v5648_v56 = vsub.f32 %v195_v22, %v5611_v35  ;;  %v1731_v43 = vand.u32 4294901760, %v5619_v55  ;;  %v5680_v2 = vsub.f32 %v161_v30, %v5640_v4  ;;  %v7360_v52 = vld [vmem:[#allocation8_spill] sm:$0xff] }
 0x107   :  { %1472 = vmatpush1.msra.mxu0 %v7356_v53  ;;  %1505 = vmatprep.mubr.f32.mxu0 %v7315_v16  ;;  %v5666_v31 = vand.u32 4294901760, %v136_v26  ;;  %v7243_v41 = vand.u32 4294901760, %v5634_v54  ;;  %v83_v21 = vsel %vm79_vm7, %v7359_v28, %v78_v7  ;;  %v58_v59 = vsel %vm53_vm8, %v52_v45, %v7360_v52 }
 0x108   :  { %1546 = vmatpush1.msra.mxu1 %v5255_v20  ;;  %1507 = vmatmul.mubr.f32.vlgmr.msra.gmra.mxu0 %v5030_v49  ;;  %v5664_v20 = vsub.f32 %v5586_v12, %v7241_v6  ;;  %v1737_v22 = vand.u32 4294901760, %v5648_v56  ;;  %v1726_v30 = vsub.f32 %v5628_v37, %v1725_v42  ;;  %v7244_v0 = vand.u32 4294901760, %v5655_v47 }
 0x109   :  { %1548 = vmatprep.subr.mxu1 %v5339_v40  ;;  %1618 = vmatprep.subr.mxu0 %v5571_v61  ;;  %v1720_v40 = vsub.f32 %v5601_v19, %v1719_v44  ;;  %v7242_v29 = vand.u32 4294901760, %v5680_v2  ;;  %v5721_v18 = vand.u32 4294901760, %v84_v46  ;;  %v5730_v7 = vand.u32 4294901760, %v83_v21 }
 0x10a   :  { %1550 = vmatpush1.msra.mxu1 %v5361_v3  ;;  %1620 = vmatpush1.msra.mxu0 %v5564_v8  ;;  %v5685_v3 = vand.u32 4294901760, %v135_v38  ;;  %v1715_v27 = vand.u32 4294901760, %v1714_v33  ;;  %v1738_v25 = vsub.f32 %v5648_v56, %v1737_v22  ;;  %v5743_v28 = vand.u32 4294901760, %v58_v59 }
 0x10b   :  { %1552 = vmatprep.subr.mxu1 %v5370_v5  ;;  %1622 = vmatprep.subr.mxu0 %v5588_v13  ;;  %v1732_v5 = vsub.f32 %v5619_v55, %v1731_v43  ;;  %v1727_v33 = vand.u32 4294901760, %v1726_v30  ;;  %v1756_v52 = vsub.f32 %v5680_v2, %v7242_v29  ;;  %v1768_v30 = vsub.f32 %v5634_v54, %v7243_v41 }
 0x10c   :  { %1554 = vmatpush1.msra.mxu1 %v5384_v60  ;;  %1624 = vmatpush1.msra.mxu0 %v5578_v39  ;;  %v5707_v60 = vsub.f32 %v136_v26, %v5666_v31  ;;  %v7361_v26 = vld [vmem:[#allocation10_spill] sm:$0xff]  ;;  %v5766_v6 = vsub.f32 %v83_v21, %v5730_v7  ;;  %v1739_v29 = vand.u32 4294901760, %v1738_v25 }
 0x10d   :  { %1556 = vmatprep.subr.mxu1 %v5395_v10  ;;  %1626 = vmatprep.subr.mxu0 %v5611_v35  ;;  %v1744_v10 = vsub.f32 %v5638_v57, %v1743_v11  ;;  %v57_v53 = vsel %vm53_vm8, %v7361_v26, %v52_v45  ;;  %v5738_v45 = vsub.f32 %v110_v9, %v5698_v48 }
 0x10e   :  { %1558 = vmatpush1.msra.mxu1 %v5404_v34  ;;  %1628 = vmatpush1.msra.mxu0 %v5603_v51  ;;  %v5728_v34 = vsub.f32 %v135_v38, %v5685_v3  ;;  %v5747_v38 = vand.u32 4294901760, %v57_v53  ;;  %v1750_v9 = vsub.f32 %v5655_v47, %v7244_v0  ;;  %v5758_v26 = vsub.f32 %v84_v46, %v5721_v18 }
 0x10f   :  { %1560 = vmatprep.subr.mxu1 %v5417_v15  ;;  %1630 = vmatprep.subr.mxu0 %v5621_v50  ;;  %v5741_v15 = vsub.f32 %v109_v17, %v5700_v36  ;;  %v1773_v17 = vand.u32 4294901760, %v5707_v60  ;;  %v5770_v46 = vsub.f32 %v58_v59, %v5743_v28  ;;  %v1785_v41 = vand.u32 4294901760, %v5738_v45 }
 0x110   :  { %1562 = vmatpush1.msra.mxu1 %v5424_v1  ;;  %1595 = vmatprep.mubr.f32.mxu1 %v7315_v16  ;;  %v1721_v1 = vand.u32 4294901760, %v1720_v40  ;;  %v1733_v40 = vand.u32 4294901760, %v1732_v5  ;;  %v1745_v5 = vand.u32 4294901760, %v1744_v10  ;;  %v5777_v21 = vsub.f32 %v57_v53, %v5747_v38 }
 0x111   :  { %1632 = vmatpush1.msra.mxu0 %v5640_v4  ;;  %1597 = vmatmul.mubr.f32.vlgmr.msra.gmra.mxu1 %v5030_v49  ;;  %v7245_v0 = vand.u32 4294901760, %v5741_v15  ;;  %v1751_v25 = vand.u32 4294901760, %v1750_v9  ;;  %v1774_v59 = vsub.f32 %v5707_v60, %v1773_v17  ;;  %v1757_v10 = vand.u32 4294901760, %v1756_v52 }
 0x112   :  { %1634 = vmatprep.subr.mxu0 %v5557_v24  ;;  %1716 = vmatprep.subr.mxu1 %v1715_v27  ;;  %v1779_v27 = vand.u32 4294901760, %v5728_v34  ;;  %v1809_v9 = vand.u32 4294901760, %v5770_v46 }
 0x113   :  { %1636 = vmatpush1.msra.mxu0 %v5598_v14  ;;  %1722 = vmatpush1.msra.mxu1 %v1721_v1  ;;  %v1763_v1 = vand.u32 4294901760, %v5664_v20  ;;  %v1769_v20 = vand.u32 4294901760, %v1768_v30  ;;  %v1792_v52 = vsub.f32 %v5741_v15, %v7245_v0  ;;  %v7247_v30 = vand.u32 4294901760, %v5777_v21 }
 0x114   :  { %1638 = vmatprep.subr.mxu0 %v5666_v31  ;;  %1728 = vmatprep.subr.mxu1 %v1727_v33  ;;  %v1797_v33 = vand.u32 4294901760, %v5758_v26  ;;  %v1780_v53 = vsub.f32 %v5728_v34, %v1779_v27 }
 0x115   :  { %1640 = vmatpush1.msra.mxu0 %v5685_v3  ;;  %1734 = vmatpush1.msra.mxu1 %v1733_v40  ;;  %v7246_v40 = vand.u32 4294901760, %v5766_v6 }
 0x116   :  { %1642 = vmatprep.subr.mxu0 %v5698_v48  ;;  %1740 = vmatprep.subr.mxu1 %v1739_v29  ;;  %v1786_v29 = vsub.f32 %v5738_v45, %v1785_v41  ;;  %v1781_v0 = vand.u32 4294901760, %v1780_v53 }
 0x117   :  { %1644 = vmatpush1.msra.mxu0 %v5700_v36  ;;  %1746 = vmatpush1.msra.mxu1 %v1745_v5  ;;  %v1775_v5 = vand.u32 4294901760, %v1774_v59  ;;  %v1810_v59 = vsub.f32 %v5770_v46, %v1809_v9 }
 0x118   :  { %1646 = vmatprep.subr.mxu0 %v5721_v18  ;;  %1752 = vmatprep.subr.mxu1 %v1751_v25  ;;  %v1798_v25 = vsub.f32 %v5758_v26, %v1797_v33 }
 0x119   :  { %1648 = vmatpush1.msra.mxu0 %v5730_v7  ;;  %1758 = vmatpush1.msra.mxu1 %v1757_v10  ;;  %v1804_v10 = vsub.f32 %v5766_v6, %v7246_v40  ;;  %v1793_v40 = vand.u32 4294901760, %v1792_v52 }
 0x11a   :  { %1650 = vmatprep.subr.mxu0 %v5743_v28  ;;  %1764 = vmatprep.subr.mxu1 %v1763_v1  ;;  %v1787_v1 = vand.u32 4294901760, %v1786_v29  ;;  %v1799_v53 = vand.u32 4294901760, %v1798_v25 }
 0x11b   :  { %1652 = vmatpush1.msra.mxu0 %v5747_v38  ;;  %1770 = vmatpush1.msra.mxu1 %v1769_v20  ;;  %v1816_v20 = vsub.f32 %v5777_v21, %v7247_v30  ;;  %v1805_v29 = vand.u32 4294901760, %v1804_v10  ;;  %v29_v10 = vld [vmem:[%s7197_s1] sm:$0x3f] }
 0x11c   :  { %1685 = vmatprep.mubr.f32.mxu0 %v7315_v16  ;;  %1776 = vmatprep.subr.mxu1 %v1775_v5  ;;  %v1811_v5 = vand.u32 4294901760, %v1810_v59 }
 0x11d   :  { %1875 = vmatprep.subr.mxu0 %v5609_v23  ;;  %1691 = vmatmul.mubr.f32.vlgmr.msra.gmra.mxu0 %v5114_v63  ;;  %v1817_v30 = vand.u32 4294901760, %v1816_v20  ;;  %v7363_v23 = vand.u32 4294901760, %v5680_v2 }
 0x11e   :  { %1782 = vmatpush1.msra.mxu1 %v1781_v0  ;;  %1878 = vmatpush1.msra.mxu0 %v5601_v19  ;;  %v7362_v19 = vand.u32 4294901760, %v5655_v47 }
 0x11f   :  { %1788 = vmatprep.subr.mxu1 %v1787_v1  ;;  %1881 = vmatprep.subr.mxu0 %v5628_v37  ;;  %v7365_v37 = vand.u32 4294901760, %v5634_v54 }
 0x120   :  { %1794 = vmatpush1.msra.mxu1 %v1793_v40  ;;  %1884 = vmatpush1.msra.mxu0 %v5619_v55  ;;  %v7364_v55 = vand.u32 4294901760, %v5586_v12 }
 0x121   :  { %1800 = vmatprep.subr.mxu1 %v1799_v53  ;;  %1887 = vmatprep.subr.mxu0 %v5648_v56 }
 0x122   :  { %1806 = vmatpush1.msra.mxu1 %v1805_v29  ;;  %1890 = vmatpush1.msra.mxu0 %v5638_v57 }
 0x123   :  { %1812 = vmatprep.subr.mxu1 %v1811_v5  ;;  %1893 = vmatprep.subr.mxu0 %v5655_v47 }
 0x124   :  { %1818 = vmatpush1.msra.mxu1 %v1817_v30  ;;  %1851 = vmatprep.mubr.f32.mxu1 %v7315_v16 }
 0x125   :  { %1896 = vmatpush1.msra.mxu0 %v5680_v2  ;;  %1853 = vmatmul.mubr.f32.vlgmr.msra.gmra.mxu1 %v5030_v49 }
 0x126   :  { %1899 = vmatprep.subr.mxu0 %v5586_v12  ;;  %1983 = vmatprep.subr.mxu1 %v5571_v61 }
 0x127   :  { %1902 = vmatpush1.msra.mxu0 %v5634_v54  ;;  %1985 = vmatpush1.msra.mxu1 %v5564_v8 }
 0x128   :  { %1905 = vmatprep.subr.mxu0 %v5707_v60  ;;  %1987 = vmatprep.subr.mxu1 %v5588_v13 }
 0x129   :  { %1908 = vmatpush1.msra.mxu0 %v5728_v34  ;;  %1989 = vmatpush1.msra.mxu1 %v5578_v39 }
 0x12a   :  { %1911 = vmatprep.subr.mxu0 %v5738_v45  ;;  %1991 = vmatprep.subr.mxu1 %v5611_v35 }
 0x12b   :  { %1914 = vmatpush1.msra.mxu0 %v5741_v15  ;;  %1993 = vmatpush1.msra.mxu1 %v5603_v51 }
 0x12c   :  { %1917 = vmatprep.subr.mxu0 %v5758_v26  ;;  %1995 = vmatprep.subr.mxu1 %v5621_v50 }
 0x12d   :  { %1920 = vmatpush1.msra.mxu0 %v5766_v6  ;;  %1997 = vmatpush1.msra.mxu1 %v5640_v4 }
 0x12e   :  { %1923 = vmatprep.subr.mxu0 %v5770_v46  ;;  %1999 = vmatprep.subr.mxu1 %v5557_v24 }
 0x12f   :  { %1926 = vmatpush1.msra.mxu0 %v5777_v21  ;;  %1959 = vmatprep.mubr.f32.mxu0 %v7315_v16 }
 0x130   :  { %2001 = vmatpush1.msra.mxu1 %v5598_v14  ;;  %1962 = vmatmul.mubr.f32.vlgmr.msra.gmra.mxu0 %v5051_v32 }
 0x131   :  { %2003 = vmatprep.subr.mxu1 %v5666_v31  ;;  %2077 = vmatprep.subr.mxu0 %v1713_v58 }
 0x132   :  { %2005 = vmatpush1.msra.mxu1 %v5685_v3  ;;  %2081 = vmatpush1.msra.mxu0 %v1719_v44 }
 0x133   :  { %2007 = vmatprep.subr.mxu1 %v5698_v48  ;;  %2085 = vmatprep.subr.mxu0 %v1725_v42  ;;  %v5917_v42 = vpop.permute.xlu0 %250 }
 0x134   :  { %2009 = vmatpush1.msra.mxu1 %v5700_v36  ;;  %2089 = vmatpush1.msra.mxu0 %v1731_v43  ;;  %7369 = vst [vmem:[#allocation2_spill] sm:$0xff] %v5917_v42 }
 0x135   :  { %2011 = vmatprep.subr.mxu1 %v5721_v18  ;;  %2093 = vmatprep.subr.mxu0 %v1737_v22 }
 0x136   :  { %2013 = vmatpush1.msra.mxu1 %v5730_v7  ;;  %2097 = vmatpush1.msra.mxu0 %v1743_v11 }
 0x137   :  { %2015 = vmatprep.subr.mxu1 %v5743_v28  ;;  %2101 = vmatprep.subr.mxu0 %v7362_v19 }
 0x138   :  { %2017 = vmatpush1.msra.mxu1 %v5747_v38  ;;  %2050 = vmatprep.mubr.f32.mxu1 %v7315_v16 }
 0x139   :  { %2105 = vmatpush1.msra.mxu0 %v7363_v23  ;;  %2054 = vmatmul.mubr.f32.vlgmr.msra.gmra.mxu1 %v5074_v62 }
 0x13a   :  { %2109 = vmatprep.subr.mxu0 %v7364_v55  ;;  %2201 = vmatprep.subr.mxu1 %v5571_v61  ;;  %v7366_v61 = vand.u32 4294901760, %v5741_v15 }
 0x13b   :  { %2113 = vmatpush1.msra.mxu0 %v7365_v37  ;;  %2203 = vmatpush1.msra.mxu1 %v5564_v8  ;;  %v7367_v8 = vand.u32 4294901760, %v5766_v6 }
 0x13c   :  { %2117 = vmatprep.subr.mxu0 %v1773_v17  ;;  %2205 = vmatprep.subr.mxu1 %v5588_v13 }
 0x13d   :  { %2121 = vmatpush1.msra.mxu0 %v1779_v27  ;;  %2207 = vmatpush1.msra.mxu1 %v5578_v39  ;;  %v7368_v39 = vand.u32 4294901760, %v5777_v21 }
 0x13e   :  { %2125 = vmatprep.subr.mxu0 %v1785_v41  ;;  %2209 = vmatprep.subr.mxu1 %v5611_v35 }
 0x13f   :  { %2129 = vmatpush1.msra.mxu0 %v7366_v61  ;;  %2211 = vmatpush1.msra.mxu1 %v5603_v51 }
 0x140   :  { %2133 = vmatprep.subr.mxu0 %v1797_v33  ;;  %2213 = vmatprep.subr.mxu1 %v5621_v50 }
 0x141   :  { %2137 = vmatpush1.msra.mxu0 %v7367_v8  ;;  %2215 = vmatpush1.msra.mxu1 %v5640_v4 }
 0x142   :  { %2141 = vmatprep.subr.mxu0 %v1809_v9  ;;  %2217 = vmatprep.subr.mxu1 %v5557_v24 }
 0x143   :  { %2145 = vmatpush1.msra.mxu0 %v7368_v39  ;;  %2178 = vmatprep.mubr.f32.mxu0 %v7315_v16 }
 0x144   :  { %2219 = vmatpush1.msra.mxu1 %v5598_v14  ;;  %2180 = vmatmul.mubr.f32.vlgmr.msra.gmra.mxu0 %v5030_v49 }
 0x145   :  { %2221 = vmatprep.subr.mxu1 %v5666_v31  ;;  %2268 = vmatprep.mubr.f32.mxu1 %v7315_v16 }
 0x146   :  { %2223 = vmatpush1.msra.mxu1 %v5685_v3  ;;  %2674 = vmatprep.mubr.f32.mxu0 %v7315_v16 }
 0x147   :  { %2225 = vmatprep.subr.mxu1 %v5698_v48  ;;  %v2277_v48 = vlaneseq }
 0x148   :  { %2227 = vmatpush1.msra.mxu1 %v5700_v36 }
 0x149   :  { %2229 = vmatprep.subr.mxu1 %v5721_v18  ;;  %v5922_v45 = vshrl.u32 %v2277_v48, 7 }
 0x14a   :  { %2231 = vmatpush1.msra.mxu1 %v5730_v7 }
 0x14b   :  { %2233 = vmatprep.subr.mxu1 %v5743_v28  ;;  %v2283_v27 = vsub.s32 1, %v5922_v45  ;;  %v2279_v9 = vsub.s32 0, %v5922_v45  ;;  %v2287_v20 = vsub.s32 2, %v5922_v45  ;;  %v2291_v39 = vsub.s32 3, %v5922_v45 }
 0x14c   :  { %2235 = vmatpush1.msra.mxu1 %v5747_v38  ;;  %v2299_v48 = vsub.s32 5, %v5922_v45 }
 0x14d   :  { %2270 = vmatmul.mubr.f32.vlgmr.msra.gmra.mxu1 %v5030_v49  ;;  %v5931_v29 = vrot.slane %v29_v10, %v2283_v27  ;;  %v5938_v8 = vrot.slane %v29_v10, %v2279_v9 }
 0x14e   :  { %2840 = vmatprep.mubr.f32.mxu1 %v7315_v16 }
 0x14f   :  { %7370 = vst [vmem:[#allocation3_spill] sm:$0xff] %v5931_v29  ;;  %7371 = vst [vmem:[#allocation4_spill] sm:$0xff] %v5938_v8 }
 0x166   :  { %v346_v24 = vpop.f32.mrf.mxu0 }
 0x167   :  { %v347_v22 = vadd.f32 %v346_v24, %v5917_v42 }
 0x168   :  { %v348_v12 = vpop.f32.mrf.mxu0 }
 0x169   :  { %v349_v3 = vadd.f32 %v348_v12, %v5917_v42 }
 0x16e   :  { %v508_v13 = vpop.f32.mrf.mxu1 }
 0x16f   :  { %v509_v7 = vadd.f32 %v508_v13, %v347_v22 }
 0x170   :  { %v510_v51 = vpop.f32.mrf.mxu1 }
 0x171   :  { %v511_v34 = vadd.f32 %v510_v51, %v349_v3 }
 0x178   :  { %v617_v14 = vpop.f32.mrf.mxu0 }
 0x179   :  { %v618_v26 = vadd.f32 %v617_v14, %v509_v7  ;;  %v5943_v14 = vrot.slane %v29_v10, %v2287_v20 }
 0x17a   :  { %v619_v35 = vpop.f32.mrf.mxu0 }
 0x17b   :  { %v620_v28 = vadd.f32 %v619_v35, %v511_v34  ;;  %7372 = vst [vmem:[#allocation5_spill] sm:$0xff] %v5943_v14 }
 0x181   :  { %v709_v50 = vpop.f32.mrf.mxu1 }
 0x182   :  { %v710_v40 = vadd.f32 %v709_v50, %v618_v26 }
 0x183   :  { %v711_v54 = vpop.f32.mrf.mxu1 }
 0x184   :  { %v712_v21 = vadd.f32 %v711_v54, %v620_v28 }
 0x18c   :  { %v835_v6 = vpop.f32.mrf.mxu0 }
 0x18d   :  { %v836_v53 = vadd.f32 %v835_v6, %v710_v40 }
 0x18e   :  { %v837_v44 = vpop.f32.mrf.mxu0 }
 0x18f   :  { %v838_v25 = vadd.f32 %v837_v44, %v712_v21 }
 0x195   :  { %v925_v57 = vpop.f32.mrf.mxu1 }
 0x196   :  { %v5936_v61 = vadd.f32 %v925_v57, %v836_v53 }
 0x197   :  { %v927_v56 = vpop.f32.mrf.mxu1 }
 0x198   :  { %v5933_v19 = vadd.f32 %v927_v56, %v838_v25  ;;  %v2307_v57 = vmul.f32 %v5938_v8, %v5936_v61 }
 0x19a   :  { %v2308_v6 = vmul.f32 %v5931_v29, %v5933_v19 }
 0x1a1   :  { %v1019_v4 = vpop.f32.mrf.mxu0 }
 0x1a2   :  { %v1020_v60 = vadd.f32 %v1019_v4, %v5917_v42  ;;  %v5950_v4 = vrot.slane %v29_v10, %v2291_v39 }
 0x1a3   :  { %v1021_v58 = vpop.f32.mrf.mxu0 }
 0x1a4   :  { %v1022_v38 = vadd.f32 %v1021_v58, %v5917_v42  ;;  %7373 = vst [vmem:[#allocation6_spill] sm:$0xff] %v5950_v4  ;;  %v2295_v58 = vsub.s32 4, %v5922_v45 }
 0x1a9   :  { %v1181_v43 = vpop.f32.mrf.mxu1 }
 0x1aa   :  { %v1182_v17 = vadd.f32 %v1181_v43, %v1020_v60  ;;  %v5958_v60 = vrot.slane %v29_v10, %v2295_v58 }
 0x1ab   :  { %v1183_v31 = vpop.f32.mrf.mxu1 }
 0x1ac   :  { %v1184_v1 = vadd.f32 %v1183_v31, %v1022_v38  ;;  %7374 = vst [vmem:[#allocation7_spill] sm:$0xff] %v5958_v60 }
 0x1b4   :  { %v1290_v47 = vpop.f32.mrf.mxu0 }
 0x1b5   :  { %v1291_v33 = vadd.f32 %v1290_v47, %v1182_v17  ;;  %v5964_v17 = vrot.slane %v29_v10, %v2299_v48 }
 0x1b6   :  { %v1292_v11 = vpop.f32.mrf.mxu0 }
 0x1b7   :  { %v1293_v23 = vadd.f32 %v1292_v11, %v1184_v1  ;;  %7375 = vst [vmem:[#allocation9_spill] sm:$0xff] %v5964_v17 }
 0x1bd   :  { %v1382_v2 = vpop.f32.mrf.mxu1 }
 0x1be   :  { %v1383_v59 = vadd.f32 %v1382_v2, %v1291_v33 }
 0x1bf   :  { %v1384_v36 = vpop.f32.mrf.mxu1 }
 0x1c0   :  { %v1385_v12 = vadd.f32 %v1384_v36, %v1293_v23 }
 0x1c8   :  { %v1508_v41 = vpop.f32.mrf.mxu0 }
 0x1c9   :  { %v1509_v55 = vadd.f32 %v1508_v41, %v1383_v59  ;;  %v2313_v41 = vadd.f32 %v2308_v6, %v2307_v57 }
 0x1ca   :  { %v1510_v0 = vpop.f32.mrf.mxu0 }
 0x1cb   :  { %v1511_v54 = vadd.f32 %v1510_v0, %v1385_v12 }
 0x1d1   :  { %v1598_v18 = vpop.f32.mrf.mxu1 }
 0x1d2   :  { %v5941_v13 = vadd.f32 %v1598_v18, %v1509_v55 }
 0x1d3   :  { %v1600_v46 = vpop.f32.mrf.mxu1 }
 0x1d4   :  { %v2309_v43 = vmul.f32 %v5943_v14, %v5941_v13  ;;  %v5955_v47 = vadd.f32 %v1600_v46, %v1511_v54 }
 0x1d6   :  { %v2314_v0 = vadd.f32 %v2313_v41, %v2309_v43  ;;  %v2310_v18 = vmul.f32 %v5950_v4, %v5955_v47 }
 0x1d8   :  { %v2315_v46 = vadd.f32 %v2314_v0, %v2310_v18 }
 0x1dd   :  { %v1692_v15 = vpop.f32.mrf.mxu0 }
 0x1de   :  { %v1693_v37 = vadd.f32 %v1692_v15, %v5917_v42 }
 0x1df   :  { %v1694_v52 = vpop.f32.mrf.mxu0 }
 0x1e0   :  { %v1695_v51 = vadd.f32 %v1694_v52, %v5917_v42 }
 0x1e5   :  { %v1854_v30 = vpop.f32.mrf.mxu1 }
 0x1e6   :  { %v1855_v44 = vadd.f32 %v1854_v30, %v1693_v37 }
 0x1e7   :  { %v1856_v24 = vpop.f32.mrf.mxu1 }
 0x1e8   :  { %v1857_v31 = vadd.f32 %v1856_v24, %v1695_v51 }
 0x1f0   :  { %v1963_v5 = vpop.f32.mrf.mxu0 }
 0x1f1   :  { %v1964_v11 = vadd.f32 %v1963_v5, %v1855_v44 }
 0x1f2   :  { %v1965_v35 = vpop.f32.mrf.mxu0 }
 0x1f3   :  { %v1966_v3 = vadd.f32 %v1965_v35, %v1857_v31 }
 0x1f9   :  { %v2055_v50 = vpop.f32.mrf.mxu1 }
 0x1fa   :  { %v2056_v22 = vadd.f32 %v2055_v50, %v1964_v11 }
 0x1fb   :  { %v2057_v2 = vpop.f32.mrf.mxu1 }
 0x1fc   :  { %v2058_v34 = vadd.f32 %v2057_v2, %v1966_v3  ;;  %v32_v2 = vld [vmem:[%s7198_s4] sm:$0xff] }
 0x204   :  { %v2181_v56 = vpop.f32.mrf.mxu0 }
 0x205   :  { %v2182_v7 = vadd.f32 %v2181_v56, %v2056_v22  ;;  %v33_v22 = vld [vmem:[%s7199_s5] sm:$0xff] }
 0x206   :  { %v2183_v36 = vpop.f32.mrf.mxu0 }
 0x207   :  { %v2184_v28 = vadd.f32 %v2183_v36, %v2058_v34 }
 0x20d   :  { %v2271_v15 = vpop.f32.mrf.mxu1 }
 0x20e   :  { %v5962_v38 = vadd.f32 %v2271_v15, %v2182_v7 }
 0x20f   :  { %v2273_v26 = vpop.f32.mrf.mxu1 }
 0x210   :  { %v2311_v27 = vmul.f32 %v5958_v60, %v5962_v38  ;;  %v5968_v45 = vadd.f32 %v2273_v26, %v2184_v28 }
 0x212   :  { %v2312_v21 = vmul.f32 %v5964_v17, %v5968_v45  ;;  %v2316_v33 = vadd.f32 %v2315_v46, %v2311_v27 }
 0x214   :  { %v2317_v40 = vadd.f32 %v2316_v33, %v2312_v21 }
 0x216   :  { %2318 = vadd.xlane.f32.xlu1 %v2317_v40 }
 0x29f   :  { %v2319_v9 = vpop.xlane.xlu1 %2318 }
 0x2a0   :  { %v2320_v52 = vmul.f32 0.001953125, %v2319_v9 }
 0x2a2   :  { %v2321_v30 = vsub.f32 %v5936_v61, %v2320_v52  ;;  %v2322_v25 = vsub.f32 %v5933_v19, %v2320_v52  ;;  %v2323_v10 = vsub.f32 %v5941_v13, %v2320_v52  ;;  %v2324_v1 = vsub.f32 %v5955_v47, %v2320_v52 }
 0x2a3   :  { %v2325_v59 = vsub.f32 %v5962_v38, %v2320_v52  ;;  %v2326_v23 = vsub.f32 %v5968_v45, %v2320_v52 }
 0x2a4   :  { %v2327_v20 = vmul.f32 %v2321_v30, %v5938_v8  ;;  %v2328_v53 = vmul.f32 %v2322_v25, %v5931_v29  ;;  %v2329_v5 = vmul.f32 %v2323_v10, %v5943_v14  ;;  %v2330_v55 = vmul.f32 %v2324_v1, %v5950_v4 }
 0x2a5   :  { %v2331_v24 = vmul.f32 %v2325_v59, %v5958_v60  ;;  %v2332_v35 = vmul.f32 %v2326_v23, %v5964_v17 }
 0x2a6   :  { %v2333_v37 = vmul.f32 %v2327_v20, %v2327_v20  ;;  %v2334_v39 = vmul.f32 %v2328_v53, %v2328_v53  ;;  %v2335_v12 = vmul.f32 %v2329_v5, %v2329_v5  ;;  %v2336_v50 = vmul.f32 %v2330_v55, %v2330_v55 }
 0x2a7   :  { %v2337_v54 = vmul.f32 %v2331_v24, %v2331_v24  ;;  %v2338_v57 = vmul.f32 %v2332_v35, %v2332_v35 }
 0x2a8   :  { %v2339_v51 = vadd.f32 %v2334_v39, %v2333_v37 }
 0x2aa   :  { %v2340_v6 = vadd.f32 %v2339_v51, %v2335_v12 }
 0x2ac   :  { %v2341_v44 = vadd.f32 %v2340_v6, %v2336_v50 }
 0x2ae   :  { %v2342_v56 = vadd.f32 %v2341_v44, %v2337_v54 }
 0x2b0   :  { %v2343_v58 = vadd.f32 %v2342_v56, %v2338_v57 }
 0x2b2   :  { %2344 = vadd.xlane.f32.xlu0 %v2343_v58 }
 0x33b   :  { %v2345_v43 = vpop.xlane.xlu0 %2344 }
 0x33c   :  { %v2346_v31 = vmul.f32 0.001953125, %v2345_v43 }
 0x33e   :  { %v2347_v11 = vadd.f32 1e-05, %v2346_v31 }
 0x340   :  { %4706 = vrsqrt.f32 %v2347_v11 }
 0x34d   :  { %v4707_v41 = vpop.eup %4706 }
 0x34e   :  { %v2349_v3 = vmul.f32 %v4707_v41, %v32_v2 }
 0x350   :  { %2354 = vperm.xlu1 %4705, %v2349_v3   ;;  %v2350_v48 = vmul.f32 %v2349_v3, %v2320_v52 }
 0x352   :  { %v2351_v36 = vsub.f32 %v33_v22, %v2350_v48 }
 0x354   :  { %2365 = vperm.xlu0 %4704, %v2351_v36  }
 0x3cb   :  { %v2355_v0 = vpop.permute.xlu1 %2354 }
 0x3cc   :  { %v2357_v18 = vmul.f32 %v2355_v0, %v5936_v61  ;;  %v2358_v34 = vmul.f32 %v2355_v0, %v5933_v19  ;;  %v2359_v7 = vmul.f32 %v2355_v0, %v5941_v13  ;;  %v2362_v61 = vmul.f32 %v2355_v0, %v5968_v45 }
 0x3cd   :  { %v2360_v30 = vmul.f32 %v2355_v0, %v5955_v47  ;;  %v2361_v1 = vmul.f32 %v2355_v0, %v5962_v38 }
 0x3cf   :  { %v2366_v15 = vpop.permute.xlu0 %2365 }
 0x3d0   :  { %v2368_v28 = vadd.f32 %v2366_v15, %v2357_v18  ;;  %v2369_v26 = vadd.f32 %v2366_v15, %v2358_v34  ;;  %v2370_v27 = vadd.f32 %v2366_v15, %v2359_v7  ;;  %v2373_v13 = vadd.f32 %v2366_v15, %v2362_v61 }
 0x3d1   :  { %v2371_v25 = vadd.f32 %v2366_v15, %v2360_v30  ;;  %v2372_v47 = vadd.f32 %v2366_v15, %v2361_v1 }
 0x3d2   :  { %v2374_v46 = vmax.f32 %v2368_v28, 0.0  ;;  %v2375_v21 = vmax.f32 %v2369_v26, 0.0  ;;  %v2376_v33 = vmax.f32 %v2370_v27, 0.0  ;;  %v2379_v52 = vmax.f32 %v2373_v13, 0.0 }
 0x3d3   :  { %v2377_v10 = vmax.f32 %v2371_v25, 0.0  ;;  %v2378_v20 = vmax.f32 %v2372_v47, 0.0 }
 0x3d4   :  { %v5994_v40 = vmul.f32 %v2374_v46, %v5938_v8  ;;  %v5997_v9 = vmul.f32 %v2375_v21, %v5931_v29  ;;  %v6004_v19 = vmul.f32 %v2376_v33, %v5943_v14  ;;  %v6028_v45 = vmul.f32 %v2379_v52, %v5964_v17 }
 0x3d5   :  { %v6053_v59 = vmul.f32 %v2377_v10, %v5950_v4  ;;  %v6064_v38 = vmul.f32 %v2378_v20, %v5958_v60 }
 0x3d6   :  { %2569 = vrot.lane.b32.xlu1 %v5997_v9, %s4720_s25  ;;  %2567 = vrot.lane.b32.xlu0 %v5994_v40, %s4720_s25  ;;  %7376 = vst [vmem:[#allocation8_spill] sm:$0xff] %v6028_v45  ;;  %v6182_v13 = vand.u32 4294901760, %v5997_v9  ;;  %v6192_v1 = vand.u32 4294901760, %v5994_v40 }
 0x3d7   :  { %7377 = vst [vmem:[#allocation10_spill] sm:$0xff] %v6064_v38 }
 0x3da   :  { %2571 = vrot.lane.b32.xlu1 %v6004_v19, %s4720_s25  ;;  %2546 = vrot.lane.b32.xlu0 %v6004_v19, %s4721_s28 }
 0x3de   :  { %2544 = vrot.lane.b32.xlu1 %v5997_v9, %s4721_s28  ;;  %2519 = vrot.lane.b32.xlu0 %v5997_v9, %s4722_s29 }
 0x3e2   :  { %2542 = vrot.lane.b32.xlu1 %v5994_v40, %s4721_s28  ;;  %2517 = vrot.lane.b32.xlu0 %v5994_v40, %s4722_s29 }
 0x3e6   :  { %2521 = vrot.lane.b32.xlu1 %v6004_v19, %s4722_s29  ;;  %2496 = vrot.lane.b32.xlu0 %v6004_v19, %s4723_s30 }
 0x3ea   :  { %2494 = vrot.lane.b32.xlu1 %v5997_v9, %s4723_s30  ;;  %2470 = vrot.lane.b32.xlu0 %v5994_v40, %s4724_s7 }
 0x3ee   :  { %2492 = vrot.lane.b32.xlu1 %v5994_v40, %s4723_s30  ;;  %2467 = vrot.lane.b32.xlu0 %v6028_v45, %s4724_s7 }
 0x3f2   :  { %2472 = vrot.lane.b32.xlu1 %v5997_v9, %s4724_s7  ;;  %2447 = vrot.lane.b32.xlu0 %v5997_v9, %s4725_s10 }
 0x3f6   :  { %2445 = vrot.lane.b32.xlu1 %v5994_v40, %s4725_s10  ;;  %2420 = vrot.lane.b32.xlu0 %v5994_v40, %s4726_s11 }
 0x3fa   :  { %2442 = vrot.lane.b32.xlu1 %v6028_v45, %s4725_s10  ;;  %2417 = vrot.lane.b32.xlu0 %v6028_v45, %s4726_s11 }
 0x3fe   :  { %2422 = vrot.lane.b32.xlu1 %v5997_v9, %s4726_s11  ;;  %2397 = vrot.lane.b32.xlu0 %v5997_v9, %s4728_s12 }
 0x402   :  { %2395 = vrot.lane.b32.xlu1 %v5994_v40, %s4728_s12  ;;  %2573 = vrot.lane.b32.xlu0 %v6053_v59, %s4720_s25 }
 0x406   :  { %2387 = vrot.lane.b32.xlu1 %v6028_v45, %s4728_s12  ;;  %2548 = vrot.lane.b32.xlu0 %v6053_v59, %s4721_s28 }
 0x40a   :  { %2575 = vrot.lane.b32.xlu1 %v6064_v38, %s4720_s25  ;;  %2523 = vrot.lane.b32.xlu0 %v6053_v59, %s4722_s29 }
 0x40e   :  { %2550 = vrot.lane.b32.xlu1 %v6064_v38, %s4721_s28  ;;  %2498 = vrot.lane.b32.xlu0 %v6053_v59, %s4723_s30 }
 0x412   :  { %2525 = vrot.lane.b32.xlu1 %v6064_v38, %s4722_s29  ;;  %2474 = vrot.lane.b32.xlu0 %v6004_v19, %s4724_s7 }
 0x416   :  { %2500 = vrot.lane.b32.xlu1 %v6064_v38, %s4723_s30  ;;  %2449 = vrot.lane.b32.xlu0 %v6004_v19, %s4725_s10 }
 0x41a   :  { %2476 = vrot.lane.b32.xlu1 %v6053_v59, %s4724_s7  ;;  %2424 = vrot.lane.b32.xlu0 %v6004_v19, %s4726_s11 }
 0x41e   :  { %2451 = vrot.lane.b32.xlu1 %v6053_v59, %s4725_s10  ;;  %2399 = vrot.lane.b32.xlu0 %v6004_v19, %s4728_s12 }
 0x422   :  { %2426 = vrot.lane.b32.xlu1 %v6053_v59, %s4726_s11  ;;  %2577 = vrot.lane.b32.xlu0 %v6028_v45, %s4720_s25 }
 0x426   :  { %2401 = vrot.lane.b32.xlu1 %v6053_v59, %s4728_s12  ;;  %2527 = vrot.lane.b32.xlu0 %v6028_v45, %s4722_s29 }
 0x42a   :  { %2552 = vrot.lane.b32.xlu1 %v6028_v45, %s4721_s28  ;;  %2478 = vrot.lane.b32.xlu0 %v6064_v38, %s4724_s7 }
 0x42e   :  { %2502 = vrot.lane.b32.xlu1 %v6028_v45, %s4723_s30  ;;  %2428 = vrot.lane.b32.xlu0 %v6064_v38, %s4726_s11 }
 0x432   :  { %2453 = vrot.lane.b32.xlu1 %v6064_v38, %s4725_s10 }
 0x436   :  { %2403 = vrot.lane.b32.xlu1 %v6064_v38, %s4728_s12 }
 0x448   :  { %v2570_v53 = vpop.permute.xlu1 %2569  ;;  %v6110_v5 = vpop.permute.xlu0 %2567 }
 0x449   :  { %7378 = vst [vmem:[#allocation11_spill] sm:$0xff] %v6110_v5  ;;  %v2579_v23 = vsel %vm234_vm0, %v6110_v5, %v2570_v53 }
 0x44a   :  { %v6114_v55 = vand.u32 4294901760, %v2579_v23 }
 0x44c   :  { %v6117_v37 = vsub.f32 %v2579_v23, %v6114_v55  ;;  %v6119_v39 = vpop.permute.xlu1 %2571  ;;  %v6121_v24 = vpop.permute.xlu0 %2546 }
 0x44d   :  { %v2580_v12 = vsel %vm234_vm0, %v2570_v53, %v6119_v39 }
 0x44e   :  { %v6125_v51 = vand.u32 4294901760, %v2580_v12  ;;  %v7253_v35 = vand.u32 4294901760, %v6117_v37 }
 0x450   :  { %v6129_v50 = vsub.f32 %v2580_v12, %v6125_v51  ;;  %2607 = vmatprep.subr.mxu0 %v6125_v51  ;;  %v2545_v6 = vpop.permute.xlu1 %2544  ;;  %v2520_v54 = vpop.permute.xlu0 %2519  ;;  %v2709_v58 = vsub.f32 %v6117_v37, %v7253_v35 }
 0x451   :  { %v2555_v44 = vsel %vm208_vm1, %v2545_v6, %v6121_v24  ;;  %2609 = vmatpush1.msra.mxu0 %v6114_v55 }
 0x452   :  { %v6135_v57 = vand.u32 4294901760, %v2555_v44  ;;  %v7256_v56 = vand.u32 4294901760, %v6129_v50  ;;  %v2710_v18 = vand.u32 4294901760, %v2709_v58 }
 0x454   :  { %v6142_v43 = vsub.f32 %v2555_v44, %v6135_v57  ;;  %v6144_v31 = vpop.permute.xlu1 %2542  ;;  %2611 = vmatprep.subr.mxu0 %v6135_v57  ;;  %v6147_v11 = vpop.permute.xlu0 %2517  ;;  %v2703_v2 = vsub.f32 %v6129_v50, %v7256_v56 }
 0x455   :  { %7379 = vst [vmem:[#allocation12_spill] sm:$0xff] %v6144_v31  ;;  %7380 = vst [vmem:[#allocation13_spill] sm:$0xff] %v6147_v11  ;;  %v2554_v41 = vsel %vm208_vm1, %v6144_v31, %v2545_v6  ;;  %v2529_v3 = vsel %vm182_vm2, %v6147_v11, %v2520_v54  ;;  %v6205_v6 = vsub.f32 %v5997_v9, %v6182_v13 }
 0x456   :  { %v6156_v22 = vand.u32 4294901760, %v2554_v41  ;;  %v6158_v48 = vand.u32 4294901760, %v2529_v3  ;;  %v2704_v36 = vand.u32 4294901760, %v2703_v2  ;;  %v7252_v0 = vand.u32 4294901760, %v6142_v43 }
 0x457   :  { %v7389_v45 = vand.u32 4294901760, %v6142_v43 }
 0x458   :  { %v6162_v34 = vsub.f32 %v2554_v41, %v6156_v22  ;;  %v6165_v7 = vsub.f32 %v2529_v3, %v6158_v48  ;;  %2705 = vmatprep.subr.mxu1 %v2704_v36  ;;  %v6167_v15 = vpop.permute.xlu1 %2521  ;;  %2613 = vmatpush1.msra.mxu0 %v6156_v22  ;;  %v6170_v28 = vpop.permute.xlu0 %2496  ;;  %v2715_v26 = vsub.f32 %v6142_v43, %v7252_v0 }
 0x459   :  { %v2530_v27 = vsel %vm182_vm2, %v2520_v54, %v6167_v15  ;;  %2711 = vmatpush1.msra.mxu1 %v2710_v18  ;;  %v6220_v41 = vsub.f32 %v5994_v40, %v6192_v1 }
 0x45a   :  { %v7251_v46 = vand.u32 4294901760, %v6162_v34  ;;  %v6178_v21 = vand.u32 4294901760, %v2530_v27  ;;  %v2716_v33 = vand.u32 4294901760, %v2715_v26  ;;  %v7248_v61 = vand.u32 4294901760, %v6165_v7 }
 0x45b   :  { %v7390_v31 = vand.u32 4294901760, %v6162_v34 }
 0x45c   :  { %v2721_v52 = vsub.f32 %v6162_v34, %v7251_v46  ;;  %v6188_v30 = vsub.f32 %v2530_v27, %v6178_v21  ;;  %v2495_v25 = vpop.permute.xlu1 %2494  ;;  %2615 = vmatprep.subr.mxu0 %v6178_v21  ;;  %2717 = vmatprep.subr.mxu1 %v2716_v33  ;;  %v2471_v10 = vpop.permute.xlu0 %2470  ;;  %v2733_v12 = vsub.f32 %v6165_v7, %v7248_v61 }
 0x45d   :  { %v2505_v47 = vsel %vm156_vm3, %v2495_v25, %v6170_v28  ;;  %2617 = vmatpush1.msra.mxu0 %v6158_v48 }
 0x45e   :  { %v6197_v20 = vand.u32 4294901760, %v2505_v47  ;;  %v2722_v53 = vand.u32 4294901760, %v2721_v52  ;;  %v7249_v23 = vand.u32 4294901760, %v6188_v30  ;;  %v2734_v33 = vand.u32 4294901760, %v2733_v12 }
 0x45f   :  { %v7254_v52 = vand.u32 4294901760, %v6205_v6  ;;  %v7261_v12 = vand.u32 4294901760, %v6220_v41 }
 0x460   :  { %v6208_v54 = vsub.f32 %v2505_v47, %v6197_v20  ;;  %v6210_v44 = vpop.permute.xlu1 %2492  ;;  %2619 = vmatprep.subr.mxu0 %v6197_v20  ;;  %2723 = vmatpush1.msra.mxu1 %v2722_v53  ;;  %v6213_v58 = vpop.permute.xlu0 %2467  ;;  %v2727_v2 = vsub.f32 %v6188_v30, %v7249_v23 }
 0x461   :  { %7381 = vst [vmem:[#allocation14_spill] sm:$0xff] %v6210_v44  ;;  %7382 = vst [vmem:[#allocation15_spill] sm:$0xff] %v6213_v58  ;;  %v2504_v9 = vsel %vm156_vm3, %v6210_v44, %v2495_v25  ;;  %v2491_v3 = vsel %vm131_vm4, %v6213_v58, %v2471_v10 }
 0x462   :  { %v6226_v36 = vand.u32 4294901760, %v2504_v9  ;;  %v6228_v18 = vand.u32 4294901760, %v2491_v3  ;;  %v2728_v26 = vand.u32 4294901760, %v2727_v2  ;;  %v7250_v27 = vand.u32 4294901760, %v6208_v54 }
 0x464   :  { %v6233_v47 = vsub.f32 %v2504_v9, %v6226_v36  ;;  %v6236_v40 = vsub.f32 %v2491_v3, %v6228_v18  ;;  %v6238_v25 = vpop.permute.xlu1 %2472  ;;  %2621 = vmatpush1.msra.mxu0 %v6226_v36  ;;  %2729 = vmatprep.subr.mxu1 %v2728_v26  ;;  %v6241_v53 = vpop.permute.xlu0 %2447  ;;  %v2739_v2 = vsub.f32 %v6208_v54, %v7250_v27 }
 0x465   :  { %v2480_v9 = vsel %vm131_vm4, %v2471_v10, %v6238_v25  ;;  %2623 = vmatprep.subr.mxu0 %v6182_v13  ;;  %2735 = vmatpush1.msra.mxu1 %v2734_v33  ;;  %v2751_v27 = vsub.f32 %v6205_v6, %v7254_v52 }
 0x466   :  { %v7255_v3 = vand.u32 4294901760, %v6233_v47  ;;  %v6251_v61 = vand.u32 4294901760, %v2480_v9  ;;  %2625 = vmatpush1.msra.mxu0 %v6192_v1  ;;  %v2740_v26 = vand.u32 4294901760, %v2739_v2  ;;  %v7266_v23 = vand.u32 4294901760, %v6236_v40 }
 0x467   :  { %v2757_v2 = vsub.f32 %v6220_v41, %v7261_v12  ;;  %v2752_v56 = vand.u32 4294901760, %v2751_v27 }
 0x468   :  { %v2745_v10 = vsub.f32 %v6233_v47, %v7255_v3  ;;  %v6262_v46 = vsub.f32 %v2480_v9, %v6251_v61  ;;  %v2446_v33 = vpop.permute.xlu1 %2445  ;;  %2741 = vmatprep.subr.mxu1 %v2740_v26  ;;  %v2421_v0 = vpop.permute.xlu0 %2420  ;;  %2627 = vmatprep.subr.mxu0 %v6251_v61  ;;  %v2769_v26 = vsub.f32 %v6236_v40, %v7266_v23 }
 0x469   :  { %v2455_v35 = vsel %vm105_vm6, %v2446_v33, %v6241_v53  ;;  %2629 = vmatpush1.msra.mxu0 %v6228_v18  ;;  %v2758_v4 = vand.u32 4294901760, %v2757_v2 }
 0x46a   :  { %v6271_v52 = vand.u32 4294901760, %v2455_v35  ;;  %v2746_v3 = vand.u32 4294901760, %v2745_v10  ;;  %v7271_v9 = vand.u32 4294901760, %v6262_v46  ;;  %v2770_v2 = vand.u32 4294901760, %v2769_v26 }
 0x46c   :  { %v6278_v17 = vsub.f32 %v2455_v35, %v6271_v52  ;;  %v6280_v60 = vpop.permute.xlu1 %2442  ;;  %2747 = vmatpush1.msra.mxu1 %v2746_v3  ;;  %v6282_v12 = vpop.permute.xlu0 %2417  ;;  %2631 = vmatprep.subr.mxu0 %v6271_v52  ;;  %v2763_v10 = vsub.f32 %v6262_v46, %v7271_v9 }
 0x46d   :  { %7383 = vst [vmem:[#allocation16_spill] sm:$0xff] %v6280_v60  ;;  %7384 = vst [vmem:[#allocation17_spill] sm:$0xff] %v6282_v12  ;;  %v2466_v14 = vsel %vm105_vm6, %v6280_v60, %v2446_v33  ;;  %v2441_v27 = vsel %vm79_vm7, %v6282_v12, %v2421_v0  ;;  %2753 = vmatprep.subr.mxu1 %v2752_v56 }
 0x46e   :  { %v6292_v35 = vand.u32 4294901760, %v2466_v14  ;;  %v6294_v23 = vand.u32 4294901760, %v2441_v27  ;;  %2759 = vmatpush1.msra.mxu1 %v2758_v4  ;;  %v2764_v3 = vand.u32 4294901760, %v2763_v10  ;;  %v7275_v8 = vand.u32 4294901760, %v6278_v17 }
 0x470   :  { %v6298_v29 = vsub.f32 %v2466_v14, %v6292_v35  ;;  %v6301_v9 = vsub.f32 %v2441_v27, %v6294_v23  ;;  %v6303_v33 = vpop.permute.xlu1 %2422  ;;  %2633 = vmatpush1.msra.mxu0 %v6292_v35  ;;  %2765 = vmatprep.subr.mxu1 %v2764_v3  ;;  %v2775_v56 = vsub.f32 %v6278_v17, %v7275_v8  ;;  %v6321_v12 = vpop.permute.xlu0 %2397 }
 0x471   :  { %v2430_v4 = vsel %vm79_vm7, %v2421_v0, %v6303_v33  ;;  %2771 = vmatpush1.msra.mxu1 %v2770_v2 }
 0x472   :  { %v7276_v26 = vand.u32 4294901760, %v6298_v29  ;;  %v6312_v14 = vand.u32 4294901760, %v2430_v4  ;;  %v2776_v10 = vand.u32 4294901760, %v2775_v56 }
 0x474   :  { %v2781_v42 = vsub.f32 %v6298_v29, %v7276_v26  ;;  %v6319_v3 = vsub.f32 %v2430_v4, %v6312_v14  ;;  %v2396_v8 = vpop.permute.xlu1 %2395  ;;  %2635 = vmatprep.subr.mxu0 %v6312_v14  ;;  %2777 = vmatprep.subr.mxu1 %v2776_v10  ;;  %v7385_v26 = vand.u32 4294901760, %v6301_v9 }
 0x475   :  { %v2405_v0 = vsel %vm53_vm8, %v2396_v8, %v6321_v12  ;;  %2637 = vmatpush1.msra.mxu0 %v6294_v23 }
 0x476   :  { %v6327_v2 = vand.u32 4294901760, %v2405_v0  ;;  %v2782_v56 = vand.u32 4294901760, %v2781_v42  ;;  %v7283_v27 = vand.u32 4294901760, %v6319_v3  ;;  %v2793_v4 = vsub.f32 %v6301_v9, %v7385_v26 }
 0x478   :  { %v6334_v60 = vsub.f32 %v2405_v0, %v6327_v2  ;;  %v6336_v58 = vpop.permute.xlu1 %2387  ;;  %2639 = vmatprep.subr.mxu0 %v6327_v2  ;;  %2783 = vmatpush1.msra.mxu1 %v2782_v56  ;;  %v2787_v10 = vsub.f32 %v6319_v3, %v7283_v27  ;;  %v2794_v11 = vand.u32 4294901760, %v2793_v4  ;;  %v6357_v27 = vpop.permute.xlu0 %2573 }
 0x479   :  { %7386 = vst [vmem:[#allocation18_spill] sm:$0xff] %v6336_v58  ;;  %v2416_v42 = vsel %vm53_vm8, %v6336_v58, %v2396_v8  ;;  %v7388_v58 = vand.u32 4294901760, %v6117_v37 }
 0x47a   :  { %v6344_v44 = vand.u32 4294901760, %v2416_v42  ;;  %v2788_v38 = vand.u32 4294901760, %v2787_v10  ;;  %v7284_v26 = vand.u32 4294901760, %v6334_v60 }
 0x47c   :  { %v6348_v0 = vsub.f32 %v2416_v42, %v6344_v44  ;;  %2641 = vmatpush1.msra.mxu0 %v6344_v44  ;;  %2789 = vmatprep.subr.mxu1 %v2788_v38  ;;  %v6351_v56 = vpop.permute.xlu1 %2575  ;;  %v2799_v8 = vsub.f32 %v6334_v60, %v7284_v26  ;;  %v2549_v26 = vpop.permute.xlu0 %2548 }
 0x47d   :  { %2680 = vmatmul.mubr.f32.vlgmr.msra.gmra.mxu0 %v5114_v63  ;;  %2795 = vmatpush1.msra.mxu1 %v2794_v11 }
 0x47e   :  { %v7285_v4 = vand.u32 4294901760, %v6348_v0  ;;  %2864 = vmatprep.subr.mxu0 %v6129_v50  ;;  %2948 = vmatprep.mubr.f32.mxu0 %v7315_v16  ;;  %v2800_v38 = vand.u32 4294901760, %v2799_v8 }
 0x47f   :  { %2867 = vmatpush1.msra.mxu0 %v6117_v37 }
 0x480   :  { %v2805_v10 = vsub.f32 %v6348_v0, %v7285_v4  ;;  %2870 = vmatprep.subr.mxu0 %v6142_v43  ;;  %2801 = vmatprep.subr.mxu1 %v2800_v38  ;;  %v6369_v42 = vpop.permute.xlu1 %2550  ;;  %v2524_v38 = vpop.permute.xlu0 %2523  ;;  %v7387_v4 = vand.u32 4294901760, %v6129_v50  ;;  %v7391_v50 = vand.u32 4294901760, %v6188_v30  ;;  %v2581_v43 = vsel %vm234_vm0, %v6119_v39, %v6357_v27 }
 0x481   :  { %2873 = vmatpush1.msra.mxu0 %v6162_v34  ;;  %v2582_v34 = vsel %vm234_vm0, %v6357_v27, %v6351_v56  ;;  %v2557_v39 = vsel %vm208_vm1, %v2549_v26, %v6369_v42  ;;  %v7397_v27 = vand.u32 4294901760, %v6262_v46 }
 0x482   :  { %2876 = vmatprep.subr.mxu0 %v6188_v30  ;;  %v2806_v11 = vand.u32 4294901760, %v2805_v10  ;;  %v6437_v30 = vand.u32 4294901760, %v2581_v43 }
 0x483   :  { %2879 = vmatpush1.msra.mxu0 %v6165_v7 }
 0x484   :  { %2882 = vmatprep.subr.mxu0 %v6208_v54  ;;  %2807 = vmatpush1.msra.mxu1 %v2806_v11  ;;  %v6381_v8 = vpop.permute.xlu1 %2525  ;;  %v2499_v11 = vpop.permute.xlu0 %2498 }
 0x485   :  { %2885 = vmatpush1.msra.mxu0 %v6233_v47  ;;  %2842 = vmatmul.mubr.f32.vlgmr.msra.gmra.mxu1 %v5030_v49 }
 0x486   :  { %2888 = vmatprep.subr.mxu0 %v6205_v6  ;;  %2972 = vmatprep.subr.mxu1 %v6125_v51 }
 0x487   :  { %2891 = vmatpush1.msra.mxu0 %v6220_v41  ;;  %2974 = vmatpush1.msra.mxu1 %v6114_v55 }
 0x488   :  { %2894 = vmatprep.subr.mxu0 %v6262_v46  ;;  %2976 = vmatprep.subr.mxu1 %v6135_v57  ;;  %v6395_v10 = vpop.permute.xlu1 %2500  ;;  %v2475_v37 = vpop.permute.xlu0 %2474  ;;  %v7399_v46 = vand.u32 4294901760, %v6278_v17 }
 0x489   :  { %2897 = vmatpush1.msra.mxu0 %v6236_v40  ;;  %2978 = vmatpush1.msra.mxu1 %v6156_v22 }
 0x48a   :  { %2900 = vmatprep.subr.mxu0 %v6278_v17  ;;  %2980 = vmatprep.subr.mxu1 %v6178_v21  ;;  %v2507_v17 = vsel %vm156_vm3, %v2499_v11, %v6395_v10 }
 0x48b   :  { %2903 = vmatpush1.msra.mxu0 %v6298_v29  ;;  %2982 = vmatpush1.msra.mxu1 %v6158_v48 }
 0x48c   :  { %2906 = vmatprep.subr.mxu0 %v6319_v3  ;;  %2984 = vmatprep.subr.mxu1 %v6197_v20  ;;  %v6413_v5 = vpop.permute.xlu1 %2476 }
 0x48d   :  { %2909 = vmatpush1.msra.mxu0 %v6301_v9  ;;  %2986 = vmatpush1.msra.mxu1 %v6226_v36 }
 0x48e   :  { %2912 = vmatprep.subr.mxu0 %v6334_v60  ;;  %2988 = vmatprep.subr.mxu1 %v6182_v13 }
 0x48f   :  { %2915 = vmatpush1.msra.mxu0 %v6348_v0  ;;  %2990 = vmatpush1.msra.mxu1 %v6192_v1 }
 0x490   :  { %2951 = vmatmul.mubr.f32.vlgmr.msra.gmra.mxu0 %v5051_v32  ;;  %2992 = vmatprep.subr.mxu1 %v6251_v61 }
 0x491   :  { %3066 = vmatprep.subr.mxu0 %v7387_v4  ;;  %2994 = vmatpush1.msra.mxu1 %v6228_v18  ;;  %v2450_v4 = vpop.permute.xlu0 %2449 }
 0x492   :  { %3070 = vmatpush1.msra.mxu0 %v7388_v58  ;;  %2996 = vmatprep.subr.mxu1 %v6271_v52  ;;  %v7392_v58 = vand.u32 4294901760, %v6165_v7  ;;  %v7395_v7 = vand.u32 4294901760, %v6205_v6  ;;  %v2556_v6 = vsel %vm208_vm1, %v6121_v24, %v2549_v26  ;;  %v6466_v24 = vand.u32 4294901760, %v6004_v19 }
 0x493   :  { %3074 = vmatprep.subr.mxu0 %v7389_v45  ;;  %2998 = vmatpush1.msra.mxu1 %v6292_v35  ;;  %v7393_v45 = vand.u32 4294901760, %v6208_v54  ;;  %v6441_v54 = vpop.permute.xlu1 %2451  ;;  %v7400_v26 = vand.u32 4294901760, %v6298_v29 }
 0x494   :  { %3078 = vmatpush1.msra.mxu0 %v7390_v31  ;;  %3000 = vmatprep.subr.mxu1 %v6312_v14  ;;  %v7394_v31 = vand.u32 4294901760, %v6233_v47  ;;  %v7396_v47 = vand.u32 4294901760, %v6220_v41  ;;  %v6458_v41 = vand.u32 4294901760, %v2557_v39 }
 0x495   :  { %3082 = vmatprep.subr.mxu0 %v7391_v50  ;;  %3002 = vmatpush1.msra.mxu1 %v6294_v23  ;;  %v7398_v50 = vand.u32 4294901760, %v6236_v40  ;;  %v2531_v40 = vsel %vm182_vm2, %v6167_v15, %v2524_v38  ;;  %v2506_v15 = vsel %vm156_vm3, %v6170_v28, %v2499_v11  ;;  %v7403_v28 = vand.u32 4294901760, %v6334_v60 }
 0x496   :  { %3086 = vmatpush1.msra.mxu0 %v7392_v58  ;;  %3004 = vmatprep.subr.mxu1 %v6327_v2  ;;  %v6456_v58 = vand.u32 4294901760, %v6053_v59  ;;  %v6512_v11 = vand.u32 4294901760, %v2507_v17  ;;  %v2482_v60 = vsel %vm131_vm4, %v2475_v37, %v6413_v5 }
 0x497   :  { %3090 = vmatprep.subr.mxu0 %v7393_v45  ;;  %3006 = vmatpush1.msra.mxu1 %v6344_v44  ;;  %v6476_v45 = vand.u32 4294901760, %v2556_v6  ;;  %v6490_v29 = vpop.permute.xlu1 %2426 }
 0x498   :  { %3039 = vmatprep.mubr.f32.mxu1 %v7315_v16  ;;  %3094 = vmatpush1.msra.mxu0 %v7394_v31  ;;  %v6502_v31 = vsub.f32 %v2557_v39, %v6458_v41 }
 0x499   :  { %3043 = vmatmul.mubr.f32.vlgmr.msra.gmra.mxu1 %v5074_v62  ;;  %3098 = vmatprep.subr.mxu0 %v7395_v7  ;;  %v6518_v7 = vsub.f32 %v2556_v6, %v6476_v45  ;;  %v2456_v6 = vsel %vm105_vm6, %v6241_v53, %v2450_v4 }
 0x49a   :  { %3190 = vmatprep.subr.mxu1 %v6125_v51  ;;  %3102 = vmatpush1.msra.mxu0 %v7396_v47  ;;  %v6450_v51 = vand.u32 4294901760, %v2582_v34 }
 0x49b   :  { %3192 = vmatpush1.msra.mxu1 %v6114_v55  ;;  %3106 = vmatprep.subr.mxu0 %v7397_v27  ;;  %v2532_v55 = vsel %vm182_vm2, %v2524_v38, %v6381_v8  ;;  %v7402_v38 = vand.u32 4294901760, %v6301_v9  ;;  %v6548_v27 = vsub.f32 %v2507_v17, %v6512_v11 }
 0x49c   :  { %3194 = vmatprep.subr.mxu1 %v6135_v57  ;;  %3110 = vmatpush1.msra.mxu0 %v7398_v50  ;;  %v6469_v57 = vsub.f32 %v2581_v43, %v6437_v30  ;;  %v6484_v43 = vsub.f32 %v2582_v34, %v6450_v51  ;;  %v2425_v34 = vpop.permute.xlu0 %2424  ;;  %v6552_v50 = vand.u32 4294901760, %v2482_v60 }
 0x49d   :  { %3196 = vmatpush1.msra.mxu1 %v6156_v22  ;;  %3114 = vmatprep.subr.mxu0 %v7399_v46  ;;  %v7401_v22 = vand.u32 4294901760, %v6319_v3  ;;  %v6499_v3 = vand.u32 4294901760, %v2531_v40  ;;  %v2432_v17 = vsel %vm79_vm7, %v2425_v34, %v6490_v29  ;;  %v2431_v53 = vsel %vm79_vm7, %v6303_v33, %v2425_v34 }
 0x49e   :  { %3198 = vmatprep.subr.mxu1 %v6178_v21  ;;  %3118 = vmatpush1.msra.mxu0 %v7400_v26  ;;  %v6488_v21 = vand.u32 4294901760, %v2532_v55  ;;  %v7292_v9 = vand.u32 4294901760, %v6469_v57 }
 0x49f   :  { %3200 = vmatpush1.msra.mxu1 %v6158_v48  ;;  %3122 = vmatprep.subr.mxu0 %v7401_v22  ;;  %v6497_v48 = vsub.f32 %v6053_v59, %v6456_v58  ;;  %v7404_v59 = vand.u32 4294901760, %v6348_v0  ;;  %v7294_v0 = vand.u32 4294901760, %v6484_v43  ;;  %v6536_v47 = vsub.f32 %v2531_v40, %v6499_v3 }
 0x4a0   :  { %3202 = vmatprep.subr.mxu1 %v6197_v20  ;;  %3126 = vmatpush1.msra.mxu0 %v7402_v38  ;;  %v6509_v20 = vsub.f32 %v6004_v19, %v6466_v24  ;;  %v6527_v19 = vsub.f32 %v2532_v55, %v6488_v21  ;;  %v6554_v55 = vpop.permute.xlu1 %2401  ;;  %v2400_v26 = vpop.permute.xlu0 %2399  ;;  %v6579_v38 = vand.u32 4294901760, %v2456_v6 }
 0x4a1   :  { %3204 = vmatpush1.msra.mxu1 %v6226_v36  ;;  %3130 = vmatprep.subr.mxu0 %v7403_v28  ;;  %v6520_v36 = vand.u32 4294901760, %v2506_v15  ;;  %v2406_v34 = vsel %vm53_vm8, %v6321_v12, %v2400_v26  ;;  %v6593_v28 = vand.u32 4294901760, %v2432_v17 }
 0x4a2   :  { %3206 = vmatprep.subr.mxu1 %v6182_v13  ;;  %3134 = vmatpush1.msra.mxu0 %v7404_v59  ;;  %v2481_v13 = vsel %vm131_vm4, %v6238_v25, %v2475_v37  ;;  %v7291_v25 = vand.u32 4294901760, %v6502_v31  ;;  %v7295_v22 = vand.u32 4294901760, %v6527_v19  ;;  %v7297_v59 = vand.u32 4294901760, %v6548_v27 }
 0x4a3   :  { %3167 = vmatprep.mubr.f32.mxu0 %v7315_v16  ;;  %3208 = vmatpush1.msra.mxu1 %v6192_v1  ;;  %v2457_v1 = vsel %vm105_vm6, %v2450_v4, %v6441_v54  ;;  %v6560_v46 = vsub.f32 %v2506_v15, %v6520_v36  ;;  %v6562_v40 = vand.u32 4294901760, %v2481_v13  ;;  %v7296_v15 = vand.u32 4294901760, %v6536_v47 }
 0x4a4   :  { %3169 = vmatmul.mubr.f32.vlgmr.msra.gmra.mxu0 %v5030_v49  ;;  %3210 = vmatprep.subr.mxu1 %v6251_v61  ;;  %v3382_v61 = vsub.f32 %v6469_v57, %v7292_v9  ;;  %v6570_v4 = vand.u32 4294901760, %v2457_v1  ;;  %v3388_v33 = vsub.f32 %v6502_v31, %v7291_v25  ;;  %v6605_v9 = vand.u32 4294901760, %v2431_v53 }
 0x4a5   :  { %3280 = vmatprep.subr.mxu0 %v6450_v51  ;;  %3212 = vmatpush1.msra.mxu1 %v6228_v18  ;;  %v7293_v18 = vand.u32 4294901760, %v6518_v7  ;;  %v7298_v25 = vand.u32 4294901760, %v6560_v46 }
 0x4a6   :  { %3282 = vmatpush1.msra.mxu0 %v6437_v30  ;;  %3214 = vmatprep.subr.mxu1 %v6271_v52  ;;  %v3376_v52 = vsub.f32 %v6484_v43, %v7294_v0  ;;  %v6610_v12 = vsub.f32 %v2457_v1, %v6570_v4  ;;  %v6625_v1 = vand.u32 4294901760, %v2406_v34  ;;  %v3383_v0 = vand.u32 4294901760, %v3382_v61 }
 0x4a7   :  { %3284 = vmatprep.subr.mxu0 %v6458_v41  ;;  %3216 = vmatpush1.msra.mxu1 %v6292_v35  ;;  %v2407_v35 = vsel %vm53_vm8, %v2400_v26, %v6554_v55  ;;  %v3418_v37 = vsub.f32 %v6560_v46, %v7298_v25  ;;  %v6642_v61 = vsub.f32 %v2431_v53, %v6605_v9 }
 0x4a8   :  { %3286 = vmatpush1.msra.mxu0 %v6476_v45  ;;  %3218 = vmatprep.subr.mxu1 %v6312_v14  ;;  %v6589_v14 = vsub.f32 %v2482_v60, %v6552_v50  ;;  %v6603_v60 = vsub.f32 %v2481_v13, %v6562_v40  ;;  %v3377_v26 = vand.u32 4294901760, %v3376_v52  ;;  %v3400_v13 = vsub.f32 %v6527_v19, %v7295_v22 }
 0x4a9   :  { %3288 = vmatprep.subr.mxu0 %v6488_v21  ;;  %3220 = vmatpush1.msra.mxu1 %v6294_v23  ;;  %v3394_v23 = vsub.f32 %v6518_v7, %v7293_v18  ;;  %v3406_v18 = vsub.f32 %v6536_v47, %v7296_v15  ;;  %v6630_v52 = vsub.f32 %v2432_v17, %v6593_v28  ;;  %v3389_v22 = vand.u32 4294901760, %v3388_v33 }
 0x4aa   :  { %3290 = vmatpush1.msra.mxu0 %v6499_v3  ;;  %3222 = vmatprep.subr.mxu1 %v6327_v2  ;;  %v6612_v2 = vand.u32 4294901760, %v2407_v35  ;;  %v3412_v15 = vsub.f32 %v6548_v27, %v7297_v59  ;;  %v7405_v59 = vand.u32 4294901760, %v6497_v48  ;;  %v7300_v39 = vand.u32 4294901760, %v6610_v12 }
 0x4ab   :  { %3292 = vmatprep.subr.mxu0 %v6512_v11  ;;  %3224 = vmatpush1.msra.mxu1 %v6344_v44  ;;  %v6623_v44 = vsub.f32 %v2456_v6, %v6579_v38  ;;  %v7299_v6 = vand.u32 4294901760, %v6589_v14  ;;  %v3395_v17 = vand.u32 4294901760, %v3394_v23 }
 0x4ac   :  { %3257 = vmatprep.mubr.f32.mxu1 %v7315_v16  ;;  %3294 = vmatpush1.msra.mxu0 %v6520_v36  ;;  %v6646_v33 = vsub.f32 %v2407_v35, %v6612_v2  ;;  %v3424_v25 = vsub.f32 %v6497_v48, %v7405_v59  ;;  %v3407_v35 = vand.u32 4294901760, %v3406_v18 }
 0x4ad   :  { %3259 = vmatmul.mubr.f32.vlgmr.msra.gmra.mxu1 %v5030_v49  ;;  %3296 = vmatprep.subr.mxu0 %v6456_v58  ;;  %v3436_v59 = vsub.f32 %v6589_v14, %v7299_v6  ;;  %v7408_v53 = vand.u32 4294901760, %v6623_v44 }
 0x4ae   :  { %3378 = vmatprep.subr.mxu1 %v3377_v26  ;;  %3298 = vmatpush1.msra.mxu0 %v6466_v24  ;;  %v3401_v26 = vand.u32 4294901760, %v3400_v13  ;;  %v3413_v13 = vand.u32 4294901760, %v3412_v15  ;;  %v3425_v15 = vand.u32 4294901760, %v3424_v25 }
 0x4af   :  { %3384 = vmatpush1.msra.mxu1 %v3383_v0  ;;  %3300 = vmatprep.subr.mxu0 %v6552_v50  ;;  %v6655_v0 = vsub.f32 %v2406_v34, %v6625_v1  ;;  %v7407_v34 = vand.u32 4294901760, %v6603_v60  ;;  %v3437_v25 = vand.u32 4294901760, %v3436_v59 }
 0x4b0   :  { %3390 = vmatprep.subr.mxu1 %v3389_v22  ;;  %3302 = vmatpush1.msra.mxu0 %v6562_v40  ;;  %v7406_v22 = vand.u32 4294901760, %v6509_v20 }
 0x4b1   :  { %3396 = vmatpush1.msra.mxu1 %v3395_v17  ;;  %3304 = vmatprep.subr.mxu0 %v6570_v4  ;;  %v3442_v17 = vsub.f32 %v6603_v60, %v7407_v34  ;;  %v3454_v34 = vsub.f32 %v6623_v44, %v7408_v53  ;;  %v3477_v18 = vand.u32 4294901760, %v6655_v0 }
 0x4b2   :  { %v3430_v23 = vsub.f32 %v6509_v20, %v7406_v22  ;;  %3402 = vmatprep.subr.mxu1 %v3401_v26  ;;  %3306 = vmatpush1.msra.mxu0 %v6579_v38  ;;  %v3419_v22 = vand.u32 4294901760, %v3418_v37  ;;  %v3448_v26 = vsub.f32 %v6610_v12, %v7300_v39  ;;  %v7410_v39 = vand.u32 4294901760, %v6642_v61 }
 0x4b3   :  { %3408 = vmatpush1.msra.mxu1 %v3407_v35  ;;  %3308 = vmatprep.subr.mxu0 %v6593_v28  ;;  %v7409_v35 = vand.u32 4294901760, %v6630_v52  ;;  %v3443_v53 = vand.u32 4294901760, %v3442_v17 }
 0x4b4   :  { %3414 = vmatprep.subr.mxu1 %v3413_v13  ;;  %3310 = vmatpush1.msra.mxu0 %v6605_v9  ;;  %v3431_v37 = vand.u32 4294901760, %v3430_v23  ;;  %v3466_v6 = vsub.f32 %v6642_v61, %v7410_v39  ;;  %v3449_v23 = vand.u32 4294901760, %v3448_v26  ;;  %v3455_v39 = vand.u32 4294901760, %v3454_v34  ;;  %v2578_v34 = vpop.permute.xlu0 %2577 }
 0x4b5   :  { %3420 = vmatpush1.msra.mxu1 %v3419_v22  ;;  %3312 = vmatprep.subr.mxu0 %v6612_v2  ;;  %v3460_v13 = vsub.f32 %v6630_v52, %v7409_v35  ;;  %v7411_v22 = vand.u32 4294901760, %v6646_v33  ;;  %v7413_v35 = vand.u32 4294901760, %v6469_v57 }
 0x4b6   :  { %3426 = vmatprep.subr.mxu1 %v3425_v15  ;;  %3314 = vmatpush1.msra.mxu0 %v6625_v1  ;;  %v3478_v15 = vsub.f32 %v6655_v0, %v3477_v18  ;;  %v3467_v26 = vand.u32 4294901760, %v3466_v6  ;;  %v7412_v6 = vand.u32 4294901760, %v6484_v43 }
 0x4b7   :  { %3347 = vmatprep.mubr.f32.mxu0 %v7315_v16  ;;  %3432 = vmatpush1.msra.mxu1 %v3431_v37  ;;  %v3472_v59 = vsub.f32 %v6646_v33, %v7411_v22  ;;  %v3461_v17 = vand.u32 4294901760, %v3460_v13  ;;  %v7414_v13 = vand.u32 4294901760, %v6502_v31  ;;  %v7418_v22 = vand.u32 4294901760, %v6548_v27 }
 0x4b8   :  { %3353 = vmatmul.mubr.f32.vlgmr.msra.gmra.mxu0 %v5114_v63  ;;  %3438 = vmatprep.subr.mxu1 %v3437_v25  ;;  %v3479_v25 = vand.u32 4294901760, %v3478_v15  ;;  %v7421_v15 = vand.u32 4294901760, %v6497_v48 }
 0x4b9   :  { %3537 = vmatprep.subr.mxu0 %v6484_v43  ;;  %3444 = vmatpush1.msra.mxu1 %v3443_v53  ;;  %v3473_v37 = vand.u32 4294901760, %v3472_v59  ;;  %v2553_v53 = vpop.permute.xlu1 %2552  ;;  %v7416_v43 = vand.u32 4294901760, %v6527_v19  ;;  %v7420_v59 = vld [vmem:[#allocation11_spill] sm:$0xff] }
 0x4ba   :  { %3540 = vmatpush1.msra.mxu0 %v6469_v57  ;;  %3450 = vmatprep.subr.mxu1 %v3449_v23  ;;  %v7415_v23 = vand.u32 4294901760, %v6518_v7  ;;  %v7417_v57 = vand.u32 4294901760, %v6536_v47 }
 0x4bb   :  { %3543 = vmatprep.subr.mxu0 %v6502_v31  ;;  %3456 = vmatpush1.msra.mxu1 %v3455_v39  ;;  %v2583_v31 = vsel %vm234_vm0, %v6351_v56, %v2578_v34  ;;  %v7422_v39 = vand.u32 4294901760, %v6509_v20 }
 0x4bc   :  { %3546 = vmatpush1.msra.mxu0 %v6518_v7  ;;  %3462 = vmatprep.subr.mxu1 %v3461_v17  ;;  %v2528_v7 = vpop.permute.xlu0 %2527  ;;  %v6760_v56 = vand.u32 4294901760, %v2583_v31  ;;  %v7423_v17 = vld [vmem:[#allocation12_spill] sm:$0xff] }
 0x4bd   :  { %3549 = vmatprep.subr.mxu0 %v6527_v19  ;;  %3468 = vmatpush1.msra.mxu1 %v3467_v26  ;;  %v7419_v19 = vand.u32 4294901760, %v6560_v46  ;;  %v7424_v26 = vand.u32 4294901760, %v6589_v14 }
 0x4be   :  { %3552 = vmatpush1.msra.mxu0 %v6536_v47  ;;  %3474 = vmatprep.subr.mxu1 %v3473_v37  ;;  %v2591_v47 = vsel %vm234_vm0, %v2578_v34, %v7420_v59 }
 0x4bf   :  { %3555 = vmatprep.subr.mxu0 %v6548_v27  ;;  %3480 = vmatpush1.msra.mxu1 %v3479_v25  ;;  %v2503_v27 = vpop.permute.xlu1 %2502  ;;  %v6770_v37 = vand.u32 4294901760, %v2591_v47 }
 0x4c0   :  { %3513 = vmatprep.mubr.f32.mxu1 %v7315_v16  ;;  %3558 = vmatpush1.msra.mxu0 %v6560_v46  ;;  %v2566_v46 = vsel %vm208_vm1, %v2553_v53, %v7423_v17 }
 0x4c1   :  { %3515 = vmatmul.mubr.f32.vlgmr.msra.gmra.mxu1 %v5030_v49  ;;  %3561 = vmatprep.subr.mxu0 %v6497_v48  ;;  %v2558_v48 = vsel %vm208_vm1, %v6369_v42, %v2553_v53  ;;  %v6789_v42 = vsub.f32 %v2583_v31, %v6760_v56  ;;  %v7430_v53 = vand.u32 4294901760, %v6623_v44  ;;  %v7433_v31 = vand.u32 4294901760, %v6642_v61 }
 0x4c2   :  { %3645 = vmatprep.subr.mxu1 %v6450_v51  ;;  %3564 = vmatpush1.msra.mxu0 %v6509_v20  ;;  %v7426_v20 = vld [vmem:[#allocation8_spill] sm:$0xff] }
 0x4c3   :  { %3647 = vmatpush1.msra.mxu1 %v6437_v30  ;;  %3567 = vmatprep.subr.mxu0 %v6589_v14  ;;  %v6778_v25 = vand.u32 4294901760, %v7426_v20  ;;  %v7429_v14 = vld [vmem:[#allocation10_spill] sm:$0xff] }
 0x4c4   :  { %3649 = vmatprep.subr.mxu1 %v6458_v41  ;;  %3570 = vmatpush1.msra.mxu0 %v6603_v60 }
 0x4c5   :  { %3651 = vmatpush1.msra.mxu1 %v6476_v45  ;;  %3573 = vmatprep.subr.mxu0 %v6610_v12 }
 0x4c6   :  { %3653 = vmatprep.subr.mxu1 %v6488_v21  ;;  %3576 = vmatpush1.msra.mxu0 %v6623_v44  ;;  %v2454_v44 = vpop.permute.xlu1 %2453 }
 0x4c7   :  { %3655 = vmatpush1.msra.mxu1 %v6499_v3  ;;  %3579 = vmatprep.subr.mxu0 %v6630_v52 }
 0x4c8   :  { %3657 = vmatprep.subr.mxu1 %v6512_v11  ;;  %3582 = vmatpush1.msra.mxu0 %v6642_v61 }
 0x4c9   :  { %3659 = vmatpush1.msra.mxu1 %v6520_v36  ;;  %3585 = vmatprep.subr.mxu0 %v6646_v33 }
 0x4ca   :  { %3661 = vmatprep.subr.mxu1 %v6456_v58  ;;  %3588 = vmatpush1.msra.mxu0 %v6655_v0 }
 0x4cb   :  { %3621 = vmatprep.mubr.f32.mxu0 %v7315_v16  ;;  %3663 = vmatpush1.msra.mxu1 %v6466_v24 }
 0x4cc   :  { %3624 = vmatmul.mubr.f32.vlgmr.msra.gmra.mxu0 %v5051_v32  ;;  %3665 = vmatprep.subr.mxu1 %v6552_v50 }
 0x4cd   :  { %3739 = vmatprep.subr.mxu0 %v7412_v6  ;;  %3667 = vmatpush1.msra.mxu1 %v6562_v40  ;;  %v7427_v6 = vld [vmem:[#allocation13_spill] sm:$0xff] }
 0x4ce   :  { %3743 = vmatpush1.msra.mxu0 %v7413_v35  ;;  %3669 = vmatprep.subr.mxu1 %v6570_v4  ;;  %v2541_v34 = vsel %vm182_vm2, %v2528_v7, %v7427_v6  ;;  %v6786_v35 = vand.u32 4294901760, %v7429_v14 }
 0x4cf   :  { %3747 = vmatprep.subr.mxu0 %v7414_v13  ;;  %3671 = vmatpush1.msra.mxu1 %v6579_v38  ;;  %v2479_v13 = vpop.permute.xlu0 %2478 }
 0x4d0   :  { %3751 = vmatpush1.msra.mxu0 %v7415_v23  ;;  %3673 = vmatprep.subr.mxu1 %v6593_v28 }
 0x4d1   :  { %3755 = vmatprep.subr.mxu0 %v7416_v43  ;;  %3675 = vmatpush1.msra.mxu1 %v6605_v9  ;;  %v7432_v43 = vand.u32 4294901760, %v6630_v52 }
 0x4d2   :  { %3759 = vmatpush1.msra.mxu0 %v7417_v57  ;;  %3677 = vmatprep.subr.mxu1 %v6612_v2  ;;  %v6808_v57 = vand.u32 4294901760, %v2541_v34 }
 0x4d3   :  { %3763 = vmatprep.subr.mxu0 %v7418_v22  ;;  %3679 = vmatpush1.msra.mxu1 %v6625_v1  ;;  %v7434_v22 = vand.u32 4294901760, %v6646_v33 }
 0x4d4   :  { %3712 = vmatprep.mubr.f32.mxu1 %v7315_v16  ;;  %3767 = vmatpush1.msra.mxu0 %v7419_v19 }
 0x4d5   :  { %3716 = vmatmul.mubr.f32.vlgmr.msra.gmra.mxu1 %v5074_v62  ;;  %3771 = vmatprep.subr.mxu0 %v7421_v15  ;;  %v2483_v15 = vsel %vm131_vm4, %v6413_v5, %v2479_v13 }
 0x4d6   :  { %3863 = vmatprep.subr.mxu1 %v6450_v51  ;;  %3775 = vmatpush1.msra.mxu0 %v7422_v39  ;;  %v7425_v51 = vand.u32 4294901760, %v6603_v60  ;;  %v6793_v60 = vand.u32 4294901760, %v2566_v46 }
 0x4d7   :  { %3865 = vmatpush1.msra.mxu1 %v6437_v30  ;;  %3779 = vmatprep.subr.mxu0 %v7424_v26  ;;  %v7428_v30 = vand.u32 4294901760, %v6610_v12  ;;  %v7431_v12 = vld [vmem:[#allocation14_spill] sm:$0xff]  ;;  %v2458_v26 = vsel %vm105_vm6, %v6441_v54, %v2454_v44 }
 0x4d8   :  { %3867 = vmatprep.subr.mxu1 %v6458_v41  ;;  %3783 = vmatpush1.msra.mxu0 %v7425_v51  ;;  %v2533_v41 = vsel %vm182_vm2, %v6381_v8, %v2528_v7  ;;  %v2516_v23 = vsel %vm156_vm3, %v2503_v27, %v7431_v12  ;;  %v6806_v8 = vsub.f32 %v2591_v47, %v6770_v37  ;;  %v7435_v7 = vld [vmem:[#allocation15_spill] sm:$0xff] }
 0x4d9   :  { %3869 = vmatpush1.msra.mxu1 %v6476_v45  ;;  %3787 = vmatprep.subr.mxu0 %v7428_v30  ;;  %v6798_v45 = vand.u32 4294901760, %v2558_v48  ;;  %v6819_v52 = vand.u32 4294901760, %v2533_v41  ;;  %v6830_v61 = vsub.f32 %v2566_v46, %v6793_v60  ;;  %v2484_v19 = vsel %vm131_vm4, %v2479_v13, %v7435_v7 }
 0x4da   :  { %3871 = vmatprep.subr.mxu1 %v6488_v21  ;;  %3791 = vmatpush1.msra.mxu0 %v7430_v53  ;;  %v2508_v21 = vsel %vm156_vm3, %v6395_v10, %v2503_v27  ;;  %v6826_v10 = vsub.f32 %v7429_v14, %v6786_v35  ;;  %v6834_v59 = vand.u32 4294901760, %v2516_v23  ;;  %v6847_v47 = vsub.f32 %v2541_v34, %v6808_v57  ;;  %v2429_v27 = vpop.permute.xlu0 %2428  ;;  %v7437_v34 = vld [vmem:[#allocation17_spill] sm:$0xff] }
 0x4db   :  { %3873 = vmatpush1.msra.mxu1 %v6499_v3  ;;  %3795 = vmatprep.subr.mxu0 %v7432_v43  ;;  %v6817_v3 = vsub.f32 %v7426_v20, %v6778_v25  ;;  %v6842_v33 = vand.u32 4294901760, %v2508_v21  ;;  %v6858_v39 = vand.u32 4294901760, %v2484_v19  ;;  %v4060_v51 = vand.u32 4294901760, %v6830_v61 }
 0x4dc   :  { %3875 = vmatprep.subr.mxu1 %v6512_v11  ;;  %3799 = vmatpush1.msra.mxu0 %v7433_v31  ;;  %v4054_v11 = vand.u32 4294901760, %v6789_v42  ;;  %v7306_v5 = vand.u32 4294901760, %v6826_v10  ;;  %v6869_v46 = vsub.f32 %v2516_v23, %v6834_v59  ;;  %v6877_v20 = vand.u32 4294901760, %v2483_v15 }
 0x4dd   :  { %3877 = vmatpush1.msra.mxu1 %v6520_v36  ;;  %3803 = vmatprep.subr.mxu0 %v7434_v22  ;;  %v6840_v36 = vsub.f32 %v2558_v48, %v6798_v45  ;;  %v7303_v0 = vand.u32 4294901760, %v6817_v3  ;;  %v2404_v48 = vpop.permute.xlu1 %2403  ;;  %v6880_v6 = vsub.f32 %v2508_v21, %v6842_v33  ;;  %v2434_v30 = vsel %vm79_vm7, %v2429_v27, %v7437_v34 }
 0x4de   :  { %3879 = vmatprep.subr.mxu1 %v6456_v58  ;;  %3807 = vmatpush1.msra.mxu0 %v3477_v18  ;;  %v4048_v58 = vand.u32 4294901760, %v6806_v8  ;;  %v6856_v18 = vsub.f32 %v2533_v41, %v6819_v52  ;;  %v2433_v54 = vsel %vm79_vm7, %v6490_v29, %v2429_v27  ;;  %v4072_v41 = vand.u32 4294901760, %v6847_v47  ;;  %v7438_v29 = vld [vmem:[#allocation18_spill] sm:$0xff] }
 0x4df   :  { %3840 = vmatprep.mubr.f32.mxu0 %v7315_v16  ;;  %3881 = vmatpush1.msra.mxu1 %v6466_v24  ;;  %v7436_v24 = vld [vmem:[#allocation16_spill] sm:$0xff]  ;;  %v6898_v53 = vsub.f32 %v2484_v19, %v6858_v39  ;;  %v2409_v12 = vsel %vm53_vm8, %v2404_v48, %v7438_v29  ;;  %v2408_v23 = vsel %vm53_vm8, %v6554_v55, %v2404_v48  ;;  %v7301_v21 = vand.u32 4294901760, %v6869_v46 }
 0x4e0   :  { %3842 = vmatmul.mubr.f32.vlgmr.msra.gmra.mxu0 %v5030_v49  ;;  %3883 = vmatprep.subr.mxu1 %v6552_v50  ;;  %v2459_v17 = vsel %vm105_vm6, %v2454_v44, %v7436_v24  ;;  %v4055_v50 = vsub.f32 %v6789_v42, %v4054_v11  ;;  %v4049_v14 = vsub.f32 %v6806_v8, %v4048_v58  ;;  %v4078_v13 = vand.u32 4294901760, %v6856_v18 }
 0x4e1   :  { %3953 = vmatprep.subr.mxu0 %v6770_v37  ;;  %3885 = vmatpush1.msra.mxu1 %v6562_v40  ;;  %v4066_v40 = vand.u32 4294901760, %v6840_v36  ;;  %v4061_v43 = vsub.f32 %v6830_v61, %v4060_v51  ;;  %v7302_v31 = vand.u32 4294901760, %v6880_v6  ;;  %v6923_v55 = vand.u32 4294901760, %v2433_v54 }
 0x4e2   :  { %3955 = vmatpush1.msra.mxu0 %v6760_v56  ;;  %3887 = vmatprep.subr.mxu1 %v6570_v4  ;;  %v6888_v4 = vand.u32 4294901760, %v2459_v17  ;;  %v6930_v22 = vand.u32 4294901760, %v2409_v12  ;;  %v4050_v7 = vand.u32 4294901760, %v4049_v14  ;;  %v4073_v19 = vsub.f32 %v6847_v47, %v4072_v41 }
 0x4e3   :  { %3957 = vmatprep.subr.mxu0 %v6793_v60  ;;  %3889 = vmatpush1.msra.mxu1 %v6579_v38  ;;  %v6900_v38 = vand.u32 4294901760, %v2458_v26  ;;  %v4067_v44 = vsub.f32 %v6840_v36, %v4066_v40  ;;  %v6943_v27 = vand.u32 4294901760, %v2408_v23  ;;  %v4056_v24 = vand.u32 4294901760, %v4055_v50 }
 0x4e4   :  { %3959 = vmatpush1.msra.mxu0 %v6798_v45  ;;  %3891 = vmatprep.subr.mxu1 %v6593_v28  ;;  %v6906_v28 = vand.u32 4294901760, %v2434_v30  ;;  %v4062_v48 = vand.u32 4294901760, %v4061_v43  ;;  %v4085_v34 = vsub.f32 %v6869_v46, %v7301_v21  ;;  %v4091_v29 = vsub.f32 %v6880_v6, %v7302_v31 }
 0x4e5   :  { %3961 = vmatprep.subr.mxu0 %v6808_v57  ;;  %3893 = vmatpush1.msra.mxu1 %v6605_v9  ;;  %v6920_v9 = vsub.f32 %v2483_v15, %v6877_v20  ;;  %v4079_v15 = vsub.f32 %v6856_v18, %v4078_v13  ;;  %v6960_v50 = vsub.f32 %v2433_v54, %v6923_v55 }
 0x4e6   :  { %3963 = vmatpush1.msra.mxu0 %v6819_v52  ;;  %3895 = vmatprep.subr.mxu1 %v6612_v2  ;;  %v6928_v2 = vsub.f32 %v2459_v17, %v6888_v4  ;;  %v6948_v17 = vsub.f32 %v2434_v30, %v6906_v28  ;;  %v4068_v30 = vand.u32 4294901760, %v4067_v44  ;;  %v6964_v43 = vsub.f32 %v2409_v12, %v6930_v22 }
 0x4e7   :  { %3965 = vmatprep.subr.mxu0 %v6834_v59  ;;  %3897 = vmatpush1.msra.mxu1 %v6625_v1  ;;  %v6941_v1 = vsub.f32 %v2458_v26, %v6900_v38  ;;  %v7304_v26 = vand.u32 4294901760, %v6898_v53  ;;  %v7305_v14 = vand.u32 4294901760, %v6920_v9  ;;  %v4097_v21 = vsub.f32 %v6817_v3, %v7303_v0 }
 0x4e8   :  { %3930 = vmatprep.mubr.f32.mxu1 %v7315_v16  ;;  %3967 = vmatpush1.msra.mxu0 %v6842_v33  ;;  %v4120_v31 = vand.u32 4294901760, %v6928_v2  ;;  %v4080_v12 = vand.u32 4294901760, %v4079_v15  ;;  %v4103_v44 = vsub.f32 %v6826_v10, %v7306_v5  ;;  %v4132_v0 = vand.u32 4294901760, %v6948_v17 }
 0x4e9   :  { %3932 = vmatmul.mubr.f32.vlgmr.msra.gmra.mxu1 %v5030_v49  ;;  %3969 = vmatprep.subr.mxu0 %v6778_v25  ;;  %v7307_v54 = vand.u32 4294901760, %v6941_v1  ;;  %v4138_v15 = vand.u32 4294901760, %v6960_v50 }
 0x4ea   :  { %4051 = vmatprep.subr.mxu1 %v4050_v7  ;;  %3971 = vmatpush1.msra.mxu0 %v6786_v35  ;;  %v4074_v7 = vand.u32 4294901760, %v4073_v19  ;;  %v4086_v19 = vand.u32 4294901760, %v4085_v34  ;;  %v4098_v34 = vand.u32 4294901760, %v4097_v21 }
 0x4eb   :  { %4057 = vmatpush1.msra.mxu1 %v4056_v24  ;;  %3973 = vmatprep.subr.mxu0 %v6858_v39  ;;  %v6973_v24 = vsub.f32 %v2408_v23, %v6943_v27  ;;  %v4115_v23 = vsub.f32 %v6920_v9, %v7305_v14  ;;  %v4127_v14 = vsub.f32 %v6941_v1, %v7307_v54 }
 0x4ec   :  { %4063 = vmatprep.subr.mxu1 %v4062_v48  ;;  %3975 = vmatpush1.msra.mxu0 %v6877_v20  ;;  %v4109_v48 = vsub.f32 %v6898_v53, %v7304_v26  ;;  %v4144_v26 = vand.u32 4294901760, %v6964_v43 }
 0x4ed   :  { %4069 = vmatpush1.msra.mxu1 %v4068_v30  ;;  %3977 = vmatprep.subr.mxu0 %v6888_v4  ;;  %v4092_v30 = vand.u32 4294901760, %v4091_v29  ;;  %v4150_v5 = vand.u32 4294901760, %v6973_v24  ;;  %v4104_v29 = vand.u32 4294901760, %v4103_v44  ;;  %v4116_v54 = vand.u32 4294901760, %v4115_v23 }
 0x4ee   :  { %4075 = vmatprep.subr.mxu1 %v4074_v7  ;;  %3979 = vmatpush1.msra.mxu0 %v6900_v38  ;;  %v4121_v7 = vsub.f32 %v6928_v2, %v4120_v31  ;;  %v4110_v21 = vand.u32 4294901760, %v4109_v48  ;;  %v4145_v48 = vsub.f32 %v6964_v43, %v4144_v26 }
 0x4ef   :  { %4081 = vmatpush1.msra.mxu1 %v4080_v12  ;;  %3981 = vmatprep.subr.mxu0 %v6906_v28  ;;  %v4133_v12 = vsub.f32 %v6948_v17, %v4132_v0 }
 0x4f0   :  { %4087 = vmatprep.subr.mxu1 %v4086_v19  ;;  %3983 = vmatpush1.msra.mxu0 %v6923_v55  ;;  %v4139_v19 = vsub.f32 %v6960_v50, %v4138_v15  ;;  %v4122_v44 = vand.u32 4294901760, %v4121_v7  ;;  %v4146_v7 = vand.u32 4294901760, %v4145_v48 }
 0x4f1   :  { %4093 = vmatpush1.msra.mxu1 %v4092_v30  ;;  %3985 = vmatprep.subr.mxu0 %v6930_v22  ;;  %v4151_v30 = vsub.f32 %v6973_v24, %v4150_v5  ;;  %v4134_v23 = vand.u32 4294901760, %v4133_v12 }
 0x4f2   :  { %4099 = vmatprep.subr.mxu1 %v4098_v34  ;;  %3987 = vmatpush1.msra.mxu0 %v6943_v27  ;;  %v4128_v34 = vand.u32 4294901760, %v4127_v14 }
 0x4f3   :  { %4020 = vmatprep.mubr.f32.mxu0 %v7315_v16  ;;  %4105 = vmatpush1.msra.mxu1 %v4104_v29  ;;  %v4152_v29 = vand.u32 4294901760, %v4151_v30 }
 0x4f4   :  { %4026 = vmatmul.mubr.f32.vlgmr.msra.gmra.mxu0 %v5114_v63  ;;  %4111 = vmatprep.subr.mxu1 %v4110_v21  ;;  %v4140_v63 = vand.u32 4294901760, %v4139_v19 }
 0x4f5   :  { %4210 = vmatprep.subr.mxu0 %v6806_v8  ;;  %4117 = vmatpush1.msra.mxu1 %v4116_v54  ;;  %v7441_v8 = vand.u32 4294901760, %v6817_v3 }
 0x4f6   :  { %4213 = vmatpush1.msra.mxu0 %v6789_v42  ;;  %4123 = vmatprep.subr.mxu1 %v4122_v44  ;;  %v7440_v42 = vand.u32 4294901760, %v6880_v6 }
 0x4f7   :  { %4216 = vmatprep.subr.mxu0 %v6830_v61  ;;  %4129 = vmatpush1.msra.mxu1 %v4128_v34  ;;  %v7443_v61 = vand.u32 4294901760, %v6898_v53 }
 0x4f8   :  { %4219 = vmatpush1.msra.mxu0 %v6840_v36  ;;  %4135 = vmatprep.subr.mxu1 %v4134_v23  ;;  %v7444_v36 = vand.u32 4294901760, %v6920_v9 }
 0x4f9   :  { %4222 = vmatprep.subr.mxu0 %v6847_v47  ;;  %4141 = vmatpush1.msra.mxu1 %v4140_v63 }
 0x4fa   :  { %4225 = vmatpush1.msra.mxu0 %v6856_v18  ;;  %4147 = vmatprep.subr.mxu1 %v4146_v7  ;;  %v7447_v7 = vld [vmem:[#allocation3_spill] sm:$0xff] }
 0x4fb   :  { %4228 = vmatprep.subr.mxu0 %v6869_v46  ;;  %4153 = vmatpush1.msra.mxu1 %v4152_v29 }
 0x4fc   :  { %4186 = vmatprep.mubr.f32.mxu1 %v7315_v16  ;;  %4231 = vmatpush1.msra.mxu0 %v6880_v6 }
 0x4fd   :  { %4188 = vmatmul.mubr.f32.vlgmr.msra.gmra.mxu1 %v5030_v49  ;;  %4234 = vmatprep.subr.mxu0 %v6817_v3 }
 0x4fe   :  { %4318 = vmatprep.subr.mxu1 %v6770_v37  ;;  %4237 = vmatpush1.msra.mxu0 %v6826_v10 }
 0x4ff   :  { %4320 = vmatpush1.msra.mxu1 %v6760_v56  ;;  %4240 = vmatprep.subr.mxu0 %v6898_v53 }
 0x500   :  { %4322 = vmatprep.subr.mxu1 %v6793_v60  ;;  %4243 = vmatpush1.msra.mxu0 %v6920_v9 }
 0x501   :  { %4324 = vmatpush1.msra.mxu1 %v6798_v45  ;;  %4246 = vmatprep.subr.mxu0 %v6928_v2 }
 0x502   :  { %4326 = vmatprep.subr.mxu1 %v6808_v57  ;;  %4249 = vmatpush1.msra.mxu0 %v6941_v1 }
 0x503   :  { %4328 = vmatpush1.msra.mxu1 %v6819_v52  ;;  %4252 = vmatprep.subr.mxu0 %v6948_v17 }
 0x504   :  { %4330 = vmatprep.subr.mxu1 %v6834_v59  ;;  %4255 = vmatpush1.msra.mxu0 %v6960_v50 }
 0x505   :  { %4332 = vmatpush1.msra.mxu1 %v6842_v33  ;;  %4258 = vmatprep.subr.mxu0 %v6964_v43 }
 0x506   :  { %4334 = vmatprep.subr.mxu1 %v6778_v25  ;;  %4261 = vmatpush1.msra.mxu0 %v6973_v24 }
 0x507   :  { %4294 = vmatprep.mubr.f32.mxu0 %v7315_v16  ;;  %4336 = vmatpush1.msra.mxu1 %v6786_v35 }
 0x508   :  { %4297 = vmatmul.mubr.f32.vlgmr.msra.gmra.mxu0 %v5051_v32  ;;  %4338 = vmatprep.subr.mxu1 %v6858_v39  ;;  %v7439_v32 = vand.u32 4294901760, %v6869_v46 }
 0x509   :  { %4412 = vmatprep.subr.mxu0 %v4048_v58  ;;  %4340 = vmatpush1.msra.mxu1 %v6877_v20 }
 0x50a   :  { %4416 = vmatpush1.msra.mxu0 %v4054_v11  ;;  %4342 = vmatprep.subr.mxu1 %v6888_v4  ;;  %v7442_v11 = vand.u32 4294901760, %v6826_v10 }
 0x50b   :  { %4420 = vmatprep.subr.mxu0 %v4060_v51  ;;  %4344 = vmatpush1.msra.mxu1 %v6900_v38  ;;  %v7446_v51 = vld [vmem:[#allocation2_spill] sm:$0xff] }
 0x50c   :  { %4424 = vmatpush1.msra.mxu0 %v4066_v40  ;;  %4346 = vmatprep.subr.mxu1 %v6906_v28 }
 0x50d   :  { %4428 = vmatprep.subr.mxu0 %v4072_v41  ;;  %4348 = vmatpush1.msra.mxu1 %v6923_v55 }
 0x50e   :  { %4432 = vmatpush1.msra.mxu0 %v4078_v13  ;;  %4350 = vmatprep.subr.mxu1 %v6930_v22 }
 0x50f   :  { %4436 = vmatprep.subr.mxu0 %v7439_v32  ;;  %4352 = vmatpush1.msra.mxu1 %v6943_v27 }
 0x510   :  { %4385 = vmatprep.mubr.f32.mxu1 %v7315_v16  ;;  %4440 = vmatpush1.msra.mxu0 %v7440_v42 }
 0x511   :  { %4389 = vmatmul.mubr.f32.vlgmr.msra.gmra.mxu1 %v5074_v62  ;;  %4444 = vmatprep.subr.mxu0 %v7441_v8  ;;  %v7445_v62 = vand.u32 4294901760, %v6941_v1 }
 0x512   :  { %4536 = vmatprep.subr.mxu1 %v6770_v37  ;;  %4448 = vmatpush1.msra.mxu0 %v7442_v11  ;;  %v7448_v11 = vld [vmem:[#allocation4_spill] sm:$0xff] }
 0x513   :  { %4538 = vmatpush1.msra.mxu1 %v6760_v56  ;;  %4452 = vmatprep.subr.mxu0 %v7443_v61 }
 0x514   :  { %4540 = vmatprep.subr.mxu1 %v6793_v60  ;;  %4456 = vmatpush1.msra.mxu0 %v7444_v36 }
 0x515   :  { %4542 = vmatpush1.msra.mxu1 %v6798_v45  ;;  %4460 = vmatprep.subr.mxu0 %v4120_v31 }
 0x516   :  { %4544 = vmatprep.subr.mxu1 %v6808_v57  ;;  %4464 = vmatpush1.msra.mxu0 %v7445_v62  ;;  %v7449_v62 = vld [vmem:[#allocation5_spill] sm:$0xff] }
 0x517   :  { %4546 = vmatpush1.msra.mxu1 %v6819_v52  ;;  %4468 = vmatprep.subr.mxu0 %v4132_v0 }
 0x518   :  { %4548 = vmatprep.subr.mxu1 %v6834_v59  ;;  %4472 = vmatpush1.msra.mxu0 %v4138_v15 }
 0x519   :  { %4550 = vmatpush1.msra.mxu1 %v6842_v33  ;;  %4476 = vmatprep.subr.mxu0 %v4144_v26 }
 0x51a   :  { %4552 = vmatprep.subr.mxu1 %v6778_v25  ;;  %4480 = vmatpush1.msra.mxu0 %v4150_v5 }
 0x51b   :  { %4513 = vmatprep.mubr.f32.mxu0 %v7315_v16  ;;  %4554 = vmatpush1.msra.mxu1 %v6786_v35 }
 0x51c   :  { %4515 = vmatmul.mubr.f32.vlgmr.msra.gmra.mxu0 %v5030_v49  ;;  %4556 = vmatprep.subr.mxu1 %v6858_v39 }
 0x51d   :  { %4558 = vmatpush1.msra.mxu1 %v6877_v20  ;;  %4603 = vmatprep.mubr.f32.mxu1 %v7315_v16 }
 0x51e   :  { %4560 = vmatprep.subr.mxu1 %v6888_v4 }
 0x51f   :  { %4562 = vmatpush1.msra.mxu1 %v6900_v38 }
 0x520   :  { %4564 = vmatprep.subr.mxu1 %v6906_v28 }
 0x521   :  { %4566 = vmatpush1.msra.mxu1 %v6923_v55 }
 0x522   :  { %4568 = vmatprep.subr.mxu1 %v6930_v22 }
 0x523   :  { %4570 = vmatpush1.msra.mxu1 %v6943_v27 }
 0x524   :  { %4605 = vmatmul.mubr.f32.vlgmr.msra.gmra.mxu1 %v5030_v49 }
 0x53d   :  { %v2681_v56 = vpop.f32.mrf.mxu0 }
 0x53e   :  { %v2682_v20 = vadd.f32 %v2681_v56, %v7446_v51 }
 0x53f   :  { %v2683_v37 = vpop.f32.mrf.mxu0 }
 0x540   :  { %v2684_v40 = vadd.f32 %v2683_v37, %v7446_v51 }
 0x545   :  { %v2843_v25 = vpop.f32.mrf.mxu1 }
 0x546   :  { %v2844_v53 = vadd.f32 %v2843_v25, %v2682_v20 }
 0x547   :  { %v2845_v60 = vpop.f32.mrf.mxu1 }
 0x548   :  { %v2846_v41 = vadd.f32 %v2845_v60, %v2684_v40  ;;  %v7452_v40 = vld [vmem:[#allocation9_spill] sm:$0xff] }
 0x550   :  { %v2952_v35 = vpop.f32.mrf.mxu0 }
 0x551   :  { %v2953_v31 = vadd.f32 %v2952_v35, %v2844_v53 }
 0x552   :  { %v2954_v16 = vpop.f32.mrf.mxu0 }
 0x553   :  { %v2955_v28 = vadd.f32 %v2954_v16, %v2846_v41 }
 0x559   :  { %v3044_v45 = vpop.f32.mrf.mxu1 }
 0x55a   :  { %v3045_v27 = vadd.f32 %v3044_v45, %v2953_v31 }
 0x55b   :  { %v3046_v3 = vpop.f32.mrf.mxu1 }
 0x55c   :  { %v3047_v2 = vadd.f32 %v3046_v3, %v2955_v28 }
 0x564   :  { %v3170_v57 = vpop.f32.mrf.mxu0 }
 0x565   :  { %v3171_v54 = vadd.f32 %v3170_v57, %v3045_v27 }
 0x566   :  { %v3172_v52 = vpop.f32.mrf.mxu0 }
 0x567   :  { %v3173_v14 = vadd.f32 %v3172_v52, %v3047_v2 }
 0x56d   :  { %v3260_v10 = vpop.f32.mrf.mxu1 }
 0x56e   :  { %v7120_v19 = vadd.f32 %v3260_v10, %v3171_v54  ;;  %v7450_v10 = vld [vmem:[#allocation6_spill] sm:$0xff] }
 0x56f   :  { %v3262_v33 = vpop.f32.mrf.mxu1 }
 0x570   :  { %v7118_v15 = vadd.f32 %v3262_v33, %v3173_v14  ;;  %v4611_v61 = vmul.f32 %v7120_v19, %v7448_v11 }
 0x572   :  { %v4612_v29 = vmul.f32 %v7118_v15, %v7447_v7 }
 0x574   :  { %v4617_v16 = vadd.f32 %v4612_v29, %v4611_v61  ;;  %v4713_v61 = vld [vmem:[%s7199_s5] sm:$0xff] }
 0x578   :  { %v3354_v59 = vpop.f32.mrf.mxu0 }
 0x579   :  { %v3355_v13 = vadd.f32 %v3354_v59, %v7446_v51 }
 0x57a   :  { %v3356_v47 = vpop.f32.mrf.mxu0 }
 0x57b   :  { %v3357_v22 = vadd.f32 %v3356_v47, %v7446_v51 }
 0x581   :  { %v3516_v58 = vpop.f32.mrf.mxu1 }
 0x582   :  { %v3517_v9 = vadd.f32 %v3516_v58, %v3355_v13 }
 0x583   :  { %v3518_v18 = vpop.f32.mrf.mxu1 }
 0x584   :  { %v3519_v50 = vadd.f32 %v3518_v18, %v3357_v22 }
 0x58c   :  { %v3625_v0 = vpop.f32.mrf.mxu0 }
 0x58d   :  { %v3626_v1 = vadd.f32 %v3625_v0, %v3517_v9 }
 0x58e   :  { %v3627_v39 = vpop.f32.mrf.mxu0 }
 0x58f   :  { %v3628_v21 = vadd.f32 %v3627_v39, %v3519_v50 }
 0x595   :  { %v3717_v5 = vpop.f32.mrf.mxu1 }
 0x596   :  { %v3718_v43 = vadd.f32 %v3717_v5, %v3626_v1 }
 0x597   :  { %v3719_v46 = vpop.f32.mrf.mxu1 }
 0x598   :  { %v3720_v48 = vadd.f32 %v3719_v46, %v3628_v21 }
 0x5a0   :  { %v3843_v49 = vpop.f32.mrf.mxu0 }
 0x5a1   :  { %v3844_v12 = vadd.f32 %v3843_v49, %v3718_v43  ;;  %v7451_v49 = vld [vmem:[#allocation7_spill] sm:$0xff] }
 0x5a2   :  { %v3845_v6 = vpop.f32.mrf.mxu0 }
 0x5a3   :  { %v3846_v32 = vadd.f32 %v3845_v6, %v3720_v48 }
 0x5a9   :  { %v3933_v4 = vpop.f32.mrf.mxu1 }
 0x5aa   :  { %v7122_v30 = vadd.f32 %v3933_v4, %v3844_v12 }
 0x5ab   :  { %v3935_v55 = vpop.f32.mrf.mxu1 }
 0x5ac   :  { %v4613_v56 = vmul.f32 %v7122_v30, %v7449_v62  ;;  %v7132_v37 = vadd.f32 %v3935_v55, %v3846_v32 }
 0x5ae   :  { %v4618_v52 = vadd.f32 %v4617_v16, %v4613_v56  ;;  %v4614_v59 = vmul.f32 %v7132_v37, %v7450_v10 }
 0x5b0   :  { %v4619_v5 = vadd.f32 %v4618_v52, %v4614_v59 }
 0x5b4   :  { %v4027_v38 = vpop.f32.mrf.mxu0 }
 0x5b5   :  { %v4028_v34 = vadd.f32 %v4027_v38, %v7446_v51 }
 0x5b6   :  { %v4029_v17 = vpop.f32.mrf.mxu0 }
 0x5b7   :  { %v4030_v42 = vadd.f32 %v4029_v17, %v7446_v51 }
 0x5bd   :  { %v4189_v26 = vpop.f32.mrf.mxu1 }
 0x5be   :  { %v4190_v8 = vadd.f32 %v4189_v26, %v4028_v34 }
 0x5bf   :  { %v4191_v44 = vpop.f32.mrf.mxu1 }
 0x5c0   :  { %v4192_v25 = vadd.f32 %v4191_v44, %v4030_v42  ;;  %v4712_v42 = vld [vmem:[%s7198_s4] sm:$0xff] }
 0x5c8   :  { %v4298_v24 = vpop.f32.mrf.mxu0 }
 0x5c9   :  { %v4299_v35 = vadd.f32 %v4298_v24, %v4190_v8 }
 0x5ca   :  { %v4300_v23 = vpop.f32.mrf.mxu0 }
 0x5cb   :  { %v4301_v45 = vadd.f32 %v4300_v23, %v4192_v25 }
 0x5d1   :  { %v4390_v63 = vpop.f32.mrf.mxu1 }
 0x5d2   :  { %v4391_v57 = vadd.f32 %v4390_v63, %v4299_v35 }
 0x5d3   :  { %v4392_v60 = vpop.f32.mrf.mxu1 }
 0x5d4   :  { %v4393_v33 = vadd.f32 %v4392_v60, %v4301_v45 }
 0x5dc   :  { %v4516_v36 = vpop.f32.mrf.mxu0 }
 0x5dd   :  { %v4517_v47 = vadd.f32 %v4516_v36, %v4391_v57 }
 0x5de   :  { %v4518_v3 = vpop.f32.mrf.mxu0 }
 0x5df   :  { %v4519_v0 = vadd.f32 %v4518_v3, %v4393_v33 }
 0x5e4   :  { %v4606_v58 = vpop.f32.mrf.mxu1 }
 0x5e5   :  { %v4607_v18 = vadd.f32 %v4606_v58, %v4517_v47  ;;  %v4714_v58 = vld [vmem:[%s7194_s0] sm:$0xff] }
 0x5e6   :  { %v4608_v39 = vpop.f32.mrf.mxu1 }
 0x5e7   :  { %v4615_v46 = vmul.f32 %v4607_v18, %v7451_v49  ;;  %v4609_v51 = vadd.f32 %v4608_v39, %v4519_v0 }
 0x5e9   :  { %v4616_v20 = vmul.f32 %v4609_v51, %v7452_v40  ;;  %v4620_v6 = vadd.f32 %v4619_v5, %v4615_v46  ;;  %v4718_v5 = vld [vmem:[%s7194_s0 + $0x20] sm:$0xff]  ;;  %v4719_v46 = vld [vmem:[%s7194_s0 + $0x28] sm:$0xff] }
 0x5eb   :  { %v4621_v4 = vadd.f32 %v4620_v6, %v4616_v20 }
 0x5ed   :  { %4622 = vadd.xlane.f32.xlu0 %v4621_v4 }
 0x676   :  { %v4623_v41 = vpop.xlane.xlu0 %4622 }
 0x677   :  { %v4624_v13 = vmul.f32 0.001953125, %v4623_v41 }
 0x679   :  { %v4625_v53 = vsub.f32 %v7120_v19, %v4624_v13  ;;  %v4626_v38 = vsub.f32 %v7118_v15, %v4624_v13  ;;  %v4627_v28 = vsub.f32 %v7122_v30, %v4624_v13  ;;  %v4628_v9 = vsub.f32 %v7132_v37, %v4624_v13 }
 0x67a   :  { %v4629_v31 = vsub.f32 %v4607_v18, %v4624_v13  ;;  %v4630_v1 = vsub.f32 %v4609_v51, %v4624_v13 }
 0x67b   :  { %v4631_v55 = vmul.f32 %v4625_v53, %v7448_v11  ;;  %v4632_v2 = vmul.f32 %v4626_v38, %v7447_v7  ;;  %v4633_v22 = vmul.f32 %v4627_v28, %v7449_v62  ;;  %v4634_v27 = vmul.f32 %v4628_v9, %v7450_v10 }
 0x67c   :  { %v4635_v14 = vmul.f32 %v4629_v31, %v7451_v49  ;;  %v4636_v54 = vmul.f32 %v4630_v1, %v7452_v40 }
 0x67d   :  { %v4637_v17 = vmul.f32 %v4631_v55, %v4631_v55  ;;  %v4638_v26 = vmul.f32 %v4632_v2, %v4632_v2  ;;  %v4639_v50 = vmul.f32 %v4633_v22, %v4633_v22  ;;  %v4640_v24 = vmul.f32 %v4634_v27, %v4634_v27 }
 0x67e   :  { %v4641_v12 = vmul.f32 %v4635_v14, %v4635_v14  ;;  %v4642_v48 = vmul.f32 %v4636_v54, %v4636_v54 }
 0x67f   :  { %v4643_v43 = vadd.f32 %v4638_v26, %v4637_v17 }
 0x681   :  { %v4644_v21 = vadd.f32 %v4643_v43, %v4639_v50 }
 0x683   :  { %v4645_v44 = vadd.f32 %v4644_v21, %v4640_v24 }
 0x685   :  { %v4646_v34 = vadd.f32 %v4645_v44, %v4641_v12 }
 0x687   :  { %v4647_v23 = vadd.f32 %v4646_v34, %v4642_v48 }
 0x689   :  { %4648 = vadd.xlane.f32.xlu1 %v4647_v23 }
 0x712   :  { %v4649_v63 = vpop.xlane.xlu1 %4648 }
 0x713   :  { %v4650_v7 = vmul.f32 0.001953125, %v4649_v63 }
 0x715   :  { %v4651_v29 = vadd.f32 1e-05, %v4650_v7 }
 0x717   :  { %4708 = vrsqrt.f32 %v4651_v29 }
 0x724   :  { %v4709_v32 = vpop.eup %4708 }
 0x725   :  { %v4653_v8 = vmul.f32 %v4712_v42, %v4709_v32 }
 0x727   :  { %4658 = vperm.xlu0 %4704, %v4653_v8   ;;  %v4654_v11 = vmul.f32 %v4653_v8, %v4624_v13 }
 0x729   :  { %v4655_v36 = vsub.f32 %v4713_v61, %v4654_v11 }
 0x72b   :  { %4669 = vperm.xlu1 %4705, %v4655_v36  }
 0x7a2   :  { %v4659_v62 = vpop.permute.xlu0 %4658 }
 0x7a3   :  { %v4661_v56 = vmul.f32 %v4659_v62, %v7120_v19  ;;  %v4662_v25 = vmul.f32 %v4659_v62, %v7118_v15  ;;  %v4663_v35 = vmul.f32 %v4659_v62, %v7122_v30  ;;  %v4664_v60 = vmul.f32 %v4659_v62, %v7132_v37  ;;  %v4715_v15 = vld [vmem:[%s7194_s0 + $0x8] sm:$0xff]  ;;  %v4716_v37 = vld [vmem:[%s7194_s0 + $0x10] sm:$0xff] }
 0x7a4   :  { %v4665_v16 = vmul.f32 %v4659_v62, %v4607_v18  ;;  %v4666_v45 = vmul.f32 %v4659_v62, %v4609_v51  ;;  %v4717_v18 = vld [vmem:[%s7194_s0 + $0x18] sm:$0xff] }
 0x7a6   :  { %v4670_v57 = vpop.permute.xlu1 %4669 }
 0x7a7   :  { %v4672_v3 = vadd.f32 %v4670_v57, %v4661_v56  ;;  %v4673_v52 = vadd.f32 %v4670_v57, %v4662_v25  ;;  %v4674_v10 = vadd.f32 %v4670_v57, %v4663_v35  ;;  %v4675_v59 = vadd.f32 %v4670_v57, %v4664_v60 }
 0x7a8   :  { %v4676_v33 = vadd.f32 %v4670_v57, %v4665_v16  ;;  %v4677_v47 = vadd.f32 %v4670_v57, %v4666_v45 }
 0x7a9   :  { %v4678_v19 = vadd.f32 %v4714_v58, %v4672_v3  ;;  %v4679_v30 = vadd.f32 %v4715_v15, %v4673_v52  ;;  %v4680_v0 = vadd.f32 %v4716_v37, %v4674_v10  ;;  %v4681_v39 = vadd.f32 %v4717_v18, %v4675_v59 }
 0x7aa   :  { %v4682_v49 = vadd.f32 %v4718_v5, %v4676_v33  ;;  %v4683_v51 = vadd.f32 %v4719_v46, %v4677_v47 }
 0x7ab   :  { %4684 = vst [vmem:[%s7200_s6] sm:$0xff] %v4678_v19  ;;  %4685 = vst [vmem:[%s7200_s6 + $0x8] sm:$0xff] %v4679_v30 }
 0x7ac   :  { %4686 = vst [vmem:[%s7200_s6 + $0x10] sm:$0xff] %v4680_v0  ;;  %4687 = vst [vmem:[%s7200_s6 + $0x18] sm:$0xff] %v4681_v39 }
 0x7ad   :  { %4688 = vst [vmem:[%s7200_s6 + $0x20] sm:$0xff] %v4682_v49  ;;  %4689 = vst [vmem:[%s7200_s6 + $0x28] sm:$0xff] %v4683_v51 }

</bundles_post_ra>
